<compile_context>
chip_gen: v7x
topology: tpu7x:2x2x1
jax: 0.10.0
libtpu: 0.0.40
codegen_flags: <defaults>
</compile_context>

<pallas_src>
import jax
import jax.numpy as jnp
import numpy as np
from jax.experimental import pallas as pl
from jax.experimental.pallas import tpu as pltpu

# ----------------------------------------------------------------------------
# Model configuration (mirrors ActionDecoderHead.__init__, at small sizes)
# ----------------------------------------------------------------------------
VIS_DIM = 4096              # hardcoded vis_dim=4096 in the torch module
HIDDEN = 128                # hidden_dim (small, keeps head_dim == 64)
N_HEADS = HIDDEN // 64      # n_heads = hidden_dim // 64 (as in the module)
HEAD_DIM = HIDDEN // N_HEADS
STATE_DIM = 16              # proprio state_dim
WINDOW = 4                  # window_size
ACTION_DIM = 7              # action_dim
OUT_DIM = WINDOW * ACTION_DIM
N_LATENT_USED = 4           # latent_action_tokens[:, -4:]
LN_EPS = 1e-6

F32 = jnp.float32
BF16 = jnp.bfloat16
H = HIDDEN
G = N_HEADS

# ---- packed parameter layout -------------------------------------------------
# w_h columns (all 128-row weights, bf16):
_A_BASE, _V_BASE = 0, 8 * H                # per MAP block: wq | wkv | wo | wm1(4H)
_C_PW2, _C_PW1 = 16 * H, 17 * H            # proprio MLP (pw1 zero-padded to 128 rows)
_C_FWA, _C_FWP = 18 * H, 19 * H            # final projection (zero-padded to 128 cols)
_WH_COLS = 20 * H
# smalls rows (f32, width 4H = 512):
_R_PROBE, _R_BP, _R_BO, _R_G1, _R_B1, _R_BM1, _R_BM2, _R_G2, _R_B2 = range(9)
_SA, _SV = 0, 9
_R_PB1, _R_PB2, _R_FB = 18, 19, 20
_SM_ROWS = 24


# ----------------------------------------------------------------------------
# Elementwise helpers (used inside the kernel and in the pure-JAX reference)
# ----------------------------------------------------------------------------
def _gelu(x):
    # TODO(synk): torch.nn.GELU defaults to the exact erf form; the tanh approximation is
    # used for guaranteed Mosaic lowering (~1e-3 relative difference).
    c = 0.7978845608028654  # sqrt(2/pi)
    return 0.5 * x * (1.0 + jnp.tanh(c * (x + 0.044715 * x * x * x)))


def _layer_norm(x, g, b):
    mu = jnp.mean(x, axis=-1, keepdims=True)
    xc = x - mu
    var = jnp.mean(xc * xc, axis=-1, keepdims=True)
    return xc * jax.lax.rsqrt(var + LN_EPS) * g + b


def _head_selectors():
    """0/1 matrices mapping feature lanes <-> heads: (H, G) and (G, H), f32 (tiny)."""
    d = jax.lax.broadcasted_iota(jnp.int32, (H, G), 0)
    g = jax.lax.broadcasted_iota(jnp.int32, (H, G), 1) * HEAD_DIM
    hs = jnp.where((d >= g) & (d < g + HEAD_DIM), 1.0, 0.0)
    gT = jax.lax.broadcasted_iota(jnp.int32, (G, H), 0) * HEAD_DIM
    dT = jax.lax.broadcasted_iota(jnp.int32, (G, H), 1)
    hsT = jnp.where((dT >= gT) & (dT < gT + HEAD_DIM), 1.0, 0.0)
    return hs, hsT


# ----------------------------------------------------------------------------
# Pallas kernel
# ----------------------------------------------------------------------------
def _build_kernel(bb):
    scale = 1.0 / float(HEAD_DIM) ** 0.5

    def kernel(lat_ref, vis_ref, prop_ref, sela_ref, selaT_ref, selv_ref, selvT_ref,
               wp_ref, wh_ref, wm2_ref, sm_ref, out_ref):
        sm = sm_ref[...]                                             # (24, 512) f32

        def srow(r, width=H):
            return sm[r:r + 1, :width]                               # (1, width) f32

        def bdot(a, b):          # big weight matmuls: bf16 on the MXU, f32 accumulate
            return jnp.dot(a.astype(BF16), b.astype(BF16), preferred_element_type=F32)

        def fdot(a, b):          # tiny 0/1-selector matmuls: f32 for softmax parity
            return jnp.dot(a, b, preferred_element_type=F32)

        head_sel, head_selT = _head_selectors()                      # (H,G) / (G,H)

        def map_pool(xp, lat0, samp_sel, samp_selT, wbase, sbase, m2_lo):
            """MAP attention pooling for bb samples; xp: (bb*n, H), lat0: (bb, H)."""
            w_q = wh_ref[:, wbase: wbase + H]
            w_kv = wh_ref[:, wbase + H: wbase + 3 * H]
            w_o = wh_ref[:, wbase + 3 * H: wbase + 4 * H]
            w_m1 = wh_ref[:, wbase + 4 * H: wbase + 8 * H]

            q = bdot(lat0, w_q)                                      # (bb, H)
            kv = bdot(xp, w_kv)                                      # (rows, 2H) fused k|v
            k, v = kv[:, :H], kv[:, H:]

            # Broadcast each sample's query onto its token rows (MXU) and reduce per head
            # with a 0/1 head selector (MXU): no masked cross-lane reductions.
            q_rows = fdot(samp_sel, q)                               # (rows, H)
            s = fdot(q_rows * k, head_sel) * scale                   # (rows, G)

            # Per-sample / per-head softmax over each sample's token rows.  A single
            # global max is a constant shared within every segment, so softmax(s - m)
            # equals the per-segment softmax (no per-sample max loop / row slicing).
            m = jnp.max(s)
            e = jnp.exp(s - m)                                       # (rows, G)
            denom = fdot(samp_selT, e)                               # (bb, G) segment sums
            p = e / fdot(samp_sel, denom)                            # broadcast back (MXU)
            # TODO(synk): on v7x a (bb*G, n) lane-dense score layout would cut the mostly
            # empty (rows, G=2) vregs in this softmax path; kernel is DMA-bound elsewhere.
            p_full = fdot(p, head_selT)                              # (rows, H) lane weights
            vals = fdot(samp_selT, p_full * v)                       # (bb, H) segment sums

            attn = bdot(vals, w_o) + srow(sbase + _R_BO)
            lat = _layer_norm(lat0 + attn, srow(sbase + _R_G1), srow(sbase + _R_B1))
            mid = _gelu(bdot(lat, w_m1) + srow(sbase + _R_BM1, 4 * H))
            mlp = bdot(mid, wm2_ref[:, m2_lo: m2_lo + H]) + srow(sbase + _R_BM2)
            return _layer_norm(lat + mlp, srow(sbase + _R_G2), srow(sbase + _R_B2))

        # Dominant 4096 -> 128 projections over the whole bb-sample block.  The bf16 cast
        # of the activations happens here, per tile (inputs arrive in their HBM dtype).
        xp_a = bdot(lat_ref[0], wp_ref[:, :H]) + srow(_SA + _R_BP)        # (bb*n_lat, H)
        xp_v = bdot(vis_ref[0], wp_ref[:, H:2 * H]) + srow(_SV + _R_BP)   # (bb*n_vis, H)

        # proprio_proj: Linear -> GELU -> Linear (proprio zero-padded to 128 lanes).
        ph = _gelu(bdot(prop_ref[0], wh_ref[:, _C_PW1: _C_PW1 + H]) + srow(_R_PB1))
        ph = bdot(ph, wh_ref[:, _C_PW2: _C_PW2 + H]) + srow(_R_PB2)       # (bb, H)

        # visual_pool (no init embed), then attn_pool(init_embed=visual_pool).
        vpool = map_pool(xp_v, jnp.broadcast_to(srow(_SV + _R_PROBE), (bb, H)),
                         selv_ref[...], selvT_ref[...], _V_BASE, _SV, H)
        apool = map_pool(xp_a, srow(_SA + _R_PROBE) + vpool,
                         sela_ref[...], selaT_ref[...], _A_BASE, _SA, 0)

        # proj(concat([apool, proprio], -1)): zero-padded weight columns make this a
        # lane-dense (bb, 128) store; the wrapper slices [:, :OUT_DIM].
        out_ref[0] = (bdot(apool, wh_ref[:, _C_FWA: _C_FWA + H])
                      + bdot(ph, wh_ref[:, _C_FWP: _C_FWP + H])
                      + srow(_R_FB))

    return kernel


# ----------------------------------------------------------------------------
# Wrapper
# ----------------------------------------------------------------------------
def _vmem_budget():
    """Per-block activation cap and vmem limit derived from the detected VMEM size."""
    try:
        cap = int(pltpu.get_tpu_info().vmem_capacity_bytes)
    except Exception:
        cap = 64 << 20                         # conservative (v7x-sized) fallback
    blk_cap = min(16 << 20, max(4 << 20, cap // 8))
    vmem_limit = min(64 << 20, max(32 << 20, cap // 2))
    return blk_cap, vmem_limit


def _pick_block_batch(B, n_lat, n_vis, elem_bytes, blk_cap_bytes, min_grid=4):
    """Samples per grid step: sized by the REAL batch and the per-block VMEM cap."""
    row_bytes = (n_lat + n_vis) * VIS_DIM * elem_bytes     # activation bytes per sample
    bb_cap = max(1, blk_cap_bytes // row_bytes)
    bb_par = max(1, -(-B // min_grid))                     # aim for >= min_grid steps
    bb = max(1, min(bb_cap, bb_par, B))
    b_pad = -(-B // bb) * bb                               # pad < bb samples, only if needed
    return bb, b_pad


def _make_segment_selectors(bb, n):
    """0/1 matrices mapping token rows <-> samples, built once host-side (f32)."""
    rows = bb * n
    sel = (np.arange(rows)[:, None] // n == np.arange(bb)[None, :]).astype(np.float32)
    return jnp.asarray(sel), jnp.asarray(np.ascontiguousarray(sel.T))


def action_decoder_head(latent_action_tokens, visual_embed, proprio, packed):
    wp_cat, w_h, w_m2, smalls = packed
    B, T, D = latent_action_tokens.shape
    n_vis = visual_embed.shape[1]
    assert D == VIS_DIM and visual_embed.shape[2] == VIS_DIM and T >= N_LATENT_USED

    elem = jnp.dtype(latent_action_tokens.dtype).itemsize
    blk_cap, vmem_limit = _vmem_budget()
    bb, b_pad = _pick_block_batch(B, N_LATENT_USED, n_vis, elem, blk_cap)
    nb = b_pad // bb
    pad = b_pad - B
    # Guard: huge single-sample blocks must still fit the declared limit.
    blk_bytes = bb * (N_LATENT_USED + n_vis) * VIS_DIM * elem
    vmem_limit = max(vmem_limit, 2 * blk_bytes + (12 << 20))

    lat = latent_action_tokens[:, -N_LATENT_USED:, :]
    vis = visual_embed
    if pad:
        lat = jnp.pad(lat, ((0, pad), (0, 0), (0, 0)))
        vis = jnp.pad(vis, ((0, pad), (0, 0), (0, 0)))
    prop = jnp.pad(proprio, ((0, pad), (0, HIDDEN - proprio.shape[1])))

    # Free, contiguous reshapes: no extra pad/astype HBM pass over the big activations.
    # Block last-two dims equal the array dims, so any bb is (8,128)-legal.
    lat3 = lat.reshape(nb, bb * N_LATENT_USED, VIS_DIM)
    vis3 = vis.reshape(nb, bb * n_vis, VIS_DIM)
    prop3 = prop.reshape(nb, bb, HIDDEN)

    sel_a, selT_a = _make_segment_selectors(bb, N_LATENT_USED)
    sel_v, selT_v = _make_segment_selectors(bb, n_vis)

    kernel = _build_kernel(bb)

    def full(arr):               # small arrays resident for the whole grid (fetched once)
        return pl.BlockSpec(arr.shape, lambda *_, nd=arr.ndim: (0,) * nd)

    out = pl.pallas_call(
        kernel,
        out_shape=jax.ShapeDtypeStruct((nb, bb, HIDDEN), F32),
        grid_spec=pltpu.PrefetchScalarGridSpec(
            num_scalar_prefetch=0,
            grid=(nb,),
            in_specs=[
                pl.BlockSpec((1, bb * N_LATENT_USED, VIS_DIM), lambda i: (i, 0, 0)),
                pl.BlockSpec((1, bb * n_vis, VIS_DIM), lambda i: (i, 0, 0)),
                pl.BlockSpec((1, bb, HIDDEN), lambda i: (i, 0, 0)),
                full(sel_a), full(selT_a), full(sel_v), full(selT_v),
                full(wp_cat), full(w_h), full(w_m2), full(smalls),
            ],
            out_specs=pl.BlockSpec((1, bb, HIDDEN), lambda i: (i, 0, 0)),
        ),
        compiler_params=pltpu.CompilerParams(
            dimension_semantics=("parallel",),        # batch blocks shard across TCs
            vmem_limit_bytes=int(vmem_limit),
        ),
    )(lat3, vis3, prop3, sel_a, selT_a, sel_v, selT_v, wp_cat, w_h, w_m2, smalls)

    # TODO(synk): for batch-1 serving on v7x, split the 4096 reduction into a second
    # "arbitrary" grid axis (accumulate xp in VMEM scratch, pool under pl.when) so both
    # TensorCores stay busy; not needed for batched shapes.
    return out.reshape(b_pad, HIDDEN)[:B, :OUT_DIM]


# ----------------------------------------------------------------------------
# Deterministic parameter initialization (synthetic; no checkpoint load)
# ----------------------------------------------------------------------------
def _init_map_block(key):
    ks = jax.random.split(key, 8)

    def w(k, shape):
        return (0.02 * jax.random.normal(k, shape, F32)).astype(BF16)

    return dict(
        probe=0.02 * jax.random.normal(ks[0], (1, HIDDEN), F32),
        wp=w(ks[1], (VIS_DIM, HIDDEN)), bp=jnp.zeros((1, HIDDEN), F32),
        wq=w(ks[2], (HIDDEN, HIDDEN)), wk=w(ks[3], (HIDDEN, HIDDEN)),
        wv=w(ks[4], (HIDDEN, HIDDEN)), wo=w(ks[5], (HIDDEN, HIDDEN)),
        bo=jnp.zeros((1, HIDDEN), F32),
        g1=jnp.ones((1, HIDDEN), F32), b1=jnp.zeros((1, HIDDEN), F32),
        wm1=w(ks[6], (HIDDEN, 4 * HIDDEN)), bm1=jnp.zeros((1, 4 * HIDDEN), F32),
        wm2=w(ks[7], (4 * HIDDEN, HIDDEN)), bm2=jnp.zeros((1, HIDDEN), F32),
        g2=jnp.ones((1, HIDDEN), F32), b2=jnp.zeros((1, HIDDEN), F32),
    )


def init_params(key):
    k1, k2, k3, k4, k5 = jax.random.split(key, 5)
    fw = (0.02 * jax.random.normal(k5, (2 * HIDDEN, OUT_DIM), F32)).astype(BF16)
    return dict(
        attn=_init_map_block(k1),
        vis=_init_map_block(k2),
        pw1=(0.02 * jax.random.normal(k3, (STATE_DIM, HIDDEN), F32)).astype(BF16),
        pb1=jnp.zeros((1, HIDDEN), F32),
        pw2=(0.02 * jax.random.normal(k4, (HIDDEN, HIDDEN), F32)).astype(BF16),
        pb2=jnp.zeros((1, HIDDEN), F32),
        fwa=fw[:HIDDEN], fwp=fw[HIDDEN:], fb=jnp.zeros((1, OUT_DIM), F32),
    )


def pack_params(p):
    """Pack the logical parameters into the 4 kernel weight inputs."""
    wp_cat = jnp.concatenate([p["attn"]["wp"], p["vis"]["wp"]], axis=1)      # (4096, 2H)

    def blk_w(b):
        return jnp.concatenate([b["wq"], b["wk"], b["wv"], b["wo"], b["wm1"]], axis=1)

    pw1_pad = jnp.zeros((H, H), BF16).at[:STATE_DIM, :].set(p["pw1"])
    fwa_pad = jnp.zeros((H, H), BF16).at[:, :OUT_DIM].set(p["fwa"])
    fwp_pad = jnp.zeros((H, H), BF16).at[:, :OUT_DIM].set(p["fwp"])
    w_h = jnp.concatenate([blk_w(p["attn"]), blk_w(p["vis"]),
                           p["pw2"], pw1_pad, fwa_pad, fwp_pad], axis=1)     # (H, 20H)
    assert w_h.shape == (H, _WH_COLS)
    w_m2 = jnp.concatenate([p["attn"]["wm2"], p["vis"]["wm2"]], axis=1)      # (4H, 2H)

    def row(v):
        v = v.astype(F32)
        return jnp.pad(v, ((0, 0), (0, 4 * H - v.shape[1])))

    rows = []
    for b in (p["attn"], p["vis"]):
        rows += [row(b["probe"]), row(b["bp"]), row(b["bo"]), row(b["g1"]), row(b["b1"]),
                 b["bm1"].astype(F32), row(b["bm2"]), row(b["g2"]), row(b["b2"])]
    rows += [row(p["pb1"]), row(p["pb2"]), row(p["fb"])]
    rows += [jnp.zeros((1, 4 * H), F32)] * (_SM_ROWS - len(rows))
    smalls = jnp.concatenate(rows, axis=0)                                   # (24, 4H) f32
    return wp_cat, w_h, w_m2, smalls


# ----------------------------------------------------------------------------
# Pure-JAX reference (standard ops, same bf16 weight matmuls) for a sanity check
# ----------------------------------------------------------------------------
def reference_forward(latent_action_tokens, visual_embed, proprio, p):
    def linear(x, w, b=None):
        y = jnp.dot(x.astype(BF16), w.astype(BF16), preferred_element_type=F32)
        return y if b is None else y + b

    def map_block(x, blk, init):
        bsz = x.shape[0]
        lat = jnp.broadcast_to(blk["probe"], (bsz, HIDDEN))
        if init is not None:
            lat = lat + init
        xp = linear(x, blk["wp"], blk["bp"])
        q = linear(lat, blk["wq"])
        k = linear(xp, blk["wk"])
        v = linear(xp, blk["wv"])
        scale = HEAD_DIM ** -0.5
        outs = []
        for h_i in range(N_HEADS):
            sl = slice(h_i * HEAD_DIM, (h_i + 1) * HEAD_DIM)
            s = jnp.einsum("bd,bnd->bn", q[:, sl], k[..., sl]) * scale
            a = jax.nn.softmax(s, axis=-1)
            outs.append(jnp.einsum("bn,bnd->bd", a, v[..., sl]))
        vals = jnp.concatenate(outs, axis=-1)
        lat = _layer_norm(lat + linear(vals, blk["wo"], blk["bo"]), blk["g1"], blk["b1"])
        mlp = linear(_gelu(linear(lat, blk["wm1"], blk["bm1"])), blk["wm2"], blk["bm2"])
        return _layer_norm(lat + mlp, blk["g2"], blk["b2"])

    lat_tok = latent_action_tokens[:, -N_LATENT_USED:]
    prop = linear(_gelu(linear(proprio, p["pw1"], p["pb1"])), p["pw2"], p["pb2"])
    vpool = map_block(visual_embed, p["vis"], None)
    apool = map_block(lat_tok, p["attn"], vpool)
    return linear(apool, p["fwa"]) + linear(prop, p["fwp"]) + p["fb"]


# ----------------------------------------------------------------------------
if __name__ == "__main__":
    key = jax.random.PRNGKey(0)
    kp, k1, k2, k3 = jax.random.split(key, 4)
    params = init_params(kp)
    packed = pack_params(params)

    B, T_IN, NV = 2, 8, 16
    latent_action_tokens = jax.random.normal(k1, (B, T_IN, VIS_DIM), F32)
    visual_embed = jax.random.normal(k2, (B, NV, VIS_DIM), F32)
    proprio = jax.random.normal(k3, (B, STATE_DIM), F32)

    out = jax.block_until_ready(
        action_decoder_head(latent_action_tokens, visual_embed, proprio, packed))

    assert out.shape == (B, OUT_DIM), out.shape
    assert bool(jnp.all(jnp.isfinite(out)))

    ref = jax.block_until_ready(
        reference_forward(latent_action_tokens, visual_embed, proprio, params))
    max_err = float(jnp.max(jnp.abs(out - ref)))
    assert max_err < 5e-2, f"kernel/reference mismatch: max abs err {max_err}"

    print("KERNEL_OK")
</pallas_src>

<mosaic_0001>
module attributes {stable_mosaic.version = 11 : i64} {
  func.func @kernel(%arg0: i32, %arg1: memref<1x4x4096xf32, #tpu.memory_space<vmem>>, %arg2: memref<1x16x4096xf32, #tpu.memory_space<vmem>>, %arg3: memref<1x1x128xf32, #tpu.memory_space<vmem>>, %arg4: memref<4x1xf32, #tpu.memory_space<vmem>>, %arg5: memref<1x4xf32, #tpu.memory_space<vmem>>, %arg6: memref<16x1xf32, #tpu.memory_space<vmem>>, %arg7: memref<1x16xf32, #tpu.memory_space<vmem>>, %arg8: memref<4096x256xbf16, #tpu.memory_space<vmem>>, %arg9: memref<128x2560xbf16, #tpu.memory_space<vmem>>, %arg10: memref<512x256xbf16, #tpu.memory_space<vmem>>, %arg11: memref<24x512xf32, #tpu.memory_space<vmem>>, %arg12: memref<1x1x128xf32, #tpu.memory_space<vmem>>) attributes {dimension_semantics = [#tpu.dimension_semantics<parallel>], iteration_bounds = array<i64: 2>, scalar_prefetch = 0 : i64, scratch_operands = 0 : i64, tpu.core_type = #tpu.core_type<tc>, window_params = [{transform_indices = @transform_0, window_bounds = array<i64: 1, 4, 4096>}, {transform_indices = @transform_1, window_bounds = array<i64: 1, 16, 4096>}, {transform_indices = @transform_2, window_bounds = array<i64: 1, 1, 128>}, {pipeline_mode = #tpu.pipeline_mode<synchronous>, transform_indices = @transform_3, window_bounds = array<i64: 4, 1>}, {pipeline_mode = #tpu.pipeline_mode<synchronous>, transform_indices = @transform_4, window_bounds = array<i64: 1, 4>}, {pipeline_mode = #tpu.pipeline_mode<synchronous>, transform_indices = @transform_5, window_bounds = array<i64: 16, 1>}, {pipeline_mode = #tpu.pipeline_mode<synchronous>, transform_indices = @transform_6, window_bounds = array<i64: 1, 16>}, {pipeline_mode = #tpu.pipeline_mode<synchronous>, transform_indices = @transform_7, window_bounds = array<i64: 4096, 256>}, {pipeline_mode = #tpu.pipeline_mode<synchronous>, transform_indices = @transform_8, window_bounds = array<i64: 128, 2560>}, {pipeline_mode = #tpu.pipeline_mode<synchronous>, transform_indices = @transform_9, window_bounds = array<i64: 512, 256>}, {pipeline_mode = #tpu.pipeline_mode<synchronous>, transform_indices = @transform_10, window_bounds = array<i64: 24, 512>}, {transform_indices = @transform_11, window_bounds = array<i64: 1, 1, 128>}]} {
    %c0 = arith.constant 0 : index
    %c0_0 = arith.constant 0 : index
    %0 = vector.load %arg11[%c0, %c0_0] : memref<24x512xf32, #tpu.memory_space<vmem>>, vector<24x512xf32>
    %1 = tpu.iota {dimensions = array<i32: 0>} : vector<128x2xi32>
    %2 = tpu.iota {dimensions = array<i32: 1>} : vector<128x2xi32>
    %c64_i32 = arith.constant 64 : i32
    %3 = vector.broadcast %c64_i32 : i32 to vector<128x2xi32>
    %4 = arith.muli %2, %3 : vector<128x2xi32>
    %5 = arith.cmpi sge, %1, %4 : vector<128x2xi32>
    %c64_i32_1 = arith.constant 64 : i32
    %6 = vector.broadcast %c64_i32_1 : i32 to vector<128x2xi32>
    %7 = arith.addi %4, %6 : vector<128x2xi32>
    %8 = arith.cmpi slt, %1, %7 : vector<128x2xi32>
    %9 = arith.andi %5, %8 : vector<128x2xi1>
    %cst = arith.constant 1.000000e+00 : f32
    %cst_2 = arith.constant 0.000000e+00 : f32
    %10 = vector.broadcast %cst : f32 to vector<128x2xf32>
    %11 = vector.broadcast %cst_2 : f32 to vector<128x2xf32>
    %12 = arith.select %9, %10, %11 : vector<128x2xi1>, vector<128x2xf32>
    %13 = tpu.iota {dimensions = array<i32: 0>} : vector<2x128xi32>
    %c64_i32_3 = arith.constant 64 : i32
    %14 = vector.broadcast %c64_i32_3 : i32 to vector<2x128xi32>
    %15 = arith.muli %13, %14 : vector<2x128xi32>
    %16 = tpu.iota {dimensions = array<i32: 1>} : vector<2x128xi32>
    %17 = arith.cmpi sge, %16, %15 : vector<2x128xi32>
    %c64_i32_4 = arith.constant 64 : i32
    %18 = vector.broadcast %c64_i32_4 : i32 to vector<2x128xi32>
    %19 = arith.addi %15, %18 : vector<2x128xi32>
    %20 = arith.cmpi slt, %16, %19 : vector<2x128xi32>
    %21 = arith.andi %17, %20 : vector<2x128xi1>
    %cst_5 = arith.constant 1.000000e+00 : f32
    %cst_6 = arith.constant 0.000000e+00 : f32
    %22 = vector.broadcast %cst_5 : f32 to vector<2x128xf32>
    %23 = vector.broadcast %cst_6 : f32 to vector<2x128xf32>
    %24 = arith.select %21, %22, %23 : vector<2x128xi1>, vector<2x128xf32>
    %c0_7 = arith.constant 0 : index
    %c0_8 = arith.constant 0 : index
    %c0_9 = arith.constant 0 : index
    %25 = vector.load %arg1[%c0_7, %c0_8, %c0_9] : memref<1x4x4096xf32, #tpu.memory_space<vmem>>, vector<1x4x4096xf32>
    %26 = vector.shape_cast %25 : vector<1x4x4096xf32> to vector<4x4096xf32>
    %c0_10 = arith.constant 0 : index
    %c0_11 = arith.constant 0 : index
    %27 = vector.load %arg8[%c0_10, %c0_11] : memref<4096x256xbf16, #tpu.memory_space<vmem>>, vector<4096x128xbf16>
    %28 = arith.truncf %26 : vector<4x4096xf32> to vector<4x4096xbf16>
    %cst_12 = arith.constant dense<0.000000e+00> : vector<4x128xf32>
    %29 = tpu.matmul %28, %27, %cst_12 {dimension_numbers = #tpu.dot_dimension_numbers<[1], [0], [0], [1], [0, 0, 1, 1], [], []>} : vector<4x4096xbf16>, vector<4096x128xbf16>, vector<4x128xf32> -> vector<4x128xf32>
    %30 = vector.extract_strided_slice %0 {offsets = [1, 0], sizes = [1, 128], strides = [1, 1]} : vector<24x512xf32> to vector<1x128xf32>
    %31 = vector.broadcast %30 : vector<1x128xf32> to vector<4x128xf32>
    %32 = arith.addf %29, %31 : vector<4x128xf32>
    %c0_13 = arith.constant 0 : index
    %c0_14 = arith.constant 0 : index
    %c0_15 = arith.constant 0 : index
    %33 = vector.load %arg2[%c0_13, %c0_14, %c0_15] : memref<1x16x4096xf32, #tpu.memory_space<vmem>>, vector<1x16x4096xf32>
    %34 = vector.shape_cast %33 : vector<1x16x4096xf32> to vector<16x4096xf32>
    %c0_16 = arith.constant 0 : index
    %c128 = arith.constant 128 : index
    %35 = vector.load %arg8[%c0_16, %c128] : memref<4096x256xbf16, #tpu.memory_space<vmem>>, vector<4096x128xbf16>
    %36 = arith.truncf %34 : vector<16x4096xf32> to vector<16x4096xbf16>
    %cst_17 = arith.constant dense<0.000000e+00> : vector<16x128xf32>
    %37 = tpu.matmul %36, %35, %cst_17 {dimension_numbers = #tpu.dot_dimension_numbers<[1], [0], [0], [1], [0, 0, 1, 1], [], []>} : vector<16x4096xbf16>, vector<4096x128xbf16>, vector<16x128xf32> -> vector<16x128xf32>
    %38 = vector.extract_strided_slice %0 {offsets = [10, 0], sizes = [1, 128], strides = [1, 1]} : vector<24x512xf32> to vector<1x128xf32>
    %39 = vector.broadcast %38 : vector<1x128xf32> to vector<16x128xf32>
    %40 = arith.addf %37, %39 : vector<16x128xf32>
    %c0_18 = arith.constant 0 : index
    %c0_19 = arith.constant 0 : index
    %c0_20 = arith.constant 0 : index
    %41 = vector.load %arg3[%c0_18, %c0_19, %c0_20] : memref<1x1x128xf32, #tpu.memory_space<vmem>>, vector<1x1x128xf32>
    %42 = vector.shape_cast %41 : vector<1x1x128xf32> to vector<1x128xf32>
    %c0_21 = arith.constant 0 : index
    %c2176 = arith.constant 2176 : index
    %43 = vector.load %arg9[%c0_21, %c2176] : memref<128x2560xbf16, #tpu.memory_space<vmem>>, vector<128x128xbf16>
    %44 = arith.truncf %42 : vector<1x128xf32> to vector<1x128xbf16>
    %cst_22 = arith.constant dense<0.000000e+00> : vector<1x128xf32>
    %45 = tpu.matmul %44, %43, %cst_22 {dimension_numbers = #tpu.dot_dimension_numbers<[1], [0], [0], [1], [0, 0, 1, 1], [], []>} : vector<1x128xbf16>, vector<128x128xbf16>, vector<1x128xf32> -> vector<1x128xf32>
    %46 = vector.extract_strided_slice %0 {offsets = [18, 0], sizes = [1, 128], strides = [1, 1]} : vector<24x512xf32> to vector<1x128xf32>
    %47 = arith.addf %45, %46 : vector<1x128xf32>
    %cst_23 = arith.constant 5.000000e-01 : f32
    %48 = vector.broadcast %cst_23 : f32 to vector<1x128xf32>
    %49 = arith.mulf %48, %47 : vector<1x128xf32>
    %cst_24 = arith.constant 4.471500e-02 : f32
    %50 = vector.broadcast %cst_24 : f32 to vector<1x128xf32>
    %51 = arith.mulf %50, %47 : vector<1x128xf32>
    %52 = arith.mulf %51, %47 : vector<1x128xf32>
    %53 = arith.mulf %52, %47 : vector<1x128xf32>
    %54 = arith.addf %47, %53 : vector<1x128xf32>
    %cst_25 = arith.constant 0.797884583 : f32
    %55 = vector.broadcast %cst_25 : f32 to vector<1x128xf32>
    %56 = arith.mulf %55, %54 : vector<1x128xf32>
    %57 = math.tanh %56 : vector<1x128xf32>
    %cst_26 = arith.constant 1.000000e+00 : f32
    %58 = vector.broadcast %cst_26 : f32 to vector<1x128xf32>
    %59 = arith.addf %58, %57 : vector<1x128xf32>
    %60 = arith.mulf %49, %59 : vector<1x128xf32>
    %c0_27 = arith.constant 0 : index
    %c2048 = arith.constant 2048 : index
    %61 = vector.load %arg9[%c0_27, %c2048] : memref<128x2560xbf16, #tpu.memory_space<vmem>>, vector<128x128xbf16>
    %62 = arith.truncf %60 : vector<1x128xf32> to vector<1x128xbf16>
    %cst_28 = arith.constant dense<0.000000e+00> : vector<1x128xf32>
    %63 = tpu.matmul %62, %61, %cst_28 {dimension_numbers = #tpu.dot_dimension_numbers<[1], [0], [0], [1], [0, 0, 1, 1], [], []>} : vector<1x128xbf16>, vector<128x128xbf16>, vector<1x128xf32> -> vector<1x128xf32>
    %64 = vector.extract_strided_slice %0 {offsets = [19, 0], sizes = [1, 128], strides = [1, 1]} : vector<24x512xf32> to vector<1x128xf32>
    %65 = arith.addf %63, %64 : vector<1x128xf32>
    %66 = vector.extract_strided_slice %0 {offsets = [9, 0], sizes = [1, 128], strides = [1, 1]} : vector<24x512xf32> to vector<1x128xf32>
    %c0_29 = arith.constant 0 : index
    %c0_30 = arith.constant 0 : index
    %67 = vector.load %arg6[%c0_29, %c0_30] : memref<16x1xf32, #tpu.memory_space<vmem>>, vector<16x1xf32>
    %c0_31 = arith.constant 0 : index
    %c0_32 = arith.constant 0 : index
    %68 = vector.load %arg7[%c0_31, %c0_32] : memref<1x16xf32, #tpu.memory_space<vmem>>, vector<1x16xf32>
    %c0_33 = arith.constant 0 : index
    %c1024 = arith.constant 1024 : index
    %69 = vector.load %arg9[%c0_33, %c1024] : memref<128x2560xbf16, #tpu.memory_space<vmem>>, vector<128x128xbf16>
    %c0_34 = arith.constant 0 : index
    %c1152 = arith.constant 1152 : index
    %70 = vector.load %arg9[%c0_34, %c1152] : memref<128x2560xbf16, #tpu.memory_space<vmem>>, vector<128x256xbf16>
    %c0_35 = arith.constant 0 : index
    %c1408 = arith.constant 1408 : index
    %71 = vector.load %arg9[%c0_35, %c1408] : memref<128x2560xbf16, #tpu.memory_space<vmem>>, vector<128x128xbf16>
    %c0_36 = arith.constant 0 : index
    %c1536 = arith.constant 1536 : index
    %72 = vector.load %arg9[%c0_36, %c1536] : memref<128x2560xbf16, #tpu.memory_space<vmem>>, vector<128x512xbf16>
    %73 = arith.truncf %66 : vector<1x128xf32> to vector<1x128xbf16>
    %cst_37 = arith.constant dense<0.000000e+00> : vector<1x128xf32>
    %74 = tpu.matmul %73, %69, %cst_37 {dimension_numbers = #tpu.dot_dimension_numbers<[1], [0], [0], [1], [0, 0, 1, 1], [], []>} : vector<1x128xbf16>, vector<128x128xbf16>, vector<1x128xf32> -> vector<1x128xf32>
    %75 = arith.truncf %40 : vector<16x128xf32> to vector<16x128xbf16>
    %cst_38 = arith.constant dense<0.000000e+00> : vector<16x256xf32>
    %76 = tpu.matmul %75, %70, %cst_38 {dimension_numbers = #tpu.dot_dimension_numbers<[1], [0], [0], [1], [0, 0, 1, 1], [], []>} : vector<16x128xbf16>, vector<128x256xbf16>, vector<16x256xf32> -> vector<16x256xf32>
    %77 = vector.extract_strided_slice %76 {offsets = [0, 0], sizes = [16, 128], strides = [1, 1]} : vector<16x256xf32> to vector<16x128xf32>
    %78 = vector.extract_strided_slice %76 {offsets = [0, 128], sizes = [16, 128], strides = [1, 1]} : vector<16x256xf32> to vector<16x128xf32>
    %cst_39 = arith.constant dense<0.000000e+00> : vector<16x128xf32>
    %79 = tpu.matmul %67, %74, %cst_39 {dimension_numbers = #tpu.dot_dimension_numbers<[1], [0], [0], [1], [0, 0, 1, 1], [], []>} : vector<16x1xf32>, vector<1x128xf32>, vector<16x128xf32> -> vector<16x128xf32>
    %80 = arith.mulf %79, %77 : vector<16x128xf32>
    %cst_40 = arith.constant dense<0.000000e+00> : vector<16x2xf32>
    %81 = tpu.matmul %80, %12, %cst_40 {dimension_numbers = #tpu.dot_dimension_numbers<[1], [0], [0], [1], [0, 0, 1, 1], [], []>} : vector<16x128xf32>, vector<128x2xf32>, vector<16x2xf32> -> vector<16x2xf32>
    %cst_41 = arith.constant 1.250000e-01 : f32
    %82 = vector.broadcast %cst_41 : f32 to vector<16x2xf32>
    %83 = arith.mulf %81, %82 : vector<16x2xf32>
    %84 = vector.shape_cast %83 : vector<16x2xf32> to vector<1x16x2xf32>
    %cst_42 = arith.constant dense<0xFF800000> : vector<1xf32>
    %85 = vector.multi_reduction <maximumf>, %84, %cst_42 [1, 2] : vector<1x16x2xf32> to vector<1xf32>
    %86 = vector.shape_cast %85 : vector<1xf32> to vector<1x1x1xf32>
    %87 = vector.extract %86[0, 0, 0] : f32 from vector<1x1x1xf32>
    %88 = vector.broadcast %87 : f32 to vector<16x2xf32>
    %89 = arith.subf %83, %88 : vector<16x2xf32>
    %90 = math.exp %89 : vector<16x2xf32>
    %cst_43 = arith.constant dense<0.000000e+00> : vector<1x2xf32>
    %91 = tpu.matmul %68, %90, %cst_43 {dimension_numbers = #tpu.dot_dimension_numbers<[1], [0], [0], [1], [0, 0, 1, 1], [], []>} : vector<1x16xf32>, vector<16x2xf32>, vector<1x2xf32> -> vector<1x2xf32>
    %cst_44 = arith.constant dense<0.000000e+00> : vector<16x2xf32>
    %92 = tpu.matmul %67, %91, %cst_44 {dimension_numbers = #tpu.dot_dimension_numbers<[1], [0], [0], [1], [0, 0, 1, 1], [], []>} : vector<16x1xf32>, vector<1x2xf32>, vector<16x2xf32> -> vector<16x2xf32>
    %93 = arith.divf %90, %92 : vector<16x2xf32>
    %cst_45 = arith.constant dense<0.000000e+00> : vector<16x128xf32>
    %94 = tpu.matmul %93, %24, %cst_45 {dimension_numbers = #tpu.dot_dimension_numbers<[1], [0], [0], [1], [0, 0, 1, 1], [], []>} : vector<16x2xf32>, vector<2x128xf32>, vector<16x128xf32> -> vector<16x128xf32>
    %95 = arith.mulf %94, %78 : vector<16x128xf32>
    %cst_46 = arith.constant dense<0.000000e+00> : vector<1x128xf32>
    %96 = tpu.matmul %68, %95, %cst_46 {dimension_numbers = #tpu.dot_dimension_numbers<[1], [0], [0], [1], [0, 0, 1, 1], [], []>} : vector<1x16xf32>, vector<16x128xf32>, vector<1x128xf32> -> vector<1x128xf32>
    %97 = arith.truncf %96 : vector<1x128xf32> to vector<1x128xbf16>
    %cst_47 = arith.constant dense<0.000000e+00> : vector<1x128xf32>
    %98 = tpu.matmul %97, %71, %cst_47 {dimension_numbers = #tpu.dot_dimension_numbers<[1], [0], [0], [1], [0, 0, 1, 1], [], []>} : vector<1x128xbf16>, vector<128x128xbf16>, vector<1x128xf32> -> vector<1x128xf32>
    %99 = vector.extract_strided_slice %0 {offsets = [11, 0], sizes = [1, 128], strides = [1, 1]} : vector<24x512xf32> to vector<1x128xf32>
    %100 = arith.addf %98, %99 : vector<1x128xf32>
    %101 = arith.addf %66, %100 : vector<1x128xf32>
    %102 = vector.extract_strided_slice %0 {offsets = [12, 0], sizes = [1, 128], strides = [1, 1]} : vector<24x512xf32> to vector<1x128xf32>
    %103 = vector.extract_strided_slice %0 {offsets = [13, 0], sizes = [1, 128], strides = [1, 1]} : vector<24x512xf32> to vector<1x128xf32>
    %cst_48 = arith.constant dense<0.000000e+00> : vector<1xf32>
    %104 = vector.multi_reduction <add>, %101, %cst_48 [1] : vector<1x128xf32> to vector<1xf32>
    %105 = vector.shape_cast %104 : vector<1xf32> to vector<1x1xf32>
    %cst_49 = arith.constant 1.280000e+02 : f32
    %106 = vector.broadcast %cst_49 : f32 to vector<1x1xf32>
    %107 = arith.divf %105, %106 : vector<1x1xf32>
    %108 = vector.broadcast %107 : vector<1x1xf32> to vector<1x128xf32>
    %109 = arith.subf %101, %108 : vector<1x128xf32>
    %110 = arith.mulf %109, %109 : vector<1x128xf32>
    %cst_50 = arith.constant dense<0.000000e+00> : vector<1xf32>
    %111 = vector.multi_reduction <add>, %110, %cst_50 [1] : vector<1x128xf32> to vector<1xf32>
    %112 = vector.shape_cast %111 : vector<1xf32> to vector<1x1xf32>
    %cst_51 = arith.constant 1.280000e+02 : f32
    %113 = vector.broadcast %cst_51 : f32 to vector<1x1xf32>
    %114 = arith.divf %112, %113 : vector<1x1xf32>
    %cst_52 = arith.constant 9.99999997E-7 : f32
    %115 = vector.broadcast %cst_52 : f32 to vector<1x1xf32>
    %116 = arith.addf %114, %115 : vector<1x1xf32>
    %117 = math.rsqrt %116 : vector<1x1xf32>
    %118 = vector.broadcast %117 : vector<1x1xf32> to vector<1x128xf32>
    %119 = arith.mulf %109, %118 : vector<1x128xf32>
    %120 = arith.mulf %119, %102 : vector<1x128xf32>
    %121 = arith.addf %120, %103 : vector<1x128xf32>
    %122 = arith.truncf %121 : vector<1x128xf32> to vector<1x128xbf16>
    %cst_53 = arith.constant dense<0.000000e+00> : vector<1x512xf32>
    %123 = tpu.matmul %122, %72, %cst_53 {dimension_numbers = #tpu.dot_dimension_numbers<[1], [0], [0], [1], [0, 0, 1, 1], [], []>} : vector<1x128xbf16>, vector<128x512xbf16>, vector<1x512xf32> -> vector<1x512xf32>
    %124 = vector.extract_strided_slice %0 {offsets = [14, 0], sizes = [1, 512], strides = [1, 1]} : vector<24x512xf32> to vector<1x512xf32>
    %125 = arith.addf %123, %124 : vector<1x512xf32>
    %cst_54 = arith.constant 5.000000e-01 : f32
    %126 = vector.broadcast %cst_54 : f32 to vector<1x512xf32>
    %127 = arith.mulf %126, %125 : vector<1x512xf32>
    %cst_55 = arith.constant 4.471500e-02 : f32
    %128 = vector.broadcast %cst_55 : f32 to vector<1x512xf32>
    %129 = arith.mulf %128, %125 : vector<1x512xf32>
    %130 = arith.mulf %129, %125 : vector<1x512xf32>
    %131 = arith.mulf %130, %125 : vector<1x512xf32>
    %132 = arith.addf %125, %131 : vector<1x512xf32>
    %cst_56 = arith.constant 0.797884583 : f32
    %133 = vector.broadcast %cst_56 : f32 to vector<1x512xf32>
    %134 = arith.mulf %133, %132 : vector<1x512xf32>
    %135 = math.tanh %134 : vector<1x512xf32>
    %cst_57 = arith.constant 1.000000e+00 : f32
    %136 = vector.broadcast %cst_57 : f32 to vector<1x512xf32>
    %137 = arith.addf %136, %135 : vector<1x512xf32>
    %138 = arith.mulf %127, %137 : vector<1x512xf32>
    %c0_58 = arith.constant 0 : index
    %c128_59 = arith.constant 128 : index
    %139 = vector.load %arg10[%c0_58, %c128_59] : memref<512x256xbf16, #tpu.memory_space<vmem>>, vector<512x128xbf16>
    %140 = arith.truncf %138 : vector<1x512xf32> to vector<1x512xbf16>
    %cst_60 = arith.constant dense<0.000000e+00> : vector<1x128xf32>
    %141 = tpu.matmul %140, %139, %cst_60 {dimension_numbers = #tpu.dot_dimension_numbers<[1], [0], [0], [1], [0, 0, 1, 1], [], []>} : vector<1x512xbf16>, vector<512x128xbf16>, vector<1x128xf32> -> vector<1x128xf32>
    %142 = vector.extract_strided_slice %0 {offsets = [15, 0], sizes = [1, 128], strides = [1, 1]} : vector<24x512xf32> to vector<1x128xf32>
    %143 = arith.addf %141, %142 : vector<1x128xf32>
    %144 = arith.addf %121, %143 : vector<1x128xf32>
    %145 = vector.extract_strided_slice %0 {offsets = [16, 0], sizes = [1, 128], strides = [1, 1]} : vector<24x512xf32> to vector<1x128xf32>
    %146 = vector.extract_strided_slice %0 {offsets = [17, 0], sizes = [1, 128], strides = [1, 1]} : vector<24x512xf32> to vector<1x128xf32>
    %cst_61 = arith.constant dense<0.000000e+00> : vector<1xf32>
    %147 = vector.multi_reduction <add>, %144, %cst_61 [1] : vector<1x128xf32> to vector<1xf32>
    %148 = vector.shape_cast %147 : vector<1xf32> to vector<1x1xf32>
    %cst_62 = arith.constant 1.280000e+02 : f32
    %149 = vector.broadcast %cst_62 : f32 to vector<1x1xf32>
    %150 = arith.divf %148, %149 : vector<1x1xf32>
    %151 = vector.broadcast %150 : vector<1x1xf32> to vector<1x128xf32>
    %152 = arith.subf %144, %151 : vector<1x128xf32>
    %153 = arith.mulf %152, %152 : vector<1x128xf32>
    %cst_63 = arith.constant dense<0.000000e+00> : vector<1xf32>
    %154 = vector.multi_reduction <add>, %153, %cst_63 [1] : vector<1x128xf32> to vector<1xf32>
    %155 = vector.shape_cast %154 : vector<1xf32> to vector<1x1xf32>
    %cst_64 = arith.constant 1.280000e+02 : f32
    %156 = vector.broadcast %cst_64 : f32 to vector<1x1xf32>
    %157 = arith.divf %155, %156 : vector<1x1xf32>
    %cst_65 = arith.constant 9.99999997E-7 : f32
    %158 = vector.broadcast %cst_65 : f32 to vector<1x1xf32>
    %159 = arith.addf %157, %158 : vector<1x1xf32>
    %160 = math.rsqrt %159 : vector<1x1xf32>
    %161 = vector.broadcast %160 : vector<1x1xf32> to vector<1x128xf32>
    %162 = arith.mulf %152, %161 : vector<1x128xf32>
    %163 = arith.mulf %162, %145 : vector<1x128xf32>
    %164 = arith.addf %163, %146 : vector<1x128xf32>
    %165 = vector.extract_strided_slice %0 {offsets = [0, 0], sizes = [1, 128], strides = [1, 1]} : vector<24x512xf32> to vector<1x128xf32>
    %166 = arith.addf %165, %164 : vector<1x128xf32>
    %c0_66 = arith.constant 0 : index
    %c0_67 = arith.constant 0 : index
    %167 = vector.load %arg4[%c0_66, %c0_67] : memref<4x1xf32, #tpu.memory_space<vmem>>, vector<4x1xf32>
    %c0_68 = arith.constant 0 : index
    %c0_69 = arith.constant 0 : index
    %168 = vector.load %arg5[%c0_68, %c0_69] : memref<1x4xf32, #tpu.memory_space<vmem>>, vector<1x4xf32>
    %c0_70 = arith.constant 0 : index
    %c0_71 = arith.constant 0 : index
    %169 = vector.load %arg9[%c0_70, %c0_71] : memref<128x2560xbf16, #tpu.memory_space<vmem>>, vector<128x128xbf16>
    %c0_72 = arith.constant 0 : index
    %c128_73 = arith.constant 128 : index
    %170 = vector.load %arg9[%c0_72, %c128_73] : memref<128x2560xbf16, #tpu.memory_space<vmem>>, vector<128x256xbf16>
    %c0_74 = arith.constant 0 : index
    %c384 = arith.constant 384 : index
    %171 = vector.load %arg9[%c0_74, %c384] : memref<128x2560xbf16, #tpu.memory_space<vmem>>, vector<128x128xbf16>
    %c0_75 = arith.constant 0 : index
    %c512 = arith.constant 512 : index
    %172 = vector.load %arg9[%c0_75, %c512] : memref<128x2560xbf16, #tpu.memory_space<vmem>>, vector<128x512xbf16>
    %173 = arith.truncf %166 : vector<1x128xf32> to vector<1x128xbf16>
    %cst_76 = arith.constant dense<0.000000e+00> : vector<1x128xf32>
    %174 = tpu.matmul %173, %169, %cst_76 {dimension_numbers = #tpu.dot_dimension_numbers<[1], [0], [0], [1], [0, 0, 1, 1], [], []>} : vector<1x128xbf16>, vector<128x128xbf16>, vector<1x128xf32> -> vector<1x128xf32>
    %175 = arith.truncf %32 : vector<4x128xf32> to vector<4x128xbf16>
    %cst_77 = arith.constant dense<0.000000e+00> : vector<4x256xf32>
    %176 = tpu.matmul %175, %170, %cst_77 {dimension_numbers = #tpu.dot_dimension_numbers<[1], [0], [0], [1], [0, 0, 1, 1], [], []>} : vector<4x128xbf16>, vector<128x256xbf16>, vector<4x256xf32> -> vector<4x256xf32>
    %177 = vector.extract_strided_slice %176 {offsets = [0, 0], sizes = [4, 128], strides = [1, 1]} : vector<4x256xf32> to vector<4x128xf32>
    %178 = vector.extract_strided_slice %176 {offsets = [0, 128], sizes = [4, 128], strides = [1, 1]} : vector<4x256xf32> to vector<4x128xf32>
    %cst_78 = arith.constant dense<0.000000e+00> : vector<4x128xf32>
    %179 = tpu.matmul %167, %174, %cst_78 {dimension_numbers = #tpu.dot_dimension_numbers<[1], [0], [0], [1], [0, 0, 1, 1], [], []>} : vector<4x1xf32>, vector<1x128xf32>, vector<4x128xf32> -> vector<4x128xf32>
    %180 = arith.mulf %179, %177 : vector<4x128xf32>
    %cst_79 = arith.constant dense<0.000000e+00> : vector<4x2xf32>
    %181 = tpu.matmul %180, %12, %cst_79 {dimension_numbers = #tpu.dot_dimension_numbers<[1], [0], [0], [1], [0, 0, 1, 1], [], []>} : vector<4x128xf32>, vector<128x2xf32>, vector<4x2xf32> -> vector<4x2xf32>
    %cst_80 = arith.constant 1.250000e-01 : f32
    %182 = vector.broadcast %cst_80 : f32 to vector<4x2xf32>
    %183 = arith.mulf %181, %182 : vector<4x2xf32>
    %184 = vector.shape_cast %183 : vector<4x2xf32> to vector<1x4x2xf32>
    %cst_81 = arith.constant dense<0xFF800000> : vector<1xf32>
    %185 = vector.multi_reduction <maximumf>, %184, %cst_81 [1, 2] : vector<1x4x2xf32> to vector<1xf32>
    %186 = vector.shape_cast %185 : vector<1xf32> to vector<1x1x1xf32>
    %187 = vector.extract %186[0, 0, 0] : f32 from vector<1x1x1xf32>
    %188 = vector.broadcast %187 : f32 to vector<4x2xf32>
    %189 = arith.subf %183, %188 : vector<4x2xf32>
    %190 = math.exp %189 : vector<4x2xf32>
    %cst_82 = arith.constant dense<0.000000e+00> : vector<1x2xf32>
    %191 = tpu.matmul %168, %190, %cst_82 {dimension_numbers = #tpu.dot_dimension_numbers<[1], [0], [0], [1], [0, 0, 1, 1], [], []>} : vector<1x4xf32>, vector<4x2xf32>, vector<1x2xf32> -> vector<1x2xf32>
    %cst_83 = arith.constant dense<0.000000e+00> : vector<4x2xf32>
    %192 = tpu.matmul %167, %191, %cst_83 {dimension_numbers = #tpu.dot_dimension_numbers<[1], [0], [0], [1], [0, 0, 1, 1], [], []>} : vector<4x1xf32>, vector<1x2xf32>, vector<4x2xf32> -> vector<4x2xf32>
    %193 = arith.divf %190, %192 : vector<4x2xf32>
    %cst_84 = arith.constant dense<0.000000e+00> : vector<4x128xf32>
    %194 = tpu.matmul %193, %24, %cst_84 {dimension_numbers = #tpu.dot_dimension_numbers<[1], [0], [0], [1], [0, 0, 1, 1], [], []>} : vector<4x2xf32>, vector<2x128xf32>, vector<4x128xf32> -> vector<4x128xf32>
    %195 = arith.mulf %194, %178 : vector<4x128xf32>
    %cst_85 = arith.constant dense<0.000000e+00> : vector<1x128xf32>
    %196 = tpu.matmul %168, %195, %cst_85 {dimension_numbers = #tpu.dot_dimension_numbers<[1], [0], [0], [1], [0, 0, 1, 1], [], []>} : vector<1x4xf32>, vector<4x128xf32>, vector<1x128xf32> -> vector<1x128xf32>
    %197 = arith.truncf %196 : vector<1x128xf32> to vector<1x128xbf16>
    %cst_86 = arith.constant dense<0.000000e+00> : vector<1x128xf32>
    %198 = tpu.matmul %197, %171, %cst_86 {dimension_numbers = #tpu.dot_dimension_numbers<[1], [0], [0], [1], [0, 0, 1, 1], [], []>} : vector<1x128xbf16>, vector<128x128xbf16>, vector<1x128xf32> -> vector<1x128xf32>
    %199 = vector.extract_strided_slice %0 {offsets = [2, 0], sizes = [1, 128], strides = [1, 1]} : vector<24x512xf32> to vector<1x128xf32>
    %200 = arith.addf %198, %199 : vector<1x128xf32>
    %201 = arith.addf %166, %200 : vector<1x128xf32>
    %202 = vector.extract_strided_slice %0 {offsets = [3, 0], sizes = [1, 128], strides = [1, 1]} : vector<24x512xf32> to vector<1x128xf32>
    %203 = vector.extract_strided_slice %0 {offsets = [4, 0], sizes = [1, 128], strides = [1, 1]} : vector<24x512xf32> to vector<1x128xf32>
    %cst_87 = arith.constant dense<0.000000e+00> : vector<1xf32>
    %204 = vector.multi_reduction <add>, %201, %cst_87 [1] : vector<1x128xf32> to vector<1xf32>
    %205 = vector.shape_cast %204 : vector<1xf32> to vector<1x1xf32>
    %cst_88 = arith.constant 1.280000e+02 : f32
    %206 = vector.broadcast %cst_88 : f32 to vector<1x1xf32>
    %207 = arith.divf %205, %206 : vector<1x1xf32>
    %208 = vector.broadcast %207 : vector<1x1xf32> to vector<1x128xf32>
    %209 = arith.subf %201, %208 : vector<1x128xf32>
    %210 = arith.mulf %209, %209 : vector<1x128xf32>
    %cst_89 = arith.constant dense<0.000000e+00> : vector<1xf32>
    %211 = vector.multi_reduction <add>, %210, %cst_89 [1] : vector<1x128xf32> to vector<1xf32>
    %212 = vector.shape_cast %211 : vector<1xf32> to vector<1x1xf32>
    %cst_90 = arith.constant 1.280000e+02 : f32
    %213 = vector.broadcast %cst_90 : f32 to vector<1x1xf32>
    %214 = arith.divf %212, %213 : vector<1x1xf32>
    %cst_91 = arith.constant 9.99999997E-7 : f32
    %215 = vector.broadcast %cst_91 : f32 to vector<1x1xf32>
    %216 = arith.addf %214, %215 : vector<1x1xf32>
    %217 = math.rsqrt %216 : vector<1x1xf32>
    %218 = vector.broadcast %217 : vector<1x1xf32> to vector<1x128xf32>
    %219 = arith.mulf %209, %218 : vector<1x128xf32>
    %220 = arith.mulf %219, %202 : vector<1x128xf32>
    %221 = arith.addf %220, %203 : vector<1x128xf32>
    %222 = arith.truncf %221 : vector<1x128xf32> to vector<1x128xbf16>
    %cst_92 = arith.constant dense<0.000000e+00> : vector<1x512xf32>
    %223 = tpu.matmul %222, %172, %cst_92 {dimension_numbers = #tpu.dot_dimension_numbers<[1], [0], [0], [1], [0, 0, 1, 1], [], []>} : vector<1x128xbf16>, vector<128x512xbf16>, vector<1x512xf32> -> vector<1x512xf32>
    %224 = vector.extract_strided_slice %0 {offsets = [5, 0], sizes = [1, 512], strides = [1, 1]} : vector<24x512xf32> to vector<1x512xf32>
    %225 = arith.addf %223, %224 : vector<1x512xf32>
    %cst_93 = arith.constant 5.000000e-01 : f32
    %226 = vector.broadcast %cst_93 : f32 to vector<1x512xf32>
    %227 = arith.mulf %226, %225 : vector<1x512xf32>
    %cst_94 = arith.constant 4.471500e-02 : f32
    %228 = vector.broadcast %cst_94 : f32 to vector<1x512xf32>
    %229 = arith.mulf %228, %225 : vector<1x512xf32>
    %230 = arith.mulf %229, %225 : vector<1x512xf32>
    %231 = arith.mulf %230, %225 : vector<1x512xf32>
    %232 = arith.addf %225, %231 : vector<1x512xf32>
    %cst_95 = arith.constant 0.797884583 : f32
    %233 = vector.broadcast %cst_95 : f32 to vector<1x512xf32>
    %234 = arith.mulf %233, %232 : vector<1x512xf32>
    %235 = math.tanh %234 : vector<1x512xf32>
    %cst_96 = arith.constant 1.000000e+00 : f32
    %236 = vector.broadcast %cst_96 : f32 to vector<1x512xf32>
    %237 = arith.addf %236, %235 : vector<1x512xf32>
    %238 = arith.mulf %227, %237 : vector<1x512xf32>
    %c0_97 = arith.constant 0 : index
    %c0_98 = arith.constant 0 : index
    %239 = vector.load %arg10[%c0_97, %c0_98] : memref<512x256xbf16, #tpu.memory_space<vmem>>, vector<512x128xbf16>
    %240 = arith.truncf %238 : vector<1x512xf32> to vector<1x512xbf16>
    %cst_99 = arith.constant dense<0.000000e+00> : vector<1x128xf32>
    %241 = tpu.matmul %240, %239, %cst_99 {dimension_numbers = #tpu.dot_dimension_numbers<[1], [0], [0], [1], [0, 0, 1, 1], [], []>} : vector<1x512xbf16>, vector<512x128xbf16>, vector<1x128xf32> -> vector<1x128xf32>
    %242 = vector.extract_strided_slice %0 {offsets = [6, 0], sizes = [1, 128], strides = [1, 1]} : vector<24x512xf32> to vector<1x128xf32>
    %243 = arith.addf %241, %242 : vector<1x128xf32>
    %244 = arith.addf %221, %243 : vector<1x128xf32>
    %245 = vector.extract_strided_slice %0 {offsets = [7, 0], sizes = [1, 128], strides = [1, 1]} : vector<24x512xf32> to vector<1x128xf32>
    %246 = vector.extract_strided_slice %0 {offsets = [8, 0], sizes = [1, 128], strides = [1, 1]} : vector<24x512xf32> to vector<1x128xf32>
    %cst_100 = arith.constant dense<0.000000e+00> : vector<1xf32>
    %247 = vector.multi_reduction <add>, %244, %cst_100 [1] : vector<1x128xf32> to vector<1xf32>
    %248 = vector.shape_cast %247 : vector<1xf32> to vector<1x1xf32>
    %cst_101 = arith.constant 1.280000e+02 : f32
    %249 = vector.broadcast %cst_101 : f32 to vector<1x1xf32>
    %250 = arith.divf %248, %249 : vector<1x1xf32>
    %251 = vector.broadcast %250 : vector<1x1xf32> to vector<1x128xf32>
    %252 = arith.subf %244, %251 : vector<1x128xf32>
    %253 = arith.mulf %252, %252 : vector<1x128xf32>
    %cst_102 = arith.constant dense<0.000000e+00> : vector<1xf32>
    %254 = vector.multi_reduction <add>, %253, %cst_102 [1] : vector<1x128xf32> to vector<1xf32>
    %255 = vector.shape_cast %254 : vector<1xf32> to vector<1x1xf32>
    %cst_103 = arith.constant 1.280000e+02 : f32
    %256 = vector.broadcast %cst_103 : f32 to vector<1x1xf32>
    %257 = arith.divf %255, %256 : vector<1x1xf32>
    %cst_104 = arith.constant 9.99999997E-7 : f32
    %258 = vector.broadcast %cst_104 : f32 to vector<1x1xf32>
    %259 = arith.addf %257, %258 : vector<1x1xf32>
    %260 = math.rsqrt %259 : vector<1x1xf32>
    %261 = vector.broadcast %260 : vector<1x1xf32> to vector<1x128xf32>
    %262 = arith.mulf %252, %261 : vector<1x128xf32>
    %263 = arith.mulf %262, %245 : vector<1x128xf32>
    %264 = arith.addf %263, %246 : vector<1x128xf32>
    %c0_105 = arith.constant 0 : index
    %c2304 = arith.constant 2304 : index
    %265 = vector.load %arg9[%c0_105, %c2304] : memref<128x2560xbf16, #tpu.memory_space<vmem>>, vector<128x128xbf16>
    %266 = arith.truncf %264 : vector<1x128xf32> to vector<1x128xbf16>
    %cst_106 = arith.constant dense<0.000000e+00> : vector<1x128xf32>
    %267 = tpu.matmul %266, %265, %cst_106 {dimension_numbers = #tpu.dot_dimension_numbers<[1], [0], [0], [1], [0, 0, 1, 1], [], []>} : vector<1x128xbf16>, vector<128x128xbf16>, vector<1x128xf32> -> vector<1x128xf32>
    %c0_107 = arith.constant 0 : index
    %c2432 = arith.constant 2432 : index
    %268 = vector.load %arg9[%c0_107, %c2432] : memref<128x2560xbf16, #tpu.memory_space<vmem>>, vector<128x128xbf16>
    %269 = arith.truncf %65 : vector<1x128xf32> to vector<1x128xbf16>
    %cst_108 = arith.constant dense<0.000000e+00> : vector<1x128xf32>
    %270 = tpu.matmul %269, %268, %cst_108 {dimension_numbers = #tpu.dot_dimension_numbers<[1], [0], [0], [1], [0, 0, 1, 1], [], []>} : vector<1x128xbf16>, vector<128x128xbf16>, vector<1x128xf32> -> vector<1x128xf32>
    %271 = arith.addf %267, %270 : vector<1x128xf32>
    %272 = vector.extract_strided_slice %0 {offsets = [20, 0], sizes = [1, 128], strides = [1, 1]} : vector<24x512xf32> to vector<1x128xf32>
    %273 = arith.addf %271, %272 : vector<1x128xf32>
    %c0_109 = arith.constant 0 : index
    %c0_110 = arith.constant 0 : index
    %c0_111 = arith.constant 0 : index
    %274 = vector.load %arg12[%c0_109, %c0_110, %c0_111] : memref<1x1x128xf32, #tpu.memory_space<vmem>>, vector<1x1x128xf32>
    %275 = vector.shape_cast %274 : vector<1x1x128xf32> to vector<1x128xf32>
    %276 = vector.shape_cast %273 : vector<1x128xf32> to vector<1x1x128xf32>
    tpu.vector_store %arg12[%c0_109, %c0_110, %c0_111], %276 {strides = array<i32>} : memref<1x1x128xf32, #tpu.memory_space<vmem>>, vector<1x1x128xf32>,
    return
  }
  func.func @transform_0(%arg0: i32) -> (i32, i32, i32) {
    %c0_i32 = arith.constant 0 : i32
    %c0_i32_0 = arith.constant 0 : i32
    %c0_i32_1 = arith.constant 0 : i32
    return %arg0, %c0_i32, %c0_i32_0 : i32, i32, i32
  }
  func.func @transform_1(%arg0: i32) -> (i32, i32, i32) {
    %c0_i32 = arith.constant 0 : i32
    %c0_i32_0 = arith.constant 0 : i32
    %c0_i32_1 = arith.constant 0 : i32
    return %arg0, %c0_i32, %c0_i32_0 : i32, i32, i32
  }
  func.func @transform_2(%arg0: i32) -> (i32, i32, i32) {
    %c0_i32 = arith.constant 0 : i32
    %c0_i32_0 = arith.constant 0 : i32
    %c0_i32_1 = arith.constant 0 : i32
    return %arg0, %c0_i32, %c0_i32_0 : i32, i32, i32
  }
  func.func @transform_3(%arg0: i32) -> (i32, i32) {
    %c0_i32 = arith.constant 0 : i32
    %c0_i32_0 = arith.constant 0 : i32
    %c0_i32_1 = arith.constant 0 : i32
    return %c0_i32, %c0_i32_0 : i32, i32
  }
  func.func @transform_4(%arg0: i32) -> (i32, i32) {
    %c0_i32 = arith.constant 0 : i32
    %c0_i32_0 = arith.constant 0 : i32
    %c0_i32_1 = arith.constant 0 : i32
    return %c0_i32, %c0_i32_0 : i32, i32
  }
  func.func @transform_5(%arg0: i32) -> (i32, i32) {
    %c0_i32 = arith.constant 0 : i32
    %c0_i32_0 = arith.constant 0 : i32
    %c0_i32_1 = arith.constant 0 : i32
    return %c0_i32, %c0_i32_0 : i32, i32
  }
  func.func @transform_6(%arg0: i32) -> (i32, i32) {
    %c0_i32 = arith.constant 0 : i32
    %c0_i32_0 = arith.constant 0 : i32
    %c0_i32_1 = arith.constant 0 : i32
    return %c0_i32, %c0_i32_0 : i32, i32
  }
  func.func @transform_7(%arg0: i32) -> (i32, i32) {
    %c0_i32 = arith.constant 0 : i32
    %c0_i32_0 = arith.constant 0 : i32
    %c0_i32_1 = arith.constant 0 : i32
    return %c0_i32, %c0_i32_0 : i32, i32
  }
  func.func @transform_8(%arg0: i32) -> (i32, i32) {
    %c0_i32 = arith.constant 0 : i32
    %c0_i32_0 = arith.constant 0 : i32
    %c0_i32_1 = arith.constant 0 : i32
    return %c0_i32, %c0_i32_0 : i32, i32
  }
  func.func @transform_9(%arg0: i32) -> (i32, i32) {
    %c0_i32 = arith.constant 0 : i32
    %c0_i32_0 = arith.constant 0 : i32
    %c0_i32_1 = arith.constant 0 : i32
    return %c0_i32, %c0_i32_0 : i32, i32
  }
  func.func @transform_10(%arg0: i32) -> (i32, i32) {
    %c0_i32 = arith.constant 0 : i32
    %c0_i32_0 = arith.constant 0 : i32
    %c0_i32_1 = arith.constant 0 : i32
    return %c0_i32, %c0_i32_0 : i32, i32
  }
  func.func @transform_11(%arg0: i32) -> (i32, i32, i32) {
    %c0_i32 = arith.constant 0 : i32
    %c0_i32_0 = arith.constant 0 : i32
    %c0_i32_1 = arith.constant 0 : i32
    return %arg0, %c0_i32, %c0_i32_0 : i32, i32, i32
  }
}

</mosaic_0001>

<bundles_post_ra>
// kernel: tpu_custom_call.1
= control target key start
LH: loop header
LB: loop body
LE: loop exit
PB: predicated region body
PF: predicated region fallthrough
CT: control target
= control target key end

     0   :  { %s14343_s0 = inlined_call_operand.hbm [shape: f32[2,4,4096], index: 0, kind: input, shape index: {}]   ;;  %s14344_s1 = inlined_call_operand.hbm [shape: f32[2,16,4096], index: 1, kind: input, shape index: {}]   ;;  %s14345_s2 = inlined_call_operand.hbm [shape: f32[2,1,128], index: 2, kind: input, shape index: {}]   ;;  %s14346_s3 = inlined_call_operand.vmem [shape: f32[4,1], index: 3, kind: input, shape index: {}]   ;;  %s14347_s4 = inlined_call_operand.hbm [shape: f32[1,4], index: 4, kind: input, shape index: {}]   ;;  %s14348_s5 = inlined_call_operand.vmem [shape: f32[16,1], index: 5, kind: input, shape index: {}]   ;;  %s14349_s6 = inlined_call_operand.hbm [shape: f32[1,16], index: 6, kind: input, shape index: {}]   ;;  %s14350_s7 = inlined_call_operand.hbm [shape: bf16[4096,256], index: 7, kind: input, shape index: {}]   ;;  %s14351_s8 = inlined_call_operand.hbm [shape: bf16[128,2560], index: 8, kind: input, shape index: {}]   ;;  %s14352_s9 = inlined_call_operand.hbm [shape: bf16[512,256], index: 9, kind: input, shape index: {}]   ;;  %s14353_s10 = inlined_call_operand.hbm [shape: f32[24,512], index: 10, kind: input, shape index: {}]   ;;  %s14354_s11 = inlined_call_operand.hbm [shape: f32[2,1,128], index: 11, kind: output, shape index: {}]  }
   0x1   :  { %14382 = sst [smem:[#allocation30_spill]] %s14344_s1 }
   0x2   :  { %14383 = sst [smem:[#allocation31_spill]] %s14346_s3 }
   0x3   :  { %14384 = sst [smem:[#allocation32_spill]] %s14347_s4 }
   0x4   :  { %14385 = sst [smem:[#allocation33_spill]] %s14348_s5 }
   0x5   :  { %14386 = sst [smem:[#allocation34_spill]] %s14350_s7 }
   0x6   :  { %14387 = sst [smem:[#allocation35_spill]] %s14352_s9 }
   0x7   :  { %14388 = sst [smem:[#allocation36_spill]] %s14354_s11 }
   0x8   :  { %16 = vsyncpa [#allocation3], 0 }
   0x9   :  { %18 = vsyncpa [#allocation3 + $0x1], 0 }
   0xa   :  { %19 = vsyncpa [#allocation6], 0 }
   0xb   :  { %21 = vsyncpa [#allocation6 + $0x1], 0 }
   0xc   :  { %22 = vsyncpa [#allocation9], 0 }
   0xd   :  { %23 = vsyncpa [#allocation12], 0 }
   0xe   :  { %24 = vsyncpa [#allocation15], 0 }
   0xf   :  { %25 = vsyncpa [#allocation4], 0 }
  0x10   :  { %27 = vsyncpa [#allocation4 + $0x1], 0  ;;  %s13446_s17 = smov 0   ;;  %s13448_s18 = smov 0  }
  0x11   :  { %s13450_s19 = smov 0   ;;  %s13452_s20 = smov 0  }
  0x12 LB: > { %14389 = sst [smem:[#allocation24_spill]] %s13349_s17  ;;  %s13363_s21 = smov [#allocation8]   ;;  %s13361_s20 = sphi %s13452_s20, %s14461_s20   ;;  %s13357_s19 = sphi %s13450_s19, %s14463_s19   ;;  %s13353_s18 = sphi %s13448_s18, %s14465_s18   ;;  %s13349_s17 = sphi %s13446_s17, %s14464_s17  }
  0x13   : > { %14390 = sst [smem:[#allocation25_spill]] %s13357_s19  ;;  %s326_s22 = sshll.u32 %s13363_s21, 4  ;;  %s13472_s22 = int_to_ptr.vmem [resolvable:$true] %s326_s22 }
  0x14   : > { %s13467_s23 = sadd.s32 4294967295, %s13361_s20   ;;  %p9957_p0 = scmp.ge.s32.totalorder %s13361_s20, 1 }
  0x15   : > { %p14360_p1 = scmp.eq.s32.totalorder %s13467_s23, 0  ;;  %p310_p2 = scmp.lt.s32.totalorder %s13361_s20, 3 }
  0x16   : > { %s13364_s25 = smov [#allocation11]   ;;  %s13365_s28 = smov [#allocation14]  }
  0x17   : > { %p13474_p3 = pnand %p9957_p0, %p310_p2  ;;  %s350_s26 = sshll.u32 %s13364_s25, 4  ;;  %s13481_s26 = int_to_ptr.vmem [resolvable:$true] %s350_s26 }
  0x18   : > { %s376_s29 = sshll.u32 %s13365_s28, 4  ;;  %s14393_s4 = sld [smem:[#allocation32_spill]]  ;;  %s13489_s29 = int_to_ptr.vmem [resolvable:$true] %s376_s29 }
  0x19   : > { %s14391_s24 = scalar_select %p13474_p3, 1, 0 }
  0x1a   : > { %p12081_p5 = pneg %p13474_p3 }
  0x1c   : > { %p13485_p6 = pnand %p12081_p5, %p14360_p1 }
  0x1e   : > { %s14392_s27 = scalar_select %p13485_p6, 1, 0 }
  0x1f   : > { %s13021_s13 = scalar_lea.hbm %s14393_s4, 16  ;;  %p13499_p8 = pneg %p13485_p6 }
  0x20   : > { %p13022_p7 = scmp.ne.s32.totalorder %s14393_s4, %s13021_s13  ;;  %p13028_p11 = scmp.lt.u32.totalorder %s13021_s13, %s14393_s4 }
  0x21   : > { %s14394_s16 = scalar_select %p13499_p8, 1, 0 }
  0x22   : > { %p13024_p9 = pnand %p13499_p8, %p13022_p7 }
  0x24   : > { %p13025_p10 = pneg %p13024_p9 }
  0x26   : > { %p13030_p12 = pnand %p13028_p11, %p13025_p10 }
  0x28   : > { %13033 = shalt.err (!%p13030_p12)
}
  0x29   : > { %s13034_s28 = scalar_lea.vmem %s13472_s22, 16  ;;  %s13041_s30 = scalar_lea.vmem %s13472_s22, 32 }
  0x2a   : > { %p13035_p13 = scmp.ne.s32.totalorder %s13472_s22, %s13034_s28  ;;  %p13042_p5 = scmp.lt.s32.totalorder %s13472_s22, %s13472_s22 }
  0x2b   : > { %p13043_p7 = scmp.lt.s32.totalorder %s13041_s30, %s13034_s28 }
  0x2c   : > { %p13037_p0 = pnand %p13035_p13, %p13499_p8 }
  0x2d   : > { %p13044_p9 = por %p13043_p7, %p13042_p5 }
  0x2e   : > { %p13038_p2 = pneg %p13037_p0 }
  0x30   : > { %p13045_p4 = pnand %p13044_p9, %p13038_p2 }
  0x32   : > { %13048 = shalt.err (!%p13045_p4)
}
  0x33   : > { %12084 = dma.hbm_to_vmem [thread:$0]  (!%p13485_p6), %s14393_s4, 16, %s13472_s22, [#allocation9]  }
  0x34   : > { %s14395_s7 = sld [smem:[#allocation34_spill]] }
  0x3a   : > { %s13049_s21 = scalar_lea.hbm %s14395_s7, 65536 }
  0x3b   : > { %p13050_p10 = scmp.ne.s32.totalorder %s14395_s7, %s13049_s21  ;;  %p13056_p4 = scmp.lt.u32.totalorder %s13049_s21, %s14395_s7 }
  0x3d   : > { %p13052_p11 = pnand %p13050_p10, %p13499_p8 }
  0x3f   : > { %p13053_p12 = pneg %p13052_p11 }
  0x41   : > { %p13058_p13 = pnand %p13056_p4, %p13053_p12 }
  0x43   : > { %13061 = shalt.err (!%p13058_p13)
}
  0x44   : > { %s13062_s22 = scalar_lea.vmem %s13481_s26, 65536  ;;  %p13070_p7 = scmp.lt.s32.totalorder %s13481_s26, %s13481_s26 }
  0x45   : > { %p13063_p0 = scmp.ne.s32.totalorder %s13481_s26, %s13062_s22  ;;  %p13071_p9 = scmp.lt.s32.totalorder %s13062_s22, %s13062_s22 }
  0x47   : > { %p13065_p2 = pnand %p13063_p0, %p13499_p8  ;;  %p13072_p10 = por %p13071_p9, %p13070_p7 }
  0x49   : > { %p13066_p5 = pneg %p13065_p2 }
  0x4b   : > { %p13073_p11 = pnand %p13072_p10, %p13066_p5 }
  0x4d   : > { %13076 = shalt.err (!%p13073_p11)
}
  0x4e   : > { %s13366_s11 = smov 128   ;;  %s13367_s12 = smov 8  }
  0x4f   : > { %12090 = dma.hbm_to_vmem [thread:$0]  (!%p13485_p6), %s14395_s7, 65536, %s13481_s26, [#allocation12], %s13366_s11, %s13366_s11, %s13367_s12  }
  0x50   : > { %s14396_s9 = sld [smem:[#allocation35_spill]] }
  0x56   : > { %s13077_s25 = scalar_lea.hbm %s14396_s9, 8192 }
  0x57   : > { %p13078_p12 = scmp.ne.s32.totalorder %s14396_s9, %s13077_s25  ;;  %p13084_p0 = scmp.lt.u32.totalorder %s13077_s25, %s14396_s9 }
  0x59   : > { %p13080_p4 = pnand %p13078_p12, %p13499_p8 }
  0x5b   : > { %p13081_p13 = pneg %p13080_p4 }
  0x5d   : > { %p13086_p2 = pnand %p13084_p0, %p13081_p13 }
  0x5f   : > { %13089 = shalt.err (!%p13086_p2)
}
  0x60   : > { %s13090_s26 = scalar_lea.vmem %s13489_s29, 8192  ;;  %p13098_p10 = scmp.lt.s32.totalorder %s13489_s29, %s13489_s29 }
  0x61   : > { %p13091_p5 = scmp.ne.s32.totalorder %s13489_s29, %s13090_s26  ;;  %p13099_p11 = scmp.lt.s32.totalorder %s13090_s26, %s13090_s26 }
  0x63   : > { %p13093_p7 = pnand %p13091_p5, %p13499_p8  ;;  %p13100_p12 = por %p13099_p11, %p13098_p10 }
  0x65   : > { %p13094_p9 = pneg %p13093_p7 }
  0x67   : > { %p13101_p4 = pnand %p13100_p12, %p13094_p9 }
  0x69   : > { %13104 = shalt.err (!%p13101_p4)
}
  0x6a   : > { %12096 = dma.hbm_to_vmem [thread:$0]  (!%p13485_p6), %s14396_s9, 8192, %s13489_s29, [#allocation15], %s13366_s11, %s13366_s11, %s13367_s12  }
  0x6b   : > { %s9956_s14 = sadd.s32 4294967294, %s13361_s20   ;;  %s13569_s15 = sadd.s32 1, %s13361_s20  }
  0x6c   : > { %14397 = sst [smem:[#allocation26_spill]] %s13569_s15  ;;  %s40_s21 = sadd.s32 1, %s13357_s19 }
  0x6d   : > { %s37_s25 = ssub.s32 %s13361_s20, %s13569_s15  ;;  %p47_p13 = scmp.ne.s32.totalorder %s13357_s19, %s13353_s18 }
  0x6e   : > { %p38_p0 = scmp.eq.s32.totalorder %s37_s25, 0  ;;  %p48_p2 = scmp.eq.s32.totalorder %s13361_s20, 0 }
  0x6f   : > { %p53_p5 = scmp.ne.s32.totalorder %s13353_s18, %s13349_s17  ;;  %p297_p7 = scmp.eq.s32.totalorder %s13467_s23, 1 }
  0x70   : > { %s13581_s28 = scalar_select %p38_p0, %s13357_s19, %s40_s21  }
  0x71   : > { %p49_p9 = por %p48_p2, %p47_p13  ;;  %p13585_p10 = por %p14360_p1, %p53_p5 }
  0x72   : > { %14398 = sst [smem:[#allocation27_spill]] %s13581_s28  ;;  %p13589_p11 = por %p297_p7, %p47_p13 }
  0x73   : > { %s14399_s29 = scalar_select %p13585_p10, 1, 0 }
  0x74   : > { %s14400_s11 = scalar_select %p13589_p11, 1, 0 }
  0x75   : > { %p303_p12 = scmp.eq.s32.totalorder %s9956_s14, 1  ;;  %p12120_p4 = scmp.lt.s32.totalorder %s13361_s20, 2 }
  0x76   : > { %14401 = sst [smem:[#allocation28_spill]] %s14400_s11  ;;  %s13595_s12 = sand.u32 1, %s13357_s19  }
  0x77   : > { %p13597_p3 = por %p303_p12, %p53_p5  ;;  %s422_s22 = sand.u32 1, %s13361_s20  }
  0x78   : > { %p13602_p0 = pnand %p12120_p4, %p49_p9  ;;  %s9968_s4 = sshll.u32 %s13595_s12, 9 }
  0x79   : > { %s14402_s30 = scalar_select %p13597_p3, 1, 0 }
  0x7a   : > { %s14404_s26 = scalar_select %p13602_p0, 1, 0 }
  0x7b   : > { %14403 = sst [smem:[#allocation29_spill]] %s14402_s30  ;;  %s10774_s13 = sshll.u32 %s13361_s20, 13 }
  0x7c   : > { %s14405_s1 = sld [smem:[#allocation30_spill]]  ;;  %s426_s7 = scalar_lea.vmem [#allocation5], %s9968_s4 }
  0x7d   : > { %s433_s9 = sshll.u32 %s426_s7, 4  ;;  %s13615_s28 = scalar_lea.sflag [#allocation6], %s422_s22  ;;  %s13613_s9 = int_to_ptr.vmem [resolvable:$true] %s433_s9 }
  0x7e   : > { %p13621_p2 = pneg %p13602_p0 }
  0x80   : > { %s14406_s15 = scalar_select %p13621_p2, 1, 0 }
  0x82   : > { %s13611_s14 = scalar_lea.hbm %s14405_s1, %s10774_s13  ;;  %s13110_s4 = scalar_lea.hbm %s14405_s1, 16384 }
  0x83   : > { %s13105_s19 = scalar_lea.hbm %s13611_s14, 8192  ;;  %p13111_p9 = scmp.lt.u32.totalorder %s13611_s14, %s14405_s1 }
  0x84   : > { %p13106_p13 = scmp.ne.s32.totalorder %s13611_s14, %s13105_s19  ;;  %p13112_p12 = scmp.lt.u32.totalorder %s13110_s4, %s13105_s19 }
  0x85   : > { %p13114_p1 = scmp.lt.u32.totalorder %s13105_s19, %s13611_s14 }
  0x86   : > { %p13108_p5 = pnand %p13621_p2, %p13106_p13  ;;  %p13113_p4 = por %p13112_p12, %p13111_p9 }
  0x88   : > { %p13109_p7 = pneg %p13108_p5  ;;  %p13115_p3 = por %p13114_p1, %p13113_p4 }
  0x8a   : > { %p13116_p11 = pnand %p13115_p3, %p13109_p7 }
  0x8c   : > { %13119 = shalt.err (!%p13116_p11)
}
  0x8d   : > { %s13120_s22 = scalar_lea.vmem %s13613_s9, 8192  ;;  %s13368_s13 = smov [#allocation5]  }
  0x8e   : > { %p13121_p13 = scmp.ne.s32.totalorder %s13613_s9, %s13120_s22  ;;  %s13125_s21 = sshll.u32 %s13368_s13, 4  ;;  %s13126_s21 = int_to_ptr.vmem [resolvable:$false] %s13125_s21 }
  0x8f   : > { %s13127_s7 = scalar_lea.vmem %s13126_s21, 16384  ;;  %p13128_p6 = scmp.lt.s32.totalorder %s13613_s9, %s13126_s21 }
  0x90   : > { %p13123_p5 = pnand %p13121_p13, %p13621_p2  ;;  %p13129_p8 = scmp.lt.s32.totalorder %s13127_s7, %s13120_s22 }
  0x92   : > { %p13124_p10 = pneg %p13123_p5  ;;  %p13130_p9 = por %p13129_p8, %p13128_p6 }
  0x94   : > { %p13131_p12 = pnand %p13130_p9, %p13124_p10 }
  0x96   : > { %13134 = shalt.err (!%p13131_p12)
}
  0x97   : > { %s13369_s19 = smov 4096   ;;  %s13370_s4 = smov 256  }
  0x98   : > { %12106 = dma.hbm_to_vmem [thread:$0]  (!%p13602_p0), %s13611_s14, 8192, %s13613_s9, %s13615_s28, %s13369_s19, %s13369_s19, %s13370_s4  }
  0x99   : > { %s13371_s25 = smov [#allocation10]   ;;  %s13372_s13 = smov [#allocation13]  }
  0x9a   : > { %s340_s1 = sshll.u32 %s13371_s25, 4  ;;  %s363_s30 = sshll.u32 %s13372_s13, 4  ;;  %s341_s1 = int_to_ptr.vmem [resolvable:$true] %s340_s1  ;;  %s364_s30 = int_to_ptr.vmem [resolvable:$true] %s363_s30 }
  0x9b   : > { %s13135_s22 = scalar_lea.hbm %s14349_s6, 16  ;;  %p14407_p3 = scmp.ne.s32.totalorder %s14394_s16, 0 }
  0x9c   : > { %p13136_p1 = scmp.ne.s32.totalorder %s14349_s6, %s13135_s22  ;;  %p13142_p10 = scmp.lt.u32.totalorder %s13135_s22, %s14349_s6 }
  0x9e   : > { %p13138_p6 = pnand %p13136_p1, %p14407_p3 }
  0xa0   : > { %p13139_p8 = pneg %p13138_p6 }
  0xa2   : > { %p13144_p11 = pnand %p13142_p10, %p13139_p8 }
  0xa4   : > { %13147 = shalt.err (!%p13144_p11)
}
  0xa5   : > { %s13148_s9 = scalar_lea.vmem %s341_s1, 16  ;;  %s13155_s17 = scalar_lea.vmem %s341_s1, 32 }
  0xa6   : > { %p13149_p7 = scmp.ne.s32.totalorder %s341_s1, %s13148_s9  ;;  %p13156_p5 = scmp.lt.s32.totalorder %s341_s1, %s341_s1 }
  0xa7   : > { %p13157_p9 = scmp.lt.s32.totalorder %s13155_s17, %s13148_s9 }
  0xa8   : > { %p13151_p4 = pnand %p13149_p7, %p14407_p3 }
  0xa9   : > { %p13158_p12 = por %p13157_p9, %p13156_p5 }
  0xaa   : > { %p13152_p13 = pneg %p13151_p4 }
  0xac   : > { %p13159_p0 = pnand %p13158_p12, %p13152_p13 }
  0xae   : > { %13162 = shalt.err (!%p13159_p0)
}
  0xaf   : > { %p14408_p1 = scmp.ne.s32.totalorder %s14392_s27, 0  ;;  %s13163_s19 = scalar_lea.hbm %s14351_s8, 20480 }
  0xb0   : > { %p13164_p6 = scmp.ne.s32.totalorder %s14351_s8, %s13163_s19  ;;  %p13170_p0 = scmp.lt.u32.totalorder %s13163_s19, %s14351_s8 }
  0xb1   : > { %12087 = dma.hbm_to_vmem [thread:$0]  (!%p14408_p1), %s14349_s6, 16, %s341_s1, [#allocation9]  }
  0xb2   : > { %p13166_p8 = pnand %p13164_p6, %p14407_p3 }
  0xb4   : > { %p13167_p10 = pneg %p13166_p8 }
  0xb6   : > { %p13172_p11 = pnand %p13170_p0, %p13167_p10 }
  0xb8   : > { %13175 = shalt.err (!%p13172_p11)
}
  0xb9   : > { %s13176_s22 = scalar_lea.vmem %s364_s30, 20480  ;;  %p13184_p5 = scmp.lt.s32.totalorder %s364_s30, %s364_s30 }
  0xba   : > { %p13177_p7 = scmp.ne.s32.totalorder %s364_s30, %s13176_s22  ;;  %p13185_p9 = scmp.lt.s32.totalorder %s13176_s22, %s13176_s22 }
  0xbc   : > { %p13179_p4 = pnand %p13177_p7, %p14407_p3  ;;  %p13186_p12 = por %p13185_p9, %p13184_p5 }
  0xbe   : > { %p13180_p13 = pneg %p13179_p4 }
  0xc0   : > { %p13187_p2 = pnand %p13186_p12, %p13180_p13 }
  0xc2   : > { %13190 = shalt.err (!%p13187_p2)
}
  0xc3   : > { %s13373_s1 = smov 1280   ;;  %s13374_s7 = smov 80  }
  0xc4   : > { %12093 = dma.hbm_to_vmem [thread:$0]  (!%p14408_p1), %s14351_s8, 20480, %s364_s30, [#allocation12], %s13373_s1, %s13373_s1, %s13374_s7  }
  0xc5   : > { %s13375_s11 = smov [#allocation16]   ;;  %s13191_s19 = scalar_lea.hbm %s14353_s10, 1536 }
  0xc6   : > { %s389_s14 = sshll.u32 %s13375_s11, 4  ;;  %p13192_p2 = scmp.ne.s32.totalorder %s14353_s10, %s13191_s19  ;;  %s390_s14 = int_to_ptr.vmem [resolvable:$true] %s389_s14 }
  0xc7   : > { %p13198_p10 = scmp.lt.u32.totalorder %s13191_s19, %s14353_s10 }
  0xc8   : > { %p13194_p6 = pnand %p13192_p2, %p14407_p3 }
  0xca   : > { %p13195_p8 = pneg %p13194_p6 }
  0xcc   : > { %p13200_p0 = pnand %p13198_p10, %p13195_p8 }
  0xce   : > { %13203 = shalt.err (!%p13200_p0)
}
  0xcf   : > { %s13204_s30 = scalar_lea.vmem %s390_s14, 1536  ;;  %p13212_p13 = scmp.lt.s32.totalorder %s390_s14, %s390_s14 }
  0xd0   : > { %p13205_p11 = scmp.ne.s32.totalorder %s390_s14, %s13204_s30  ;;  %p13213_p5 = scmp.lt.s32.totalorder %s13204_s30, %s13204_s30 }
  0xd2   : > { %p13207_p7 = pnand %p13205_p11, %p14407_p3  ;;  %p13214_p9 = por %p13213_p5, %p13212_p13 }
  0xd4   : > { %p13208_p4 = pneg %p13207_p7 }
  0xd6   : > { %p13215_p12 = pnand %p13214_p9, %p13208_p4 }
  0xd8   : > { %13218 = shalt.err (!%p13215_p12)
}
  0xd9   : > { %s13376_s22 = smov 512   ;;  %s13377_s1 = smov 32  }
  0xda   : > { %12099 = dma.hbm_to_vmem [thread:$0]  (!%p14408_p1), %s14353_s10, 1536, %s390_s14, [#allocation15], %s13376_s22, %s13376_s22, %s13377_s1  }
  0xdb   : > { %s9965_s16 = sshll.u32 %s13595_s12, 7  ;;  %s10773_s17 = sshll.u32 %s13361_s20, 11 }
  0xdc   : > { %s13704_s5 = scalar_lea.hbm %s14343_s0, %s10773_s17  ;;  %s407_s19 = scalar_lea.vmem [#allocation2], %s9965_s16 }
  0xdd   : > { %s415_s4 = sshll.u32 %s407_s19, 4  ;;  %s404_s25 = scalar_lea.sflag [#allocation3], %s13595_s12  ;;  %s416_s4 = int_to_ptr.vmem [resolvable:$true] %s415_s4 }
  0xde   : > { %s13219_s27 = scalar_lea.hbm %s13704_s5, 2048  ;;  %p14409_p2 = scmp.ne.s32.totalorder %s14406_s15, 0 }
  0xdf   : > { %p13220_p3 = scmp.ne.s32.totalorder %s13704_s5, %s13219_s27  ;;  %s13224_s21 = scalar_lea.hbm %s14343_s0, 4096 }
  0xe0   : > { %p13225_p8 = scmp.lt.u32.totalorder %s13704_s5, %s14343_s0  ;;  %p13226_p10 = scmp.lt.u32.totalorder %s13224_s21, %s13219_s27 }
  0xe1   : > { %p13222_p6 = pnand %p13220_p3, %p14409_p2  ;;  %p13228_p11 = scmp.lt.u32.totalorder %s13219_s27, %s13704_s5 }
  0xe2   : > { %p13227_p0 = por %p13226_p10, %p13225_p8 }
  0xe3   : > { %p13223_p1 = pneg %p13222_p6 }
  0xe4   : > { %p13229_p7 = por %p13228_p11, %p13227_p0 }
  0xe6   : > { %p13230_p4 = pnand %p13229_p7, %p13223_p1 }
  0xe8   : > { %13233 = shalt.err (!%p13230_p4)
}
  0xe9   : > { %s13234_s1 = scalar_lea.vmem %s416_s4, 2048  ;;  %s13378_s7 = smov [#allocation2]  }
  0xea   : > { %p13235_p13 = scmp.ne.s32.totalorder %s416_s4, %s13234_s1  ;;  %s13239_s9 = sshll.u32 %s13378_s7, 4  ;;  %s13240_s9 = int_to_ptr.vmem [resolvable:$false] %s13239_s9 }
  0xeb   : > { %s13241_s16 = scalar_lea.vmem %s13240_s9, 4096  ;;  %p13242_p12 = scmp.lt.s32.totalorder %s416_s4, %s13240_s9 }
  0xec   : > { %p13237_p5 = pnand %p13235_p13, %p14409_p2  ;;  %p13243_p3 = scmp.lt.s32.totalorder %s13241_s16, %s13234_s1 }
  0xee   : > { %p13238_p9 = pneg %p13237_p5  ;;  %p13244_p6 = por %p13243_p3, %p13242_p12 }
  0xf0   : > { %p13245_p8 = pnand %p13244_p6, %p13238_p9 }
  0xf2   : > { %13248 = shalt.err (!%p13245_p8)
}
  0xf3   : > { %p14410_p10 = scmp.ne.s32.totalorder %s14404_s26, 0  ;;  %s9971_s17 = sshll.u32 %s13361_s20, 4 }
  0xf4   : > { %s446_s11 = scalar_lea.vmem [#allocation7], %s13595_s12  ;;  %s451_s14 = scalar_lea.hbm %s14345_s2, %s9971_s17 }
  0xf5   : > { %12103 = dma.hbm_to_vmem [thread:$0]  (!%p14410_p10), %s13704_s5, 2048, %s416_s4, %s404_s25  }
  0xf6   : > { %s453_s3 = sshll.u32 %s446_s11, 4  ;;  %s13249_s13 = scalar_lea.hbm %s451_s14, 16  ;;  %s454_s3 = int_to_ptr.vmem [resolvable:$true] %s453_s3 }
  0xf7   : > { %p13250_p1 = scmp.ne.s32.totalorder %s451_s14, %s13249_s13  ;;  %s13254_s22 = scalar_lea.hbm %s14345_s2, 32 }
  0xf8   : > { %p13255_p7 = scmp.lt.u32.totalorder %s451_s14, %s14345_s2  ;;  %p13256_p4 = scmp.lt.u32.totalorder %s13254_s22, %s13249_s13 }
  0xf9   : > { %p13252_p0 = pnand %p13250_p1, %p14409_p2  ;;  %p13258_p5 = scmp.lt.u32.totalorder %s13249_s13, %s451_s14 }
  0xfa   : > { %p13257_p13 = por %p13256_p4, %p13255_p7 }
  0xfb   : > { %p13253_p11 = pneg %p13252_p0 }
  0xfc   : > { %p13259_p9 = por %p13258_p5, %p13257_p13 }
  0xfe   : > { %p13260_p12 = pnand %p13259_p9, %p13253_p11 }
 0x100   : > { %13263 = shalt.err (!%p13260_p12)
}
 0x101   : > { %s13264_s12 = scalar_lea.vmem %s454_s3, 16  ;;  %s13379_s5 = smov [#allocation7]  }
 0x102   : > { %p13265_p3 = scmp.ne.s32.totalorder %s454_s3, %s13264_s12  ;;  %s13269_s4 = sshll.u32 %s13379_s5, 4  ;;  %s13270_s4 = int_to_ptr.vmem [resolvable:$false] %s13269_s4 }
 0x103   : > { %s13271_s25 = scalar_lea.vmem %s13270_s4, 32  ;;  %p13272_p1 = scmp.lt.s32.totalorder %s454_s3, %s13270_s4 }
 0x104   : > { %p13267_p6 = pnand %p13265_p3, %p14409_p2  ;;  %p13273_p0 = scmp.lt.s32.totalorder %s13271_s25, %s13264_s12 }
 0x106   : > { %p13268_p8 = pneg %p13267_p6  ;;  %p13274_p10 = por %p13273_p0, %p13272_p1 }
 0x108   : > { %p13275_p4 = pnand %p13274_p10, %p13268_p8 }
 0x10a   : > { %13278 = shalt.err (!%p13275_p4)
}
 0x10b   : > { %p14411_p7 = scmp.ne.s32.totalorder %s14404_s26, 0  ;;  %p14412_p11 = scmp.ne.s32.totalorder %s14391_s24, 0 }
 0x10c   : > { %s13745_s15 = sand.u32 (!%p14412_p11), 1, %s13353_s18   ;;  %p14413_p2 = scmp.ne.s32.totalorder (!%p14412_p11), %s14399_s29, 0 }
 0x10d   : > { %12109 = dma.hbm_to_vmem [thread:$0]  (!%p14411_p7), %s451_s14, 16, %s454_s3, %s13615_s28  }
 0x10e   : > { %462 = sbr.rel (%p14412_p11) target bundleno = 7233 (0x1c41), region = 64  ;;  %s9973_s9 = sshll.u32 (!%p14412_p11), %s13745_s15, 7 }
 0x10f   : > { %s465_s16 = scalar_lea.sflag (!%p14412_p11), [#allocation3], %s13745_s15  ;;  %s13749_s17 = scalar_lea.vmem (!%p14412_p11), [#allocation2], %s9973_s9 }
 0x115   : > { %13324 = dma.done.wait (%p14413_p2), %s465_s16, 2048  }
 0x116   : > { %13326 = vsyncadd (%p14413_p2), %s465_s16, 4294965248  ;;  %s473_s24 = sand.u32 1, %s13467_s23   ;;  %s9974_s28 = sshll.u32 %s13745_s15, 9 }
 0x117   : > { %s474_s26 = scalar_lea.sflag [#allocation6], %s473_s24  ;;  %s13757_s11 = scalar_lea.vmem [#allocation5], %s9974_s28 }
 0x118   : > { %13328 = dma.done.wait (%p14413_p2), %s474_s26, 8208  }
 0x119   : > { %13330 = vsyncadd (%p14413_p2), %s474_s26, 4294959088  ;;  %s485_s3 = scalar_lea.vmem [#allocation7], %s13745_s15  ;;  %p14414_p10 = scmp.eq.s32.totalorder %s13467_s23, 0 }
 0x11b   : > { %13332 = dma.done.wait (%p14414_p10), [#allocation9], 32   ;;  %p14415_p13 = pmov %p14414_p10 }
 0x11c   : > { %p14416_p5 = pmov %p14414_p10 }
 0x11d   : > { %13334 = vsyncadd (%p14415_p13), [#allocation9], 4294967264 }
 0x11e   : > { %13336 = dma.done.wait (%p14416_p5), [#allocation12], 86016   ;;  %p14417_p9 = pmov %p14416_p5 }
 0x11f   : > { %p14418_p12 = pmov %p14416_p5 }
 0x120   : > { %13338 = vsyncadd (%p14417_p9), [#allocation12], 4294881280 }
 0x121   : > { %13340 = dma.done.wait (%p14418_p12), [#allocation15], 9728   ;;  %p14419_p3 = pmov %p14416_p5 }
 0x122   : > { %v12179_v0 = vld [vmem:[#allocation11 + $0x80] ss:$8 sps:$4 sm:$0xff]   ;;  %v12183_v4 = vld [vmem:[#allocation11 + $0x90] ss:$8 sps:$4 sm:$0xff]   ;;  %vm14376_vm0 = vmmov 0   ;;  %s14420_s27 = sld [smem:[#allocation33_spill]] }
 0x123   : > { %13342 = vsyncadd (%p14419_p3), [#allocation15], 4294957568  ;;  %v12180_v1 = vld [vmem:[#allocation11] ss:$8 sps:$4 sm:$0xff]   ;;  %10775 = vmatprep.subr.bf16.mxu0 %v12179_v0  ;;  %v12184_v5 = vld [vmem:[#allocation11 + $0x10] ss:$8 sps:$4 sm:$0xff]  }
 0x124   : > { %v12181_v2 = vld [vmem:[#allocation11 + $0x180] ss:$8 sps:$4 sm:$0xff]   ;;  %10776 = vmatpush3.bf16.msra.mxu0 %v12180_v1  ;;  %v12185_v6 = vld [vmem:[#allocation11 + $0x190] ss:$8 sps:$4 sm:$0xff]   ;;  %vm14379_vm1 = vcmask 7168   ;;  %vm14378_vm2 = vcmask 1040384  }
 0x125   : > { %v12182_v3 = vld [vmem:[#allocation11 + $0x100] ss:$8 sps:$4 sm:$0xff]   ;;  %10797 = vmatprep.subr.bf16.mxu1 %v12181_v2  ;;  %10777 = vmatprep.subr.bf16.mxu0 %v12183_v4  ;;  %v12186_v7 = vld [vmem:[#allocation11 + $0x110] ss:$8 sps:$4 sm:$0xff]   ;;  %s14444_s1 = sld [smem:[#allocation31_spill]]  ;;  %s14453_s12 = sld [smem:[#allocation28_spill]] }
 0x126   : > { %10798 = vmatpush3.bf16.msra.mxu1 %v12182_v3  ;;  %v12187_v8 = vld [vmem:[#allocation11 + $0xa0] ss:$8 sps:$4 sm:$0xff]   ;;  %v12191_v12 = vld [vmem:[#allocation11 + $0xb0] ss:$8 sps:$4 sm:$0xff]   ;;  %s10770_s5 = sshll.u32 %s13467_s23, 4  ;;  %s555_s4 = scalar_lea.vmem [#allocation17], %s13745_s15 }
 0x127   : > { %10799 = vmatprep.subr.bf16.mxu1 %v12185_v6  ;;  %v12188_v9 = vld [vmem:[#allocation11 + $0x20] ss:$8 sps:$4 sm:$0xff]   ;;  %v12192_v13 = vld [vmem:[#allocation11 + $0x30] ss:$8 sps:$4 sm:$0xff]   ;;  %s9793_s25 = sshll.u32 %s555_s4, 4  ;;  %s9781_s26 = scalar_lea.sflag [#allocation4], %s13745_s15  ;;  %s14301_s25 = int_to_ptr.vmem [resolvable:$true] %s9793_s25 }
 0x128   : > { %10778 = vmatpush3.bf16.msra.mxu0 %v12184_v5  ;;  %v12189_v10 = vld [vmem:[#allocation11 + $0x1a0] ss:$8 sps:$4 sm:$0xff]   ;;  %v12193_v14 = vld [vmem:[#allocation11 + $0x1b0] ss:$8 sps:$4 sm:$0xff]   ;;  %s13279_s23 = scalar_lea.vmem %s14301_s25, 16 }
 0x129   : > { %10779 = vmatprep.subr.bf16.mxu0 %v12187_v8  ;;  %v12190_v11 = vld [vmem:[#allocation11 + $0x120] ss:$8 sps:$4 sm:$0xff]   ;;  %v12194_v15 = vld [vmem:[#allocation11 + $0x130] ss:$8 sps:$4 sm:$0xff]   ;;  %p13280_p6 = scmp.ne.s32.totalorder %s14301_s25, %s13279_s23 }
 0x12a   : > { %10800 = vmatpush3.bf16.msra.mxu1 %v12186_v7  ;;  %v12195_v16 = vld [vmem:[#allocation11 + $0xc0] ss:$8 sps:$4 sm:$0xff]   ;;  %v12199_v20 = vld [vmem:[#allocation11 + $0xd0] ss:$8 sps:$4 sm:$0xff]  }
 0x12b   : > { %10801 = vmatprep.subr.bf16.mxu1 %v12189_v10  ;;  %v12196_v17 = vld [vmem:[#allocation11 + $0x40] ss:$8 sps:$4 sm:$0xff]   ;;  %v12200_v21 = vld [vmem:[#allocation11 + $0x50] ss:$8 sps:$4 sm:$0xff]   ;;  %p14456_p8 = scmp.ne.s32.totalorder %s14453_s12, 0 }
 0x12c   : > { %10780 = vmatpush3.bf16.msra.mxu0 %v12188_v9  ;;  %v12197_v18 = vld [vmem:[#allocation11 + $0x1c0] ss:$8 sps:$4 sm:$0xff]   ;;  %v12201_v22 = vld [vmem:[#allocation11 + $0x1d0] ss:$8 sps:$4 sm:$0xff]  }
 0x12d   : > { %10781 = vmatprep.subr.bf16.mxu0 %v12191_v12  ;;  %v12198_v19 = vld [vmem:[#allocation11 + $0x140] ss:$8 sps:$4 sm:$0xff]   ;;  %v12202_v23 = vld [vmem:[#allocation11 + $0x150] ss:$8 sps:$4 sm:$0xff]   ;;  %p13281_p1 = pnand %p13280_p6, %p14456_p8 }
 0x12e   : > { %10802 = vmatpush3.bf16.msra.mxu1 %v12190_v11  ;;  %v12203_v24 = vld [vmem:[#allocation11 + $0xe0] ss:$8 sps:$4 sm:$0xff]   ;;  %v12207_v28 = vld [vmem:[#allocation11 + $0xf0] ss:$8 sps:$4 sm:$0xff]  }
 0x12f   : > { %10803 = vmatprep.subr.bf16.mxu1 %v12193_v14  ;;  %v12204_v25 = vld [vmem:[#allocation11 + $0x60] ss:$8 sps:$4 sm:$0xff]   ;;  %v12208_v29 = vld [vmem:[#allocation11 + $0x70] ss:$8 sps:$4 sm:$0xff]   ;;  %p13282_p0 = pneg %p13281_p1 }
 0x130   : > { %10782 = vmatpush3.bf16.msra.mxu0 %v12192_v13  ;;  %v12205_v26 = vld [vmem:[#allocation11 + $0x1e0] ss:$8 sps:$4 sm:$0xff]   ;;  %v12209_v30 = vld [vmem:[#allocation11 + $0x1f0] ss:$8 sps:$4 sm:$0xff]  }
 0x131   : > { %10783 = vmatprep.subr.bf16.mxu0 %v12195_v16  ;;  %v12206_v27 = vld [vmem:[#allocation11 + $0x160] ss:$8 sps:$4 sm:$0xff]   ;;  %v12211_v33 = vld [vmem:[#allocation11 + $0x170] ss:$8 sps:$4 sm:$0xff]  }
 0x132   : > { %10804 = vmatpush3.bf16.msra.mxu1 %v12194_v15  ;;  %v657_v31 = vld [vmem:[%s13749_s17] sm:$0xff]  ;;  %v658_v36 = vld [vmem:[%s13749_s17 + $0x8] sm:$0xff]  ;;  %v659_v7 = vld [vmem:[%s13749_s17 + $0x10] sm:$0xff] }
 0x133   : > { %10805 = vmatprep.subr.bf16.mxu1 %v12197_v18  ;;  %v1201_v32 = vcombine.high %v657_v31, %v657_v31  ;;  %v1233_v34 = vpack.c.bf16 %v657_v31, %v657_v31  ;;  %v12212_v35 = vld [vmem:[#allocation11 + $0x280] ss:$8 sps:$4 sm:$0xff]   ;;  %v1202_v38 = vcombine.high %v658_v36, %v658_v36  ;;  %v1235_v40 = vpack.c.bf16 %v658_v36, %v658_v36  ;;  %v12217_v44 = vld [vmem:[#allocation11 + $0x290] ss:$8 sps:$4 sm:$0xff]  }
 0x134   : > { %10784 = vmatpush3.bf16.msra.mxu0 %v12196_v17  ;;  %v12214_v39 = vld [vmem:[#allocation11 + $0x200] ss:$8 sps:$4 sm:$0xff]   ;;  %v12218_v45 = vld [vmem:[#allocation11 + $0x210] ss:$8 sps:$4 sm:$0xff]   ;;  %v1203_v8 = vcombine.high %v659_v7, %v659_v7  ;;  %v1237_v10 = vpack.c.bf16 %v659_v7, %v659_v7 }
 0x135   : > { %10785 = vmatprep.subr.bf16.mxu0 %v12199_v20  ;;  %v1234_v37 = vpack.c.bf16 %v1201_v32, %v1201_v32  ;;  %v12215_v41 = vld [vmem:[#allocation11 + $0x380] ss:$8 sps:$4 sm:$0xff]   ;;  %v1236_v42 = vpack.c.bf16 %v1202_v38, %v1202_v38  ;;  %v12219_v46 = vld [vmem:[#allocation11 + $0x390] ss:$8 sps:$4 sm:$0xff]  }
 0x136   : > { %10806 = vmatpush3.bf16.msra.mxu1 %v12198_v19  ;;  %v12216_v43 = vld [vmem:[#allocation11 + $0x300] ss:$8 sps:$4 sm:$0xff]   ;;  %v12220_v47 = vld [vmem:[#allocation11 + $0x310] ss:$8 sps:$4 sm:$0xff]   ;;  %v1238_v12 = vpack.c.bf16 %v1203_v8, %v1203_v8 }
 0x137   : > { %10807 = vmatprep.subr.bf16.mxu1 %v12201_v22  ;;  %2837 = vmatprep.mubr.bf16.mxu0 %v1234_v37  ;;  %v12221_v48 = vld [vmem:[#allocation11 + $0x2a0] ss:$8 sps:$4 sm:$0xff]   ;;  %v12225_v52 = vld [vmem:[#allocation11 + $0x2b0] ss:$8 sps:$4 sm:$0xff]  }
 0x138   : > { %10786 = vmatpush3.bf16.msra.mxu0 %v12200_v21  ;;  %2877 = vmatprep.mubr.bf16.mxu1 %v1236_v42  ;;  %v12222_v49 = vld [vmem:[#allocation11 + $0x220] ss:$8 sps:$4 sm:$0xff]   ;;  %v12226_v53 = vld [vmem:[#allocation11 + $0x230] ss:$8 sps:$4 sm:$0xff]  }
 0x139   : > { %10787 = vmatprep.subr.bf16.mxu0 %v12203_v24  ;;  %v12223_v50 = vld [vmem:[#allocation11 + $0x3a0] ss:$8 sps:$4 sm:$0xff]   ;;  %v12227_v54 = vld [vmem:[#allocation11 + $0x3b0] ss:$8 sps:$4 sm:$0xff]  }
 0x13a   : > { %10808 = vmatpush3.bf16.msra.mxu1 %v12202_v23  ;;  %v12224_v51 = vld [vmem:[#allocation11 + $0x320] ss:$8 sps:$4 sm:$0xff]   ;;  %v12228_v55 = vld [vmem:[#allocation11 + $0x330] ss:$8 sps:$4 sm:$0xff]  }
 0x13b   : > { %10809 = vmatprep.subr.bf16.mxu1 %v12205_v26  ;;  %v12229_v56 = vld [vmem:[#allocation11 + $0x2c0] ss:$8 sps:$4 sm:$0xff]   ;;  %v12233_v60 = vld [vmem:[#allocation11 + $0x2d0] ss:$8 sps:$4 sm:$0xff]  }
 0x13c   : > { %10788 = vmatpush3.bf16.msra.mxu0 %v12204_v25  ;;  %v12230_v57 = vld [vmem:[#allocation11 + $0x240] ss:$8 sps:$4 sm:$0xff]   ;;  %v12234_v61 = vld [vmem:[#allocation11 + $0x250] ss:$8 sps:$4 sm:$0xff]  }
 0x13d   : > { %10789 = vmatprep.subr.bf16.mxu0 %v12207_v28  ;;  %v12231_v58 = vld [vmem:[#allocation11 + $0x3c0] ss:$8 sps:$4 sm:$0xff]   ;;  %v12235_v62 = vld [vmem:[#allocation11 + $0x3d0] ss:$8 sps:$4 sm:$0xff]  }
 0x13e   : > { %10810 = vmatpush3.bf16.msra.mxu1 %v12206_v27  ;;  %v12232_v59 = vld [vmem:[#allocation11 + $0x340] ss:$8 sps:$4 sm:$0xff]   ;;  %v12236_v63 = vld [vmem:[#allocation11 + $0x350] ss:$8 sps:$4 sm:$0xff]  }
 0x13f   : > { %10811 = vmatprep.subr.bf16.mxu1 %v12209_v30  ;;  %v12237_v0 = vld [vmem:[#allocation11 + $0x2e0] ss:$8 sps:$4 sm:$0xff]   ;;  %v12241_v4 = vld [vmem:[#allocation11 + $0x2f0] ss:$8 sps:$4 sm:$0xff]  }
 0x140   : > { %10790 = vmatpush3.bf16.msra.mxu0 %v12208_v29  ;;  %v12238_v1 = vld [vmem:[#allocation11 + $0x260] ss:$8 sps:$4 sm:$0xff]   ;;  %v12242_v5 = vld [vmem:[#allocation11 + $0x270] ss:$8 sps:$4 sm:$0xff]  }
 0x141   : > { %10819 = vmatprep.subr.bf16.mxu0 %v12212_v35  ;;  %v12239_v2 = vld [vmem:[#allocation11 + $0x3e0] ss:$8 sps:$4 sm:$0xff]   ;;  %v12243_v6 = vld [vmem:[#allocation11 + $0x3f0] ss:$8 sps:$4 sm:$0xff]  }
 0x142   : > { %10812 = vmatpush3.bf16.msra.mxu1 %v12211_v33  ;;  %v12240_v3 = vld [vmem:[#allocation11 + $0x360] ss:$8 sps:$4 sm:$0xff]   ;;  %v12245_v9 = vld [vmem:[#allocation11 + $0x370] ss:$8 sps:$4 sm:$0xff]  }
 0x143   : > { %2838 = vmatmul.mubr.bf16.vlgmr.msra.gmra.mrb[0].mxu0 %v1233_v34  ;;  %10841 = vmatprep.subr.bf16.mxu1 %v12215_v41  ;;  %v12246_v11 = vld [vmem:[#allocation11 + $0x480] ss:$8 sps:$4 sm:$0xff]   ;;  %v660_v13 = vld [vmem:[%s13749_s17 + $0x18] sm:$0xff] }
 0x144   : > { %10820 = vmatpush3.bf16.msra.mxu0 %v12214_v39  ;;  %v1204_v14 = vcombine.high %v660_v13, %v660_v13  ;;  %v12248_v15 = vld [vmem:[#allocation11 + $0x400] ss:$8 sps:$4 sm:$0xff]   ;;  %2917 = vmatprep.mubr.bf16.mxu0 %v1238_v12  ;;  %v1239_v16 = vpack.c.bf16 %v660_v13, %v660_v13  ;;  %v12251_v20 = vld [vmem:[#allocation11 + $0x490] ss:$8 sps:$4 sm:$0xff]  }
 0x145   : > { %2878 = vmatmul.mubr.bf16.vlgmr.msra.gmra.mrb[0].mxu1 %v1235_v40  ;;  %10821 = vmatprep.subr.bf16.mxu0 %v12217_v44  ;;  %v12249_v17 = vld [vmem:[#allocation11 + $0x580] ss:$8 sps:$4 sm:$0xff]   ;;  %v12252_v21 = vld [vmem:[#allocation11 + $0x410] ss:$8 sps:$4 sm:$0xff]  }
 0x146   : > { %10842 = vmatpush3.bf16.msra.mxu1 %v12216_v43  ;;  %v1240_v18 = vpack.c.bf16 %v1204_v14, %v1204_v14  ;;  %v12250_v19 = vld [vmem:[#allocation11 + $0x500] ss:$8 sps:$4 sm:$0xff]   ;;  %v12253_v22 = vld [vmem:[#allocation11 + $0x590] ss:$8 sps:$4 sm:$0xff]  }
 0x147   : > { %10843 = vmatprep.subr.bf16.mxu1 %v12219_v46  ;;  %v12254_v23 = vld [vmem:[#allocation11 + $0x510] ss:$8 sps:$4 sm:$0xff]   ;;  %v12255_v24 = vld [vmem:[#allocation11 + $0x4a0] ss:$8 sps:$4 sm:$0xff]  }
 0x148   : > { %10822 = vmatpush3.bf16.msra.mxu0 %v12218_v45  ;;  %2957 = vmatprep.mubr.bf16.mxu1 %v1240_v18  ;;  %v12256_v25 = vld [vmem:[#allocation11 + $0x420] ss:$8 sps:$4 sm:$0xff]   ;;  %v12259_v28 = vld [vmem:[#allocation11 + $0x4b0] ss:$8 sps:$4 sm:$0xff]  }
 0x149   : > { %10823 = vmatprep.subr.bf16.mxu0 %v12221_v48  ;;  %v12257_v26 = vld [vmem:[#allocation11 + $0x5a0] ss:$8 sps:$4 sm:$0xff]   ;;  %v12260_v29 = vld [vmem:[#allocation11 + $0x430] ss:$8 sps:$4 sm:$0xff]  }
 0x14a   : > { %10844 = vmatpush3.bf16.msra.mxu1 %v12220_v47  ;;  %v12258_v27 = vld [vmem:[#allocation11 + $0x520] ss:$8 sps:$4 sm:$0xff]   ;;  %v12261_v30 = vld [vmem:[#allocation11 + $0x5b0] ss:$8 sps:$4 sm:$0xff]  }
 0x14b   : > { %10845 = vmatprep.subr.bf16.mxu1 %v12223_v50  ;;  %v12262_v31 = vld [vmem:[#allocation11 + $0x530] ss:$8 sps:$4 sm:$0xff]   ;;  %v12263_v32 = vld [vmem:[#allocation11 + $0x4c0] ss:$8 sps:$4 sm:$0xff]  }
 0x14c   : > { %10824 = vmatpush3.bf16.msra.mxu0 %v12222_v49  ;;  %v12264_v33 = vld [vmem:[#allocation11 + $0x440] ss:$8 sps:$4 sm:$0xff]   ;;  %v12267_v36 = vld [vmem:[#allocation11 + $0x4d0] ss:$8 sps:$4 sm:$0xff]  }
 0x14d   : > { %10825 = vmatprep.subr.bf16.mxu0 %v12225_v52  ;;  %v12265_v34 = vld [vmem:[#allocation11 + $0x5c0] ss:$8 sps:$4 sm:$0xff]   ;;  %v12268_v37 = vld [vmem:[#allocation11 + $0x450] ss:$8 sps:$4 sm:$0xff]  }
 0x14e   : > { %10846 = vmatpush3.bf16.msra.mxu1 %v12224_v51  ;;  %v12266_v35 = vld [vmem:[#allocation11 + $0x540] ss:$8 sps:$4 sm:$0xff]   ;;  %v12269_v38 = vld [vmem:[#allocation11 + $0x5d0] ss:$8 sps:$4 sm:$0xff]  }
 0x14f   : > { %10847 = vmatprep.subr.bf16.mxu1 %v12227_v54  ;;  %v12270_v39 = vld [vmem:[#allocation11 + $0x550] ss:$8 sps:$4 sm:$0xff]   ;;  %v12271_v40 = vld [vmem:[#allocation11 + $0x4e0] ss:$8 sps:$4 sm:$0xff]  }
 0x150   : > { %10826 = vmatpush3.bf16.msra.mxu0 %v12226_v53  ;;  %v12272_v41 = vld [vmem:[#allocation11 + $0x460] ss:$8 sps:$4 sm:$0xff]   ;;  %v12275_v44 = vld [vmem:[#allocation11 + $0x4f0] ss:$8 sps:$4 sm:$0xff]  }
 0x151   : > { %10827 = vmatprep.subr.bf16.mxu0 %v12229_v56  ;;  %v12273_v42 = vld [vmem:[#allocation11 + $0x5e0] ss:$8 sps:$4 sm:$0xff]   ;;  %v12276_v45 = vld [vmem:[#allocation11 + $0x470] ss:$8 sps:$4 sm:$0xff]  }
 0x152   : > { %10848 = vmatpush3.bf16.msra.mxu1 %v12228_v55  ;;  %v12274_v43 = vld [vmem:[#allocation11 + $0x560] ss:$8 sps:$4 sm:$0xff]   ;;  %v12277_v46 = vld [vmem:[#allocation11 + $0x5f0] ss:$8 sps:$4 sm:$0xff]  }
 0x153   : > { %10849 = vmatprep.subr.bf16.mxu1 %v12231_v58  ;;  %v661_v47 = vld [vmem:[%s13749_s17 + $0x20] sm:$0xff]  ;;  %v662_v52 = vld [vmem:[%s13749_s17 + $0x28] sm:$0xff] }
 0x154   : > { %10828 = vmatpush3.bf16.msra.mxu0 %v12230_v57  ;;  %v1205_v48 = vcombine.high %v661_v47, %v661_v47  ;;  %v12279_v49 = vld [vmem:[#allocation11 + $0x570] ss:$8 sps:$4 sm:$0xff]   ;;  %v1241_v50 = vpack.c.bf16 %v661_v47, %v661_v47  ;;  %v12280_v51 = vld [vmem:[#allocation11 + $0x680] ss:$8 sps:$4 sm:$0xff]   ;;  %v1206_v54 = vcombine.high %v662_v52, %v662_v52  ;;  %v1243_v56 = vpack.c.bf16 %v662_v52, %v662_v52 }
 0x155   : > { %10829 = vmatprep.subr.bf16.mxu0 %v12233_v60  ;;  %v12282_v55 = vld [vmem:[#allocation11 + $0x600] ss:$8 sps:$4 sm:$0xff]   ;;  %v12285_v60 = vld [vmem:[#allocation11 + $0x690] ss:$8 sps:$4 sm:$0xff]  }
 0x156   : > { %10850 = vmatpush3.bf16.msra.mxu1 %v12232_v59  ;;  %v1242_v53 = vpack.c.bf16 %v1205_v48, %v1205_v48  ;;  %v12283_v57 = vld [vmem:[#allocation11 + $0x780] ss:$8 sps:$4 sm:$0xff]   ;;  %v1244_v58 = vpack.c.bf16 %v1206_v54, %v1206_v54  ;;  %v12296_v7 = vld [vmem:[#allocation11 + $0x730] ss:$8 sps:$4 sm:$0xff]  }
 0x157   : > { %10851 = vmatprep.subr.bf16.mxu1 %v12235_v62  ;;  %v12284_v59 = vld [vmem:[#allocation11 + $0x700] ss:$8 sps:$4 sm:$0xff]   ;;  %v12287_v62 = vld [vmem:[#allocation11 + $0x790] ss:$8 sps:$4 sm:$0xff]  }
 0x158   : > { %10830 = vmatpush3.bf16.msra.mxu0 %v12234_v61  ;;  %v12286_v61 = vld [vmem:[#allocation11 + $0x610] ss:$8 sps:$4 sm:$0xff]   ;;  %v12297_v8 = vld [vmem:[#allocation11 + $0x6c0] ss:$8 sps:$4 sm:$0xff]  }
 0x159   : > { %10831 = vmatprep.subr.bf16.mxu0 %v12237_v0  ;;  %v12289_v0 = vld [vmem:[#allocation11 + $0x6a0] ss:$8 sps:$4 sm:$0xff]   ;;  %v12301_v12 = vld [vmem:[#allocation11 + $0x6d0] ss:$8 sps:$4 sm:$0xff]  }
 0x15a   : > { %10852 = vmatpush3.bf16.msra.mxu1 %v12236_v63  ;;  %v12288_v63 = vld [vmem:[#allocation11 + $0x710] ss:$8 sps:$4 sm:$0xff]   ;;  %v12307_v18 = vld [vmem:[#allocation11 + $0x7e0] ss:$8 sps:$4 sm:$0xff]  }
 0x15b   : > { %10853 = vmatprep.subr.bf16.mxu1 %v12239_v2  ;;  %v12291_v2 = vld [vmem:[#allocation11 + $0x7a0] ss:$8 sps:$4 sm:$0xff]   ;;  %v12302_v13 = vld [vmem:[#allocation11 + $0x650] ss:$8 sps:$4 sm:$0xff]  }
 0x15c   : > { %10832 = vmatpush3.bf16.msra.mxu0 %v12238_v1  ;;  %v12290_v1 = vld [vmem:[#allocation11 + $0x620] ss:$8 sps:$4 sm:$0xff]   ;;  %v12303_v14 = vld [vmem:[#allocation11 + $0x7d0] ss:$8 sps:$4 sm:$0xff]  }
 0x15d   : > { %10833 = vmatprep.subr.bf16.mxu0 %v12241_v4  ;;  %v12293_v4 = vld [vmem:[#allocation11 + $0x6b0] ss:$8 sps:$4 sm:$0xff]   ;;  %v12331_v48 = vld [vmem:[#allocation11 + $0x8c0] ss:$8 sps:$4 sm:$0xff]  }
 0x15e   : > { %10854 = vmatpush3.bf16.msra.mxu1 %v12240_v3  ;;  %v12292_v3 = vld [vmem:[#allocation11 + $0x720] ss:$8 sps:$4 sm:$0xff]   ;;  %v12330_v47 = vld [vmem:[#allocation11 + $0x930] ss:$8 sps:$4 sm:$0xff]  }
 0x15f   : > { %10855 = vmatprep.subr.bf16.mxu1 %v12243_v6  ;;  %v12295_v6 = vld [vmem:[#allocation11 + $0x7b0] ss:$8 sps:$4 sm:$0xff]  }
 0x160   : > { %10834 = vmatpush3.bf16.msra.mxu0 %v12242_v5  ;;  %v12294_v5 = vld [vmem:[#allocation11 + $0x630] ss:$8 sps:$4 sm:$0xff]  }
 0x161   : > { %10863 = vmatprep.subr.bf16.mxu0 %v12246_v11  ;;  %v12300_v11 = vld [vmem:[#allocation11 + $0x740] ss:$8 sps:$4 sm:$0xff]   ;;  %v12335_v52 = vld [vmem:[#allocation11 + $0x8d0] ss:$8 sps:$4 sm:$0xff]  }
 0x162   : > { %10856 = vmatpush3.bf16.msra.mxu1 %v12245_v9  ;;  %v12298_v9 = vld [vmem:[#allocation11 + $0x640] ss:$8 sps:$4 sm:$0xff]   ;;  %v12337_v54 = vld [vmem:[#allocation11 + $0x9d0] ss:$8 sps:$4 sm:$0xff]  }
 0x163   : > { %2918 = vmatmul.mubr.bf16.vlgmr.msra.gmra.mrb[4].mxu0 %v1237_v10  ;;  %10885 = vmatprep.subr.bf16.mxu1 %v12249_v17  ;;  %v12299_v10 = vld [vmem:[#allocation11 + $0x7c0] ss:$8 sps:$4 sm:$0xff]  }
 0x164   : > { %10864 = vmatpush3.bf16.msra.mxu0 %v12248_v15  ;;  %2997 = vmatprep.mubr.bf16.mxu0 %v1242_v53  ;;  %v12304_v15 = vld [vmem:[#allocation11 + $0x750] ss:$8 sps:$4 sm:$0xff]   ;;  %v12306_v17 = vld [vmem:[#allocation11 + $0x660] ss:$8 sps:$4 sm:$0xff]  }
 0x165   : > { %2958 = vmatmul.mubr.bf16.vlgmr.msra.gmra.mrb[4].mxu1 %v1239_v16  ;;  %10865 = vmatprep.subr.bf16.mxu0 %v12251_v20  ;;  %v12305_v16 = vld [vmem:[#allocation11 + $0x6e0] ss:$8 sps:$4 sm:$0xff]   ;;  %v12309_v20 = vld [vmem:[#allocation11 + $0x6f0] ss:$8 sps:$4 sm:$0xff]  }
 0x166   : > { %10886 = vmatpush3.bf16.msra.mxu1 %v12250_v19  ;;  %3037 = vmatprep.mubr.bf16.mxu1 %v1244_v58  ;;  %v12308_v19 = vld [vmem:[#allocation11 + $0x760] ss:$8 sps:$4 sm:$0xff]   ;;  %v12336_v53 = vld [vmem:[#allocation11 + $0x850] ss:$8 sps:$4 sm:$0xff]  }
 0x167   : > { %10887 = vmatprep.subr.bf16.mxu1 %v12253_v22  ;;  %v12311_v22 = vld [vmem:[#allocation11 + $0x7f0] ss:$8 sps:$4 sm:$0xff]   ;;  %v12341_v58 = vld [vmem:[#allocation11 + $0x9e0] ss:$8 sps:$4 sm:$0xff]  }
 0x168   : > { %10866 = vmatpush3.bf16.msra.mxu0 %v12252_v21  ;;  %v12310_v21 = vld [vmem:[#allocation11 + $0x670] ss:$8 sps:$4 sm:$0xff]  }
 0x169   : > { %10867 = vmatprep.subr.bf16.mxu0 %v12255_v24 }
 0x16a   : > { %10888 = vmatpush3.bf16.msra.mxu1 %v12254_v23  ;;  %v663_v23 = vld [vmem:[%s13749_s17 + $0x30] sm:$0xff] }
 0x16b   : > { %10889 = vmatprep.subr.bf16.mxu1 %v12257_v26  ;;  %v1207_v24 = vcombine.high %v663_v23, %v663_v23  ;;  %v1245_v26 = vpack.c.bf16 %v663_v23, %v663_v23  ;;  %v12364_v23 = vld [vmem:[#allocation11 + $0xb30] ss:$8 sps:$4 sm:$0xff]  }
 0x16c   : > { %10868 = vmatpush3.bf16.msra.mxu0 %v12256_v25  ;;  %v12313_v25 = vld [vmem:[#allocation11 + $0x770] ss:$8 sps:$4 sm:$0xff]  }
 0x16d   : > { %10869 = vmatprep.subr.bf16.mxu0 %v12259_v28  ;;  %v664_v28 = vld [vmem:[%s13749_s17 + $0x38] sm:$0xff] }
 0x16e   : > { %10890 = vmatpush3.bf16.msra.mxu1 %v12258_v27  ;;  %v12314_v27 = vld [vmem:[#allocation11 + $0x880] ss:$8 sps:$4 sm:$0xff]  }
 0x16f   : > { %10891 = vmatprep.subr.bf16.mxu1 %v12261_v30  ;;  %v1208_v30 = vcombine.high %v664_v28, %v664_v28 }
 0x170   : > { %10870 = vmatpush3.bf16.msra.mxu0 %v12260_v29  ;;  %v1246_v29 = vpack.c.bf16 %v1207_v24, %v1207_v24  ;;  %v12365_v24 = vld [vmem:[#allocation11 + $0xac0] ss:$8 sps:$4 sm:$0xff]  }
 0x171   : > { %10871 = vmatprep.subr.bf16.mxu0 %v12263_v32  ;;  %v1247_v32 = vpack.c.bf16 %v664_v28, %v664_v28  ;;  %v12369_v28 = vld [vmem:[#allocation11 + $0xad0] ss:$8 sps:$4 sm:$0xff]  }
 0x172   : > { %10892 = vmatpush3.bf16.msra.mxu1 %v12262_v31  ;;  %v12316_v31 = vld [vmem:[#allocation11 + $0x800] ss:$8 sps:$4 sm:$0xff]  }
 0x173   : > { %10893 = vmatprep.subr.bf16.mxu1 %v12265_v34  ;;  %v1248_v34 = vpack.c.bf16 %v1208_v30, %v1208_v30  ;;  %v12371_v30 = vld [vmem:[#allocation11 + $0xbd0] ss:$8 sps:$4 sm:$0xff]  }
 0x174   : > { %10872 = vmatpush3.bf16.msra.mxu0 %v12264_v33  ;;  %v12317_v33 = vld [vmem:[#allocation11 + $0x980] ss:$8 sps:$4 sm:$0xff]  }
 0x175   : > { %10873 = vmatprep.subr.bf16.mxu0 %v12267_v36  ;;  %v12319_v36 = vld [vmem:[#allocation11 + $0x890] ss:$8 sps:$4 sm:$0xff]  }
 0x176   : > { %10894 = vmatpush3.bf16.msra.mxu1 %v12266_v35  ;;  %v12318_v35 = vld [vmem:[#allocation11 + $0x900] ss:$8 sps:$4 sm:$0xff]  }
 0x177   : > { %10895 = vmatprep.subr.bf16.mxu1 %v12269_v38  ;;  %v12321_v38 = vld [vmem:[#allocation11 + $0x990] ss:$8 sps:$4 sm:$0xff]  }
 0x178   : > { %10874 = vmatpush3.bf16.msra.mxu0 %v12268_v37  ;;  %v12320_v37 = vld [vmem:[#allocation11 + $0x810] ss:$8 sps:$4 sm:$0xff]  }
 0x179   : > { %10875 = vmatprep.subr.bf16.mxu0 %v12271_v40  ;;  %v12323_v40 = vld [vmem:[#allocation11 + $0x8a0] ss:$8 sps:$4 sm:$0xff]  }
 0x17a   : > { %10896 = vmatpush3.bf16.msra.mxu1 %v12270_v39  ;;  %v12322_v39 = vld [vmem:[#allocation11 + $0x910] ss:$8 sps:$4 sm:$0xff]  }
 0x17b   : > { %10897 = vmatprep.subr.bf16.mxu1 %v12273_v42  ;;  %v12325_v42 = vld [vmem:[#allocation11 + $0x9a0] ss:$8 sps:$4 sm:$0xff]  }
 0x17c   : > { %10876 = vmatpush3.bf16.msra.mxu0 %v12272_v41  ;;  %v12324_v41 = vld [vmem:[#allocation11 + $0x820] ss:$8 sps:$4 sm:$0xff]  }
 0x17d   : > { %10877 = vmatprep.subr.bf16.mxu0 %v12275_v44  ;;  %v12327_v44 = vld [vmem:[#allocation11 + $0x8b0] ss:$8 sps:$4 sm:$0xff]  }
 0x17e   : > { %10898 = vmatpush3.bf16.msra.mxu1 %v12274_v43  ;;  %v12326_v43 = vld [vmem:[#allocation11 + $0x920] ss:$8 sps:$4 sm:$0xff]  }
 0x17f   : > { %10899 = vmatprep.subr.bf16.mxu1 %v12277_v46  ;;  %v12329_v46 = vld [vmem:[#allocation11 + $0x9b0] ss:$8 sps:$4 sm:$0xff]  }
 0x180   : > { %10878 = vmatpush3.bf16.msra.mxu0 %v12276_v45  ;;  %v12328_v45 = vld [vmem:[#allocation11 + $0x830] ss:$8 sps:$4 sm:$0xff]  }
 0x181   : > { %10907 = vmatprep.subr.bf16.mxu0 %v12280_v51  ;;  %v12334_v51 = vld [vmem:[#allocation11 + $0x940] ss:$8 sps:$4 sm:$0xff]  }
 0x182   : > { %10900 = vmatpush3.bf16.msra.mxu1 %v12279_v49  ;;  %v12332_v49 = vld [vmem:[#allocation11 + $0x840] ss:$8 sps:$4 sm:$0xff]  }
 0x183   : > { %2998 = vmatmul.mubr.bf16.vlgmr.msra.gmra.mrb[8].mxu0 %v1241_v50  ;;  %10929 = vmatprep.subr.bf16.mxu1 %v12283_v57  ;;  %v12333_v50 = vld [vmem:[#allocation11 + $0x9c0] ss:$8 sps:$4 sm:$0xff]  }
 0x184   : > { %10908 = vmatpush3.bf16.msra.mxu0 %v12282_v55  ;;  %3077 = vmatprep.mubr.bf16.mxu0 %v1246_v29  ;;  %v12338_v55 = vld [vmem:[#allocation11 + $0x950] ss:$8 sps:$4 sm:$0xff]   ;;  %v12340_v57 = vld [vmem:[#allocation11 + $0x860] ss:$8 sps:$4 sm:$0xff]  }
 0x185   : > { %3038 = vmatmul.mubr.bf16.vlgmr.msra.gmra.mrb[8].mxu1 %v1243_v56  ;;  %10909 = vmatprep.subr.bf16.mxu0 %v12285_v60  ;;  %v12339_v56 = vld [vmem:[#allocation11 + $0x8e0] ss:$8 sps:$4 sm:$0xff]   ;;  %v12343_v60 = vld [vmem:[#allocation11 + $0x8f0] ss:$8 sps:$4 sm:$0xff]  }
 0x186   : > { %10930 = vmatpush3.bf16.msra.mxu1 %v12284_v59  ;;  %3117 = vmatprep.mubr.bf16.mxu1 %v1248_v34  ;;  %v12342_v59 = vld [vmem:[#allocation11 + $0x960] ss:$8 sps:$4 sm:$0xff]   ;;  %v12370_v29 = vld [vmem:[#allocation11 + $0xa50] ss:$8 sps:$4 sm:$0xff]  }
 0x187   : > { %10931 = vmatprep.subr.bf16.mxu1 %v12287_v62  ;;  %v12345_v62 = vld [vmem:[#allocation11 + $0x9f0] ss:$8 sps:$4 sm:$0xff]   ;;  %v12375_v34 = vld [vmem:[#allocation11 + $0xbe0] ss:$8 sps:$4 sm:$0xff]  }
 0x188   : > { %10910 = vmatpush3.bf16.msra.mxu0 %v12286_v61  ;;  %v12344_v61 = vld [vmem:[#allocation11 + $0x870] ss:$8 sps:$4 sm:$0xff]  }
 0x189   : > { %10911 = vmatprep.subr.bf16.mxu0 %v12289_v0 }
 0x18a   : > { %10932 = vmatpush3.bf16.msra.mxu1 %v12288_v63  ;;  %v665_v63 = vld [vmem:[%s13749_s17 + $0x40] sm:$0xff] }
 0x18b   : > { %10933 = vmatprep.subr.bf16.mxu1 %v12291_v2  ;;  %v1209_v0 = vcombine.high %v665_v63, %v665_v63  ;;  %v1249_v2 = vpack.c.bf16 %v665_v63, %v665_v63  ;;  %v12396_v63 = vld [vmem:[#allocation11 + $0xc30] ss:$8 sps:$4 sm:$0xff]  }
 0x18c   : > { %10912 = vmatpush3.bf16.msra.mxu0 %v12290_v1  ;;  %v12347_v1 = vld [vmem:[#allocation11 + $0x970] ss:$8 sps:$4 sm:$0xff]  }
 0x18d   : > { %10913 = vmatprep.subr.bf16.mxu0 %v12293_v4  ;;  %v1250_v4 = vpack.c.bf16 %v1209_v0, %v1209_v0  ;;  %v12397_v0 = vld [vmem:[#allocation11 + $0xdb0] ss:$8 sps:$4 sm:$0xff]  }
 0x18e   : > { %10934 = vmatpush3.bf16.msra.mxu1 %v12292_v3  ;;  %v12348_v3 = vld [vmem:[#allocation11 + $0xa80] ss:$8 sps:$4 sm:$0xff]  }
 0x18f   : > { %10935 = vmatprep.subr.bf16.mxu1 %v12295_v6 }
 0x190   : > { %10914 = vmatpush3.bf16.msra.mxu0 %v12294_v5  ;;  %v666_v5 = vld [vmem:[%s13749_s17 + $0x48] sm:$0xff] }
 0x191   : > { %10915 = vmatprep.subr.bf16.mxu0 %v12297_v8  ;;  %v1210_v6 = vcombine.high %v666_v5, %v666_v5  ;;  %v1251_v8 = vpack.c.bf16 %v666_v5, %v666_v5  ;;  %v12402_v5 = vld [vmem:[#allocation11 + $0xd40] ss:$8 sps:$4 sm:$0xff]  }
 0x192   : > { %10936 = vmatpush3.bf16.msra.mxu1 %v12296_v7  ;;  %v12350_v7 = vld [vmem:[#allocation11 + $0xa00] ss:$8 sps:$4 sm:$0xff]  }
 0x193   : > { %10937 = vmatprep.subr.bf16.mxu1 %v12299_v10  ;;  %v1252_v10 = vpack.c.bf16 %v1210_v6, %v1210_v6  ;;  %v12403_v6 = vld [vmem:[#allocation11 + $0xcd0] ss:$8 sps:$4 sm:$0xff]  }
 0x194   : > { %10916 = vmatpush3.bf16.msra.mxu0 %v12298_v9  ;;  %v12351_v9 = vld [vmem:[#allocation11 + $0xb80] ss:$8 sps:$4 sm:$0xff]  }
 0x195   : > { %10917 = vmatprep.subr.bf16.mxu0 %v12301_v12  ;;  %v12353_v12 = vld [vmem:[#allocation11 + $0xa90] ss:$8 sps:$4 sm:$0xff]  }
 0x196   : > { %10938 = vmatpush3.bf16.msra.mxu1 %v12300_v11  ;;  %v12352_v11 = vld [vmem:[#allocation11 + $0xb00] ss:$8 sps:$4 sm:$0xff]  }
 0x197   : > { %10939 = vmatprep.subr.bf16.mxu1 %v12303_v14  ;;  %v12355_v14 = vld [vmem:[#allocation11 + $0xb90] ss:$8 sps:$4 sm:$0xff]  }
 0x198   : > { %10918 = vmatpush3.bf16.msra.mxu0 %v12302_v13  ;;  %v12354_v13 = vld [vmem:[#allocation11 + $0xa10] ss:$8 sps:$4 sm:$0xff]  }
 0x199   : > { %10919 = vmatprep.subr.bf16.mxu0 %v12305_v16  ;;  %v12357_v16 = vld [vmem:[#allocation11 + $0xaa0] ss:$8 sps:$4 sm:$0xff]  }
 0x19a   : > { %10940 = vmatpush3.bf16.msra.mxu1 %v12304_v15  ;;  %v12356_v15 = vld [vmem:[#allocation11 + $0xb10] ss:$8 sps:$4 sm:$0xff]  }
 0x19b   : > { %10941 = vmatprep.subr.bf16.mxu1 %v12307_v18  ;;  %v12359_v18 = vld [vmem:[#allocation11 + $0xba0] ss:$8 sps:$4 sm:$0xff]  }
 0x19c   : > { %10920 = vmatpush3.bf16.msra.mxu0 %v12306_v17  ;;  %v12358_v17 = vld [vmem:[#allocation11 + $0xa20] ss:$8 sps:$4 sm:$0xff]  }
 0x19d   : > { %10921 = vmatprep.subr.bf16.mxu0 %v12309_v20  ;;  %v12361_v20 = vld [vmem:[#allocation11 + $0xab0] ss:$8 sps:$4 sm:$0xff]  }
 0x19e   : > { %10942 = vmatpush3.bf16.msra.mxu1 %v12308_v19  ;;  %v12360_v19 = vld [vmem:[#allocation11 + $0xb20] ss:$8 sps:$4 sm:$0xff]  }
 0x19f   : > { %10943 = vmatprep.subr.bf16.mxu1 %v12311_v22  ;;  %v12363_v22 = vld [vmem:[#allocation11 + $0xbb0] ss:$8 sps:$4 sm:$0xff]  }
 0x1a0   : > { %10922 = vmatpush3.bf16.msra.mxu0 %v12310_v21  ;;  %v12362_v21 = vld [vmem:[#allocation11 + $0xa30] ss:$8 sps:$4 sm:$0xff]  }
 0x1a1   : > { %10951 = vmatprep.subr.bf16.mxu0 %v12314_v27  ;;  %v12368_v27 = vld [vmem:[#allocation11 + $0xb40] ss:$8 sps:$4 sm:$0xff]  }
 0x1a2   : > { %10944 = vmatpush3.bf16.msra.mxu1 %v12313_v25  ;;  %v12366_v25 = vld [vmem:[#allocation11 + $0xa40] ss:$8 sps:$4 sm:$0xff]  }
 0x1a3   : > { %3078 = vmatmul.mubr.bf16.vlgmr.msra.gmra.mrb[12].mxu0 %v1245_v26  ;;  %10973 = vmatprep.subr.bf16.mxu1 %v12317_v33  ;;  %v12367_v26 = vld [vmem:[#allocation11 + $0xbc0] ss:$8 sps:$4 sm:$0xff]  }
 0x1a4   : > { %10952 = vmatpush3.bf16.msra.mxu0 %v12316_v31  ;;  %3157 = vmatprep.mubr.bf16.mxu0 %v1250_v4  ;;  %v12372_v31 = vld [vmem:[#allocation11 + $0xb50] ss:$8 sps:$4 sm:$0xff]   ;;  %v12374_v33 = vld [vmem:[#allocation11 + $0xa60] ss:$8 sps:$4 sm:$0xff]  }
 0x1a5   : > { %3118 = vmatmul.mubr.bf16.vlgmr.msra.gmra.mrb[12].mxu1 %v1247_v32  ;;  %10953 = vmatprep.subr.bf16.mxu0 %v12319_v36  ;;  %v12373_v32 = vld [vmem:[#allocation11 + $0xae0] ss:$8 sps:$4 sm:$0xff]   ;;  %v12377_v36 = vld [vmem:[#allocation11 + $0xaf0] ss:$8 sps:$4 sm:$0xff]  }
 0x1a6   : > { %10974 = vmatpush3.bf16.msra.mxu1 %v12318_v35  ;;  %3197 = vmatprep.mubr.bf16.mxu1 %v1252_v10  ;;  %v12376_v35 = vld [vmem:[#allocation11 + $0xb60] ss:$8 sps:$4 sm:$0xff]  }
 0x1a7   : > { %10975 = vmatprep.subr.bf16.mxu1 %v12321_v38  ;;  %v12378_v38 = vld [vmem:[#allocation11 + $0xa70] ss:$8 sps:$4 sm:$0xff]   ;;  %v12401_v4 = vld [vmem:[#allocation11 + $0xdc0] ss:$8 sps:$4 sm:$0xff]  }
 0x1a8   : > { %10954 = vmatpush3.bf16.msra.mxu0 %v12320_v37  ;;  %v566_v37 = vlaneseq  ;;  %v12407_v10 = vld [vmem:[#allocation11 + $0xce0] ss:$8 sps:$4 sm:$0xff]  }
 0x1a9   : > { %10955 = vmatprep.subr.bf16.mxu0 %v12323_v40  ;;  %v667_v40 = vld [vmem:[%s13749_s17 + $0x50] sm:$0xff] }
 0x1aa   : > { %10976 = vmatpush3.bf16.msra.mxu1 %v12322_v39  ;;  %v12379_v39 = vld [vmem:[#allocation11 + $0xbf0] ss:$8 sps:$4 sm:$0xff]  }
 0x1ab   : > { %10977 = vmatprep.subr.bf16.mxu1 %v12325_v42  ;;  %v12381_v42 = vld [vmem:[#allocation11 + $0xb70] ss:$8 sps:$4 sm:$0xff]  }
 0x1ac   : > { %10956 = vmatpush3.bf16.msra.mxu0 %v12324_v41  ;;  %v1211_v41 = vcombine.high %v667_v40, %v667_v40 }
 0x1ad   : > { %10957 = vmatprep.subr.bf16.mxu0 %v12327_v44  ;;  %v12382_v44 = vld [vmem:[#allocation11 + $0xc80] ss:$8 sps:$4 sm:$0xff]  }
 0x1ae   : > { %10978 = vmatpush3.bf16.msra.mxu1 %v12326_v43  ;;  %v1253_v43 = vpack.c.bf16 %v667_v40, %v667_v40  ;;  %v12429_v40 = vld [vmem:[#allocation11 + $0xeb0] ss:$8 sps:$4 sm:$0xff]  }
 0x1af   : > { %10979 = vmatprep.subr.bf16.mxu1 %v12329_v46  ;;  %v13789_v46 = vshrl.u32 %v566_v37, 7 }
 0x1b0   : > { %10958 = vmatpush3.bf16.msra.mxu0 %v12328_v45  ;;  %v668_v45 = vld [vmem:[%s13749_s17 + $0x58] sm:$0xff] }
 0x1b1   : > { %10959 = vmatprep.subr.bf16.mxu0 %v12331_v48  ;;  %v1212_v48 = vcombine.high %v668_v45, %v668_v45 }
 0x1b2   : > { %10980 = vmatpush3.bf16.msra.mxu1 %v12330_v47  ;;  %v1254_v47 = vpack.c.bf16 %v1211_v41, %v1211_v41  ;;  %v12430_v41 = vld [vmem:[#allocation11 + $0xe30] ss:$8 sps:$4 sm:$0xff]  }
 0x1b3   : > { %10981 = vmatprep.subr.bf16.mxu1 %v12333_v50  ;;  %v1255_v50 = vpack.c.bf16 %v668_v45, %v668_v45  ;;  %v12434_v45 = vld [vmem:[#allocation11 + $0xe40] ss:$8 sps:$4 sm:$0xff]  }
 0x1b4   : > { %10960 = vmatpush3.bf16.msra.mxu0 %v12332_v49  ;;  %v12384_v49 = vld [vmem:[#allocation11 + $0xc00] ss:$8 sps:$4 sm:$0xff]  }
 0x1b5   : > { %10961 = vmatprep.subr.bf16.mxu0 %v12335_v52  ;;  %v1256_v52 = vpack.c.bf16 %v1212_v48, %v1212_v48 }
 0x1b6   : > { %10982 = vmatpush3.bf16.msra.mxu1 %v12334_v51  ;;  %v12385_v51 = vld [vmem:[#allocation11 + $0xd80] ss:$8 sps:$4 sm:$0xff]  }
 0x1b7   : > { %10983 = vmatprep.subr.bf16.mxu1 %v12337_v54  ;;  %v12387_v54 = vld [vmem:[#allocation11 + $0xc90] ss:$8 sps:$4 sm:$0xff]  }
 0x1b8   : > { %10962 = vmatpush3.bf16.msra.mxu0 %v12336_v53  ;;  %v12386_v53 = vld [vmem:[#allocation11 + $0xd00] ss:$8 sps:$4 sm:$0xff]  }
 0x1b9   : > { %10963 = vmatprep.subr.bf16.mxu0 %v12339_v56  ;;  %v12389_v56 = vld [vmem:[#allocation11 + $0xd90] ss:$8 sps:$4 sm:$0xff]  }
 0x1ba   : > { %10984 = vmatpush3.bf16.msra.mxu1 %v12338_v55  ;;  %v12388_v55 = vld [vmem:[#allocation11 + $0xc10] ss:$8 sps:$4 sm:$0xff]  }
 0x1bb   : > { %10985 = vmatprep.subr.bf16.mxu1 %v12341_v58  ;;  %v12391_v58 = vld [vmem:[#allocation11 + $0xca0] ss:$8 sps:$4 sm:$0xff]  }
 0x1bc   : > { %10964 = vmatpush3.bf16.msra.mxu0 %v12340_v57  ;;  %v12390_v57 = vld [vmem:[#allocation11 + $0xd10] ss:$8 sps:$4 sm:$0xff]  }
 0x1bd   : > { %10965 = vmatprep.subr.bf16.mxu0 %v12343_v60  ;;  %v12393_v60 = vld [vmem:[#allocation11 + $0xda0] ss:$8 sps:$4 sm:$0xff]  }
 0x1be   : > { %10986 = vmatpush3.bf16.msra.mxu1 %v12342_v59  ;;  %v12392_v59 = vld [vmem:[#allocation11 + $0xc20] ss:$8 sps:$4 sm:$0xff]  }
 0x1bf   : > { %10987 = vmatprep.subr.bf16.mxu1 %v12345_v62  ;;  %v12395_v62 = vld [vmem:[#allocation11 + $0xcb0] ss:$8 sps:$4 sm:$0xff]  }
 0x1c0   : > { %10966 = vmatpush3.bf16.msra.mxu0 %v12344_v61  ;;  %v12394_v61 = vld [vmem:[#allocation11 + $0xd20] ss:$8 sps:$4 sm:$0xff]  }
 0x1c1   : > { %10995 = vmatprep.subr.bf16.mxu0 %v12348_v3  ;;  %v12400_v3 = vld [vmem:[#allocation11 + $0xc40] ss:$8 sps:$4 sm:$0xff]  }
 0x1c2   : > { %10988 = vmatpush3.bf16.msra.mxu1 %v12347_v1  ;;  %v12398_v1 = vld [vmem:[#allocation11 + $0xd30] ss:$8 sps:$4 sm:$0xff]  }
 0x1c3   : > { %3158 = vmatmul.mubr.bf16.vlgmr.msra.gmra.mrb[16].mxu0 %v1249_v2  ;;  %11017 = vmatprep.subr.bf16.mxu1 %v12351_v9  ;;  %v12399_v2 = vld [vmem:[#allocation11 + $0xcc0] ss:$8 sps:$4 sm:$0xff]   ;;  %v12406_v9 = vld [vmem:[#allocation11 + $0xd50] ss:$8 sps:$4 sm:$0xff]  }
 0x1c4   : > { %10996 = vmatpush3.bf16.msra.mxu0 %v12350_v7  ;;  %3237 = vmatprep.mubr.bf16.mxu0 %v1254_v47  ;;  %v12404_v7 = vld [vmem:[#allocation11 + $0xc50] ss:$8 sps:$4 sm:$0xff]   ;;  %v12435_v47 = vld [vmem:[#allocation11 + $0xfc0] ss:$8 sps:$4 sm:$0xff]  }
 0x1c5   : > { %3198 = vmatmul.mubr.bf16.vlgmr.msra.gmra.mrb[16].mxu1 %v1251_v8  ;;  %10997 = vmatprep.subr.bf16.mxu0 %v12353_v12  ;;  %v12405_v8 = vld [vmem:[#allocation11 + $0xdd0] ss:$8 sps:$4 sm:$0xff]   ;;  %v12409_v12 = vld [vmem:[#allocation11 + $0xde0] ss:$8 sps:$4 sm:$0xff]  }
 0x1c6   : > { %11018 = vmatpush3.bf16.msra.mxu1 %v12352_v11  ;;  %3277 = vmatprep.mubr.bf16.mxu1 %v1256_v52  ;;  %v12408_v11 = vld [vmem:[#allocation11 + $0xc60] ss:$8 sps:$4 sm:$0xff]  }
 0x1c7   : > { %11019 = vmatprep.subr.bf16.mxu1 %v12355_v14  ;;  %v12411_v14 = vld [vmem:[#allocation11 + $0xcf0] ss:$8 sps:$4 sm:$0xff]  }
 0x1c8   : > { %10998 = vmatpush3.bf16.msra.mxu0 %v12354_v13  ;;  %v12410_v13 = vld [vmem:[#allocation11 + $0xd60] ss:$8 sps:$4 sm:$0xff]  }
 0x1c9   : > { %10999 = vmatprep.subr.bf16.mxu0 %v12357_v16  ;;  %v12413_v16 = vld [vmem:[#allocation11 + $0xdf0] ss:$8 sps:$4 sm:$0xff]  }
 0x1ca   : > { %11020 = vmatpush3.bf16.msra.mxu1 %v12356_v15  ;;  %v12412_v15 = vld [vmem:[#allocation11 + $0xc70] ss:$8 sps:$4 sm:$0xff]  }
 0x1cb   : > { %11021 = vmatprep.subr.bf16.mxu1 %v12359_v18 }
 0x1cc   : > { %11000 = vmatpush3.bf16.msra.mxu0 %v12358_v17  ;;  %v669_v17 = vld [vmem:[%s13749_s17 + $0x60] sm:$0xff] }
 0x1cd   : > { %11001 = vmatprep.subr.bf16.mxu0 %v12361_v20  ;;  %v1213_v18 = vcombine.high %v669_v17, %v669_v17  ;;  %v1257_v20 = vpack.c.bf16 %v669_v17, %v669_v17  ;;  %v12452_v17 = vld [vmem:[#allocation11 + $0x4] ss:$8 sps:$4 sm:$0xff]  }
 0x1ce   : > { %11022 = vmatpush3.bf16.msra.mxu1 %v12360_v19  ;;  %v12415_v19 = vld [vmem:[#allocation11 + $0xd70] ss:$8 sps:$4 sm:$0xff]  }
 0x1cf   : > { %11023 = vmatprep.subr.bf16.mxu1 %v12363_v22  ;;  %v670_v22 = vld [vmem:[%s13749_s17 + $0x68] sm:$0xff] }
 0x1d0   : > { %11002 = vmatpush3.bf16.msra.mxu0 %v12362_v21  ;;  %v12416_v21 = vld [vmem:[#allocation11 + $0xe80] ss:$8 sps:$4 sm:$0xff]  }
 0x1d1   : > { %11003 = vmatprep.subr.bf16.mxu0 %v12365_v24  ;;  %v1258_v24 = vpack.c.bf16 %v1213_v18, %v1213_v18 }
 0x1d2   : > { %11024 = vmatpush3.bf16.msra.mxu1 %v12364_v23  ;;  %v1267_v23 = vsub.s32 1, %v13789_v46 }
 0x1d3   : > { %11025 = vmatprep.subr.bf16.mxu1 %v12367_v26  ;;  %v12418_v26 = vld [vmem:[#allocation11 + $0xe00] ss:$8 sps:$4 sm:$0xff]  }
 0x1d4   : > { %11004 = vmatpush3.bf16.msra.mxu0 %v12366_v25  ;;  %v1214_v25 = vcombine.high %v670_v22, %v670_v22 }
 0x1d5   : > { %11005 = vmatprep.subr.bf16.mxu0 %v12369_v28  ;;  %v12419_v28 = vld [vmem:[#allocation11 + $0xf80] ss:$8 sps:$4 sm:$0xff]  }
 0x1d6   : > { %11026 = vmatpush3.bf16.msra.mxu1 %v12368_v27  ;;  %v1259_v27 = vpack.c.bf16 %v670_v22, %v670_v22  ;;  %v12455_v22 = vld [vmem:[#allocation11 + $0x94] ss:$8 sps:$4 sm:$0xff]  }
 0x1d7   : > { %11027 = vmatprep.subr.bf16.mxu1 %v12371_v30  ;;  %v12420_v30 = vld [vmem:[#allocation11 + $0xf00] ss:$8 sps:$4 sm:$0xff]  }
 0x1d8   : > { %11006 = vmatpush3.bf16.msra.mxu0 %v12370_v29  ;;  %v1260_v29 = vpack.c.bf16 %v1214_v25, %v1214_v25  ;;  %v12458_v25 = vld [vmem:[#allocation11 + $0x114] ss:$8 sps:$4 sm:$0xff]  }
 0x1d9   : > { %11007 = vmatprep.subr.bf16.mxu0 %v12373_v32  ;;  %v12422_v32 = vld [vmem:[#allocation11 + $0xe10] ss:$8 sps:$4 sm:$0xff]  }
 0x1da   : > { %11028 = vmatpush3.bf16.msra.mxu1 %v12372_v31  ;;  %v12421_v31 = vld [vmem:[#allocation11 + $0xe90] ss:$8 sps:$4 sm:$0xff]  }
 0x1db   : > { %11029 = vmatprep.subr.bf16.mxu1 %v12375_v34  ;;  %v12424_v34 = vld [vmem:[#allocation11 + $0xf10] ss:$8 sps:$4 sm:$0xff]  }
 0x1dc   : > { %11008 = vmatpush3.bf16.msra.mxu0 %v12374_v33  ;;  %v12423_v33 = vld [vmem:[#allocation11 + $0xf90] ss:$8 sps:$4 sm:$0xff]  }
 0x1dd   : > { %11009 = vmatprep.subr.bf16.mxu0 %v12377_v36  ;;  %v12426_v36 = vld [vmem:[#allocation11 + $0xe20] ss:$8 sps:$4 sm:$0xff]  }
 0x1de   : > { %11030 = vmatpush3.bf16.msra.mxu1 %v12376_v35  ;;  %v12425_v35 = vld [vmem:[#allocation11 + $0xea0] ss:$8 sps:$4 sm:$0xff]  }
 0x1df   : > { %11031 = vmatprep.subr.bf16.mxu1 %v12379_v39  ;;  %v12428_v39 = vld [vmem:[#allocation11 + $0xf20] ss:$8 sps:$4 sm:$0xff]  }
 0x1e0   : > { %11010 = vmatpush3.bf16.msra.mxu0 %v12378_v38  ;;  %v12427_v38 = vld [vmem:[#allocation11 + $0xfa0] ss:$8 sps:$4 sm:$0xff]  }
 0x1e1   : > { %11039 = vmatprep.subr.bf16.mxu0 %v12382_v44  ;;  %v12433_v44 = vld [vmem:[#allocation11 + $0xec0] ss:$8 sps:$4 sm:$0xff]  }
 0x1e2   : > { %11032 = vmatpush3.bf16.msra.mxu1 %v12381_v42  ;;  %v12431_v42 = vld [vmem:[#allocation11 + $0xfb0] ss:$8 sps:$4 sm:$0xff]  }
 0x1e3   : > { %3238 = vmatmul.mubr.bf16.vlgmr.msra.gmra.mrb[20].mxu0 %v1253_v43  ;;  %11061 = vmatprep.subr.bf16.mxu1 %v12385_v51  ;;  %v12432_v43 = vld [vmem:[#allocation11 + $0xf30] ss:$8 sps:$4 sm:$0xff]  }
 0x1e4   : > { %11040 = vmatpush3.bf16.msra.mxu0 %v12384_v49  ;;  %3317 = vmatprep.mubr.bf16.mxu0 %v1258_v24  ;;  %v12436_v49 = vld [vmem:[#allocation11 + $0xf40] ss:$8 sps:$4 sm:$0xff]   ;;  %v12457_v24 = vld [vmem:[#allocation11 + $0x194] ss:$8 sps:$4 sm:$0xff]  }
 0x1e5   : > { %3278 = vmatmul.mubr.bf16.vlgmr.msra.gmra.mrb[20].mxu1 %v1255_v50  ;;  %11041 = vmatprep.subr.bf16.mxu0 %v12387_v54  ;;  %v557_v50 = vld [vmem:[#allocation16] sm:$0xff] }
 0x1e6   : > { %11062 = vmatpush3.bf16.msra.mxu1 %v12386_v53  ;;  %3357 = vmatprep.mubr.bf16.mxu1 %v1260_v29  ;;  %v1268_v51 = vrot.slane %v557_v50, %v1267_v23  ;;  %v671_v53 = vld [vmem:[%s13749_s17 + $0x70] sm:$0xff]  ;;  %v12456_v23 = vld [vmem:[#allocation11 + $0x14] ss:$8 sps:$4 sm:$0xff]  }
 0x1e7   : > { %11063 = vmatprep.subr.bf16.mxu1 %v12389_v56  ;;  %v12462_v29 = vld [vmem:[#allocation11 + $0x124] ss:$8 sps:$4 sm:$0xff]  }
 0x1e8   : > { %11042 = vmatpush3.bf16.msra.mxu0 %v12388_v55  ;;  %v12437_v55 = vld [vmem:[#allocation11 + $0xed0] ss:$8 sps:$4 sm:$0xff]  }
 0x1e9   : > { %11043 = vmatprep.subr.bf16.mxu0 %v12391_v58  ;;  %v1215_v58 = vcombine.high %v671_v53, %v671_v53 }
 0x1ea   : > { %11064 = vmatpush3.bf16.msra.mxu1 %v12390_v57 }
 0x1eb   : > { %11065 = vmatprep.subr.bf16.mxu1 %v12393_v60 }
 0x1ec   : > { %11044 = vmatpush3.bf16.msra.mxu0 %v12392_v59  ;;  %v12438_v59 = vld [vmem:[#allocation11 + $0xe50] ss:$8 sps:$4 sm:$0xff]  }
 0x1ed   : > { %11045 = vmatprep.subr.bf16.mxu0 %v12395_v62 }
 0x1ee   : > { %11066 = vmatpush3.bf16.msra.mxu1 %v12394_v61 }
 0x1ef   : > { %11067 = vmatprep.subr.bf16.mxu1 %v12397_v0  ;;  %v12439_v0 = vld [vmem:[#allocation11 + $0xfd0] ss:$8 sps:$4 sm:$0xff]  }
 0x1f0   : > { %11046 = vmatpush3.bf16.msra.mxu0 %v12396_v63 }
 0x1f1   : > { %11047 = vmatprep.subr.bf16.mxu0 %v12399_v2  ;;  %v12440_v2 = vld [vmem:[#allocation11 + $0xf50] ss:$8 sps:$4 sm:$0xff]  }
 0x1f2   : > { %11068 = vmatpush3.bf16.msra.mxu1 %v12398_v1  ;;  %v1262_v1 = vpack.c.bf16 %v1215_v58, %v1215_v58  ;;  %v3446_v58 = vld [vmem:[%s13757_s11 + $0x8] sm:$0xff] }
 0x1f3   : > { %11069 = vmatprep.subr.bf16.mxu1 %v12401_v4  ;;  %v12441_v4 = vld [vmem:[#allocation11 + $0xee0] ss:$8 sps:$4 sm:$0xff]  }
 0x1f4   : > { %11048 = vmatpush3.bf16.msra.mxu0 %v12400_v3 }
 0x1f5   : > { %11049 = vmatprep.subr.bf16.mxu0 %v12403_v6  ;;  %v12443_v6 = vld [vmem:[#allocation11 + $0xfe0] ss:$8 sps:$4 sm:$0xff]  }
 0x1f6   : > { %11070 = vmatpush3.bf16.msra.mxu1 %v12402_v5  ;;  %v12442_v5 = vld [vmem:[#allocation11 + $0xe60] ss:$8 sps:$4 sm:$0xff]  }
 0x1f7   : > { %11071 = vmatprep.subr.bf16.mxu1 %v12405_v8  ;;  %v12445_v8 = vld [vmem:[#allocation11 + $0xef0] ss:$8 sps:$4 sm:$0xff]  }
 0x1f8   : > { %11050 = vmatpush3.bf16.msra.mxu0 %v12404_v7  ;;  %v12444_v7 = vld [vmem:[#allocation11 + $0xf60] ss:$8 sps:$4 sm:$0xff]  }
 0x1f9   : > { %11051 = vmatprep.subr.bf16.mxu0 %v12407_v10  ;;  %v12447_v10 = vld [vmem:[#allocation11 + $0xff0] ss:$8 sps:$4 sm:$0xff]  }
 0x1fa   : > { %11072 = vmatpush3.bf16.msra.mxu1 %v12406_v9  ;;  %v12446_v9 = vld [vmem:[#allocation11 + $0xe70] ss:$8 sps:$4 sm:$0xff]  }
 0x1fb   : > { %11073 = vmatprep.subr.bf16.mxu1 %v12409_v12  ;;  %v12449_v12 = vld [vmem:[#allocation11 + $0xf70] ss:$8 sps:$4 sm:$0xff]  }
 0x1fc   : > { %11052 = vmatpush3.bf16.msra.mxu0 %v12408_v11  ;;  %v1261_v11 = vpack.c.bf16 %v671_v53, %v671_v53  ;;  %v12474_v53 = vld [vmem:[#allocation11 + $0x154] ss:$8 sps:$4 sm:$0xff]  }
 0x1fd   : > { %11053 = vmatprep.subr.bf16.mxu0 %v12411_v14  ;;  %v672_v14 = vld [vmem:[%s13749_s17 + $0x78] sm:$0xff]  ;;  %s14454_s17 = sld [smem:[#allocation36_spill]] }
 0x1fe   : > { %11074 = vmatpush3.bf16.msra.mxu1 %v12410_v13  ;;  %v12450_v13 = vld [vmem:[#allocation11 + $0x84] ss:$8 sps:$4 sm:$0xff]   ;;  %v1263_v18 = vpack.c.bf16 %v672_v14, %v672_v14 }
 0x1ff   : > { %11075 = vmatprep.subr.bf16.mxu1 %v12413_v16  ;;  %v1216_v16 = vcombine.high %v672_v14, %v672_v14 }
 0x200   : > { %11054 = vmatpush3.bf16.msra.mxu0 %v12412_v15 }
 0x201   : > { %11083 = vmatprep.subr.bf16.mxu0 %v12416_v21  ;;  %v12454_v21 = vld [vmem:[#allocation11 + $0x104] ss:$8 sps:$4 sm:$0xff]  }
 0x202   : > { %11076 = vmatpush3.bf16.msra.mxu1 %v12415_v19  ;;  %v12453_v19 = vld [vmem:[#allocation11 + $0x184] ss:$8 sps:$4 sm:$0xff]  }
 0x203   : > { %3318 = vmatmul.mubr.bf16.vlgmr.msra.gmra.mrb[24].mxu0 %v1257_v20  ;;  %11105 = vmatprep.subr.bf16.mxu1 %v12419_v28  ;;  %v1264_v20 = vpack.c.bf16 %v1216_v16, %v1216_v16  ;;  %v12461_v28 = vld [vmem:[#allocation11 + $0x1a4] ss:$8 sps:$4 sm:$0xff]   ;;  %s14455_s24 = smov %s14454_s17  ;;  %s14299_s28 = scalar_lea.hbm %s14454_s17, %s10770_s5 }
 0x204   : > { %11084 = vmatpush3.bf16.msra.mxu0 %v12418_v26  ;;  %3397 = vmatprep.mubr.bf16.mxu0 %v1262_v1  ;;  %v12459_v26 = vld [vmem:[#allocation11 + $0xa4] ss:$8 sps:$4 sm:$0xff]  }
 0x205   : > { %3358 = vmatmul.mubr.bf16.vlgmr.msra.gmra.mrb[24].mxu1 %v1259_v27  ;;  %11085 = vmatprep.subr.bf16.mxu0 %v12421_v31  ;;  %v12460_v27 = vld [vmem:[#allocation11 + $0x24] ss:$8 sps:$4 sm:$0xff]   ;;  %v12464_v31 = vld [vmem:[#allocation11 + $0x34] ss:$8 sps:$4 sm:$0xff]  }
 0x206   : > { %11106 = vmatpush3.bf16.msra.mxu1 %v12420_v30  ;;  %3437 = vmatprep.mubr.bf16.mxu1 %v1264_v20  ;;  %v12463_v30 = vld [vmem:[#allocation11 + $0xb4] ss:$8 sps:$4 sm:$0xff]   ;;  %v12486_v16 = vld [vmem:[#allocation11 + $0x304] ss:$8 sps:$4 sm:$0xff]  }
 0x207   : > { %11107 = vmatprep.subr.bf16.mxu1 %v12423_v33  ;;  %v12466_v33 = vld [vmem:[#allocation11 + $0x134] ss:$8 sps:$4 sm:$0xff]  }
 0x208   : > { %11086 = vmatpush3.bf16.msra.mxu0 %v12422_v32  ;;  %v12465_v32 = vld [vmem:[#allocation11 + $0x1b4] ss:$8 sps:$4 sm:$0xff]  }
 0x209   : > { %11087 = vmatprep.subr.bf16.mxu0 %v12425_v35  ;;  %v12468_v35 = vld [vmem:[#allocation11 + $0x44] ss:$8 sps:$4 sm:$0xff]   ;;  %v12490_v20 = vld [vmem:[#allocation11 + $0x314] ss:$8 sps:$4 sm:$0xff]  }
 0x20a   : > { %11108 = vmatpush3.bf16.msra.mxu1 %v12424_v34  ;;  %v12467_v34 = vld [vmem:[#allocation11 + $0xc4] ss:$8 sps:$4 sm:$0xff]  }
 0x20b   : > { %11109 = vmatprep.subr.bf16.mxu1 %v12427_v38 }
 0x20c   : > { %11088 = vmatpush3.bf16.msra.mxu0 %v12426_v36  ;;  %v12469_v36 = vld [vmem:[#allocation11 + $0x1c4] ss:$8 sps:$4 sm:$0xff]  }
 0x20d   : > { %11089 = vmatprep.subr.bf16.mxu0 %v12429_v40  ;;  %v12470_v40 = vld [vmem:[#allocation11 + $0x144] ss:$8 sps:$4 sm:$0xff]  }
 0x20e   : > { %11110 = vmatpush3.bf16.msra.mxu1 %v12428_v39 }
 0x20f   : > { %11111 = vmatprep.subr.bf16.mxu1 %v12431_v42 }
 0x210   : > { %11090 = vmatpush3.bf16.msra.mxu0 %v12430_v41 }
 0x211   : > { %11091 = vmatprep.subr.bf16.mxu0 %v12433_v44 }
 0x212   : > { %11112 = vmatpush3.bf16.msra.mxu1 %v12432_v43  ;;  %v12471_v43 = vld [vmem:[#allocation11 + $0xd4] ss:$8 sps:$4 sm:$0xff]  }
 0x213   : > { %11113 = vmatprep.subr.bf16.mxu1 %v12435_v47 }
 0x214   : > { %11092 = vmatpush3.bf16.msra.mxu0 %v12434_v45 }
 0x215   : > { %11093 = vmatprep.subr.bf16.mxu0 %v12437_v55  ;;  %v12475_v55 = vld [vmem:[#allocation11 + $0xe4] ss:$8 sps:$4 sm:$0xff]  }
 0x216   : > { %v10791_v48 = vpop.f32.mrb[0].mxu0  ;;  %11114 = vmatpush3.bf16.msra.mxu1 %v12436_v49 }
 0x217   : > { %v10792_v52 = vpop.f32.mrb[1].mxu0  ;;  %11115 = vmatprep.subr.bf16.mxu1 %v12439_v0 }
 0x218   : > { %v10793_v54 = vadd.f32 %v10792_v52, %v10791_v48  ;;  %v10794_v56 = vpop.f32.mrb[2].mxu0  ;;  %v10813_v57 = vpop.f32.mrb[0].mxu1  ;;  %11094 = vmatpush3.bf16.msra.mxu0 %v12438_v59  ;;  %v12472_v48 = vld [vmem:[#allocation11 + $0x54] ss:$8 sps:$4 sm:$0xff]   ;;  %v12478_v59 = vld [vmem:[#allocation11 + $0x164] ss:$8 sps:$4 sm:$0xff]  }
 0x219   : > { %v10795_v60 = vpop.f32.mrb[3].mxu0  ;;  %v10814_v61 = vpop.f32.mrb[1].mxu1  ;;  %11095 = vmatprep.subr.bf16.mxu0 %v12441_v4  ;;  %v12473_v52 = vld [vmem:[#allocation11 + $0x1d4] ss:$8 sps:$4 sm:$0xff]   ;;  %v12476_v56 = vld [vmem:[#allocation11 + $0x64] ss:$8 sps:$4 sm:$0xff]  }
 0x21a   : > { %v2840_v62 = vadd.f32 %v10793_v54, %v1268_v51  ;;  %v10815_v63 = vadd.f32 %v10814_v61, %v10813_v57  ;;  %11116 = vmatpush3.bf16.msra.mxu1 %v12440_v2  ;;  %v10816_v15 = vpop.f32.mrb[2].mxu1  ;;  %v12477_v57 = vld [vmem:[#allocation11 + $0x1e4] ss:$8 sps:$4 sm:$0xff]   ;;  %v12479_v60 = vld [vmem:[#allocation11 + $0xf4] ss:$8 sps:$4 sm:$0xff]  }
 0x21b   : > { %11117 = vmatprep.subr.bf16.mxu1 %v12443_v6  ;;  %v10817_v39 = vpop.f32.mrb[3].mxu1  ;;  %v12480_v61 = vld [vmem:[#allocation11 + $0x74] ss:$8 sps:$4 sm:$0xff]   ;;  %v12485_v15 = vld [vmem:[#allocation11 + $0x384] ss:$8 sps:$4 sm:$0xff]  }
 0x21c   : > { %v13795_v3 = vadd.f32 %v10815_v63, %v2840_v62  ;;  %11096 = vmatpush3.bf16.msra.mxu0 %v12442_v5  ;;  %v12481_v62 = vld [vmem:[#allocation11 + $0x1f4] ss:$8 sps:$4 sm:$0xff]   ;;  %v3478_v63 = vld [vmem:[%s13757_s11 + $0x108] sm:$0xff] }
 0x21d   : > { %11097 = vmatprep.subr.bf16.mxu0 %v12445_v8  ;;  %v4022_v1 = vpack.c.bf16 %v3478_v63, %v3446_v58  ;;  %v12482_v2 = vld [vmem:[#allocation11 + $0x174] ss:$8 sps:$4 sm:$0xff]  }
 0x21e   : > { %11118 = vmatpush3.bf16.msra.mxu1 %v12444_v7  ;;  %v3477_v4 = vld [vmem:[%s13757_s11 + $0x100] sm:$0xff]  ;;  %v12483_v7 = vld [vmem:[#allocation11 + $0x284] ss:$8 sps:$4 sm:$0xff]   ;;  %v3448_v8 = vld [vmem:[%s13757_s11 + $0x18] sm:$0xff] }
 0x21f   : > { %11119 = vmatprep.subr.bf16.mxu1 %v12447_v10  ;;  %v12503_v39 = vld [vmem:[#allocation11 + $0x2d4] ss:$8 sps:$4 sm:$0xff]  }
 0x220   : > { %11098 = vmatpush3.bf16.msra.mxu0 %v12446_v9  ;;  %v3480_v9 = vld [vmem:[%s13757_s11 + $0x118] sm:$0xff] }
 0x221   : > { %11127 = vmatprep.subr.bf16.mxu0 %v12450_v13  ;;  %v4024_v10 = vpack.c.bf16 %v3480_v9, %v3448_v8  ;;  %v3479_v13 = vld [vmem:[%s13757_s11 + $0x110] sm:$0xff]  ;;  %v12513_v58 = vld [vmem:[#allocation11 + $0x3f4] ss:$8 sps:$4 sm:$0xff]  }
 0x222   : > { %11120 = vmatpush3.bf16.msra.mxu1 %v12449_v12  ;;  %v3447_v12 = vld [vmem:[%s13757_s11 + $0x10] sm:$0xff] }
 0x223   : > { %3398 = vmatmul.mubr.bf16.vlgmr.msra.gmra.mrb[28].mxu0 %v1261_v11  ;;  %11149 = vmatprep.subr.bf16.mxu1 %v12453_v19  ;;  %v12484_v11 = vld [vmem:[#allocation11 + $0x204] ss:$8 sps:$4 sm:$0xff]   ;;  %v4023_v14 = vpack.c.bf16 %v3479_v13, %v3447_v12  ;;  %v12489_v19 = vld [vmem:[#allocation11 + $0x394] ss:$8 sps:$4 sm:$0xff]  }
 0x224   : > { %11128 = vmatpush3.bf16.msra.mxu0 %v12452_v17  ;;  %5625 = vmatprep.mubr.bf16.mxu0 %v4022_v1  ;;  %v12487_v17 = vld [vmem:[#allocation11 + $0x294] ss:$8 sps:$4 sm:$0xff]   ;;  %v12517_v9 = vld [vmem:[#allocation11 + $0x584] ss:$8 sps:$4 sm:$0xff]  }
 0x225   : > { %3438 = vmatmul.mubr.bf16.vlgmr.msra.gmra.mrb[28].mxu1 %v1263_v18  ;;  %11129 = vmatprep.subr.bf16.mxu0 %v12455_v22  ;;  %v12488_v18 = vld [vmem:[#allocation11 + $0x214] ss:$8 sps:$4 sm:$0xff]   ;;  %v12492_v22 = vld [vmem:[#allocation11 + $0x224] ss:$8 sps:$4 sm:$0xff]  }
 0x226   : > { %11150 = vmatpush3.bf16.msra.mxu1 %v12454_v21  ;;  %5666 = vmatprep.mubr.bf16.mxu1 %v4024_v10  ;;  %v12491_v21 = vld [vmem:[#allocation11 + $0x2a4] ss:$8 sps:$4 sm:$0xff]   ;;  %v3452_v1 = vld [vmem:[%s13757_s11 + $0x38] sm:$0xff] }
 0x227   : > { %11151 = vmatprep.subr.bf16.mxu1 %v12457_v24  ;;  %v12494_v24 = vld [vmem:[#allocation11 + $0x324] ss:$8 sps:$4 sm:$0xff]   ;;  %v12520_v12 = vld [vmem:[#allocation11 + $0x414] ss:$8 sps:$4 sm:$0xff]  }
 0x228   : > { %11130 = vmatpush3.bf16.msra.mxu0 %v12456_v23  ;;  %v12493_v23 = vld [vmem:[#allocation11 + $0x3a4] ss:$8 sps:$4 sm:$0xff]   ;;  %v12521_v13 = vld [vmem:[#allocation11 + $0x594] ss:$8 sps:$4 sm:$0xff]  }
 0x229   : > { %11131 = vmatprep.subr.bf16.mxu0 %v12459_v26  ;;  %v12496_v26 = vld [vmem:[#allocation11 + $0x234] ss:$8 sps:$4 sm:$0xff]   ;;  %v12518_v10 = vld [vmem:[#allocation11 + $0x504] ss:$8 sps:$4 sm:$0xff]  }
 0x22a   : > { %11152 = vmatpush3.bf16.msra.mxu1 %v12458_v25  ;;  %v12495_v25 = vld [vmem:[#allocation11 + $0x2b4] ss:$8 sps:$4 sm:$0xff]  }
 0x22b   : > { %11153 = vmatprep.subr.bf16.mxu1 %v12461_v28  ;;  %v12498_v28 = vld [vmem:[#allocation11 + $0x334] ss:$8 sps:$4 sm:$0xff]  }
 0x22c   : > { %11132 = vmatpush3.bf16.msra.mxu0 %v12460_v27  ;;  %v12497_v27 = vld [vmem:[#allocation11 + $0x3b4] ss:$8 sps:$4 sm:$0xff]  }
 0x22d   : > { %11133 = vmatprep.subr.bf16.mxu0 %v12463_v30  ;;  %v12500_v30 = vld [vmem:[#allocation11 + $0x244] ss:$8 sps:$4 sm:$0xff]  }
 0x22e   : > { %11154 = vmatpush3.bf16.msra.mxu1 %v12462_v29  ;;  %v12499_v29 = vld [vmem:[#allocation11 + $0x2c4] ss:$8 sps:$4 sm:$0xff]  }
 0x22f   : > { %11155 = vmatprep.subr.bf16.mxu1 %v12465_v32 }
 0x230   : > { %11134 = vmatpush3.bf16.msra.mxu0 %v12464_v31  ;;  %v12501_v31 = vld [vmem:[#allocation11 + $0x3c4] ss:$8 sps:$4 sm:$0xff]  }
 0x231   : > { %11135 = vmatprep.subr.bf16.mxu0 %v12467_v34  ;;  %v12502_v34 = vld [vmem:[#allocation11 + $0x344] ss:$8 sps:$4 sm:$0xff]  }
 0x232   : > { %11156 = vmatpush3.bf16.msra.mxu1 %v12466_v33 }
 0x233   : > { %11157 = vmatprep.subr.bf16.mxu1 %v12469_v36 }
 0x234   : > { %11136 = vmatpush3.bf16.msra.mxu0 %v12468_v35 }
 0x235   : > { %11137 = vmatprep.subr.bf16.mxu0 %v12471_v43  ;;  %v12504_v43 = vld [vmem:[#allocation11 + $0x254] ss:$8 sps:$4 sm:$0xff]  }
 0x236   : > { %v10835_v38 = vpop.f32.mrb[4].mxu0  ;;  %11158 = vmatpush3.bf16.msra.mxu1 %v12470_v40 }
 0x237   : > { %v10836_v41 = vpop.f32.mrb[5].mxu0  ;;  %11159 = vmatprep.subr.bf16.mxu1 %v12473_v52  ;;  %v12507_v52 = vld [vmem:[#allocation11 + $0x2e4] ss:$8 sps:$4 sm:$0xff]  }
 0x238   : > { %v10837_v42 = vadd.f32 %v10836_v41, %v10835_v38  ;;  %v10838_v44 = vpop.f32.mrb[6].mxu0  ;;  %v10857_v45 = vpop.f32.mrb[4].mxu1  ;;  %11138 = vmatpush3.bf16.msra.mxu0 %v12472_v48  ;;  %v12505_v48 = vld [vmem:[#allocation11 + $0x3d4] ss:$8 sps:$4 sm:$0xff]  }
 0x239   : > { %v10839_v49 = vpop.f32.mrb[7].mxu0  ;;  %v10858_v50 = vpop.f32.mrb[5].mxu1  ;;  %11139 = vmatprep.subr.bf16.mxu0 %v12475_v55  ;;  %v12509_v55 = vld [vmem:[#allocation11 + $0x3e4] ss:$8 sps:$4 sm:$0xff]  }
 0x23a   : > { %v2920_v47 = vadd.f32 %v10837_v42, %v13795_v3  ;;  %v10859_v51 = vadd.f32 %v10858_v50, %v10857_v45  ;;  %11160 = vmatpush3.bf16.msra.mxu1 %v12474_v53  ;;  %v10860_v0 = vpop.f32.mrb[6].mxu1  ;;  %v3445_v3 = vld [vmem:[%s13757_s11] sm:$0xff]  ;;  %v3450_v42 = vld [vmem:[%s13757_s11 + $0x28] sm:$0xff] }
 0x23b   : > { %11161 = vmatprep.subr.bf16.mxu1 %v12477_v57  ;;  %v10861_v5 = vpop.f32.mrb[7].mxu1  ;;  %v4021_v6 = vpack.c.bf16 %v3477_v4, %v3445_v3  ;;  %v12508_v53 = vld [vmem:[#allocation11 + $0x264] ss:$8 sps:$4 sm:$0xff]   ;;  %v12512_v57 = vld [vmem:[#allocation11 + $0x274] ss:$8 sps:$4 sm:$0xff]  }
 0x23c   : > { %v13799_v54 = vadd.f32 %v10859_v51, %v2920_v47  ;;  %11140 = vmatpush3.bf16.msra.mxu0 %v12476_v56  ;;  %v3482_v47 = vld [vmem:[%s13757_s11 + $0x128] sm:$0xff]  ;;  %v12506_v51 = vld [vmem:[#allocation11 + $0x354] ss:$8 sps:$4 sm:$0xff]  }
 0x23d   : > { %11141 = vmatprep.subr.bf16.mxu0 %v12479_v60  ;;  %v4026_v49 = vpack.c.bf16 %v3482_v47, %v3450_v42  ;;  %v12511_v56 = vld [vmem:[#allocation11 + $0x2f4] ss:$8 sps:$4 sm:$0xff]   ;;  %v12515_v0 = vld [vmem:[#allocation11 + $0x484] ss:$8 sps:$4 sm:$0xff]  }
 0x23e   : > { %11162 = vmatpush3.bf16.msra.mxu1 %v12478_v59  ;;  %v12514_v59 = vld [vmem:[#allocation11 + $0x374] ss:$8 sps:$4 sm:$0xff]   ;;  %v12516_v5 = vld [vmem:[#allocation11 + $0x404] ss:$8 sps:$4 sm:$0xff]  }
 0x23f   : > { %11163 = vmatprep.subr.bf16.mxu1 %v12481_v62  ;;  %v3449_v60 = vld [vmem:[%s13757_s11 + $0x20] sm:$0xff]  ;;  %v12540_v47 = vld [vmem:[#allocation11 + $0x464] ss:$8 sps:$4 sm:$0xff]  }
 0x240   : > { %11142 = vmatpush3.bf16.msra.mxu0 %v12480_v61  ;;  %v3481_v61 = vld [vmem:[%s13757_s11 + $0x120] sm:$0xff] }
 0x241   : > { %11171 = vmatprep.subr.bf16.mxu0 %v12483_v7  ;;  %v4025_v63 = vpack.c.bf16 %v3481_v61, %v3449_v60  ;;  %v3483_v7 = vld [vmem:[%s13757_s11 + $0x130] sm:$0xff]  ;;  %v3456_v60 = vld [vmem:[%s13757_s11 + $0x58] sm:$0xff] }
 0x242   : > { %11164 = vmatpush3.bf16.msra.mxu1 %v12482_v2  ;;  %v3484_v2 = vld [vmem:[%s13757_s11 + $0x138] sm:$0xff] }
 0x243   : > { %5626 = vmatmul.mubr.bf16.vlgmr.msra.gmra.mrb[32].mxu0 %v4021_v6  ;;  %11193 = vmatprep.subr.bf16.mxu1 %v12485_v15  ;;  %v4028_v4 = vpack.c.bf16 %v3484_v2, %v3452_v1  ;;  %v3451_v6 = vld [vmem:[%s13757_s11 + $0x30] sm:$0xff]  ;;  %v3488_v61 = vld [vmem:[%s13757_s11 + $0x158] sm:$0xff] }
 0x244   : > { %11172 = vmatpush3.bf16.msra.mxu0 %v12484_v11  ;;  %5707 = vmatprep.mubr.bf16.mxu0 %v4026_v49  ;;  %v4027_v8 = vpack.c.bf16 %v3483_v7, %v3451_v6  ;;  %v12519_v11 = vld [vmem:[#allocation11 + $0x494] ss:$8 sps:$4 sm:$0xff]   ;;  %v12523_v15 = vld [vmem:[#allocation11 + $0x4a4] ss:$8 sps:$4 sm:$0xff]  }
 0x245   : > { %5667 = vmatmul.mubr.bf16.vlgmr.msra.gmra.mrb[32].mxu1 %v4023_v14  ;;  %11173 = vmatprep.subr.bf16.mxu0 %v12487_v17  ;;  %v12522_v14 = vld [vmem:[#allocation11 + $0x514] ss:$8 sps:$4 sm:$0xff]   ;;  %v12525_v17 = vld [vmem:[#allocation11 + $0x5a4] ss:$8 sps:$4 sm:$0xff]  }
 0x246   : > { %11194 = vmatpush3.bf16.msra.mxu1 %v12486_v16  ;;  %5748 = vmatprep.mubr.bf16.mxu1 %v4028_v4  ;;  %v12524_v16 = vld [vmem:[#allocation11 + $0x424] ss:$8 sps:$4 sm:$0xff]   ;;  %v12552_v6 = vld [vmem:[#allocation11 + $0x614] ss:$8 sps:$4 sm:$0xff]  }
 0x247   : > { %11195 = vmatprep.subr.bf16.mxu1 %v12489_v19  ;;  %v12527_v19 = vld [vmem:[#allocation11 + $0x4b4] ss:$8 sps:$4 sm:$0xff]   ;;  %v12542_v49 = vld [vmem:[#allocation11 + $0x564] ss:$8 sps:$4 sm:$0xff]  }
 0x248   : > { %11174 = vmatpush3.bf16.msra.mxu0 %v12488_v18  ;;  %v12526_v18 = vld [vmem:[#allocation11 + $0x524] ss:$8 sps:$4 sm:$0xff]   ;;  %v12553_v7 = vld [vmem:[#allocation11 + $0x794] ss:$8 sps:$4 sm:$0xff]  }
 0x249   : > { %11175 = vmatprep.subr.bf16.mxu0 %v12491_v21  ;;  %v12529_v21 = vld [vmem:[#allocation11 + $0x5b4] ss:$8 sps:$4 sm:$0xff]   ;;  %v3487_v1 = vld [vmem:[%s13757_s11 + $0x150] sm:$0xff] }
 0x24a   : > { %11196 = vmatpush3.bf16.msra.mxu1 %v12490_v20  ;;  %v12528_v20 = vld [vmem:[#allocation11 + $0x434] ss:$8 sps:$4 sm:$0xff]   ;;  %v12550_v4 = vld [vmem:[#allocation11 + $0x704] ss:$8 sps:$4 sm:$0xff]  }
 0x24b   : > { %11197 = vmatprep.subr.bf16.mxu1 %v12493_v23  ;;  %v12531_v23 = vld [vmem:[#allocation11 + $0x4c4] ss:$8 sps:$4 sm:$0xff]  }
 0x24c   : > { %11176 = vmatpush3.bf16.msra.mxu0 %v12492_v22  ;;  %v12530_v22 = vld [vmem:[#allocation11 + $0x534] ss:$8 sps:$4 sm:$0xff]  }
 0x24d   : > { %11177 = vmatprep.subr.bf16.mxu0 %v12495_v25  ;;  %v12533_v25 = vld [vmem:[#allocation11 + $0x5c4] ss:$8 sps:$4 sm:$0xff]  }
 0x24e   : > { %11198 = vmatpush3.bf16.msra.mxu1 %v12494_v24  ;;  %v12532_v24 = vld [vmem:[#allocation11 + $0x444] ss:$8 sps:$4 sm:$0xff]  }
 0x24f   : > { %11199 = vmatprep.subr.bf16.mxu1 %v12497_v27 }
 0x250   : > { %11178 = vmatpush3.bf16.msra.mxu0 %v12496_v26 }
 0x251   : > { %11179 = vmatprep.subr.bf16.mxu0 %v12499_v29 }
 0x252   : > { %11200 = vmatpush3.bf16.msra.mxu1 %v12498_v28  ;;  %v12534_v28 = vld [vmem:[#allocation11 + $0x544] ss:$8 sps:$4 sm:$0xff]  }
 0x253   : > { %11201 = vmatprep.subr.bf16.mxu1 %v12501_v31 }
 0x254   : > { %11180 = vmatpush3.bf16.msra.mxu0 %v12500_v30 }
 0x255   : > { %11181 = vmatprep.subr.bf16.mxu0 %v12503_v39 }
 0x256   : > { %v10879_v32 = vpop.f32.mrb[8].mxu0  ;;  %11202 = vmatpush3.bf16.msra.mxu1 %v12502_v34 }
 0x257   : > { %v10880_v35 = vpop.f32.mrb[9].mxu0  ;;  %11203 = vmatprep.subr.bf16.mxu1 %v12505_v48  ;;  %v12541_v48 = vld [vmem:[#allocation11 + $0x5e4] ss:$8 sps:$4 sm:$0xff]  }
 0x258   : > { %v10901_v33 = vpop.f32.mrb[8].mxu1  ;;  %v10881_v38 = vadd.f32 %v10880_v35, %v10879_v32  ;;  %v10882_v40 = vpop.f32.mrb[10].mxu0  ;;  %11182 = vmatpush3.bf16.msra.mxu0 %v12504_v43  ;;  %v12535_v32 = vld [vmem:[#allocation11 + $0x4d4] ss:$8 sps:$4 sm:$0xff]   ;;  %v3454_v35 = vld [vmem:[%s13757_s11 + $0x48] sm:$0xff] }
 0x259   : > { %v10902_v36 = vpop.f32.mrb[9].mxu1  ;;  %v10883_v45 = vpop.f32.mrb[11].mxu0  ;;  %11183 = vmatprep.subr.bf16.mxu0 %v12507_v52  ;;  %v3486_v40 = vld [vmem:[%s13757_s11 + $0x148] sm:$0xff]  ;;  %v12545_v52 = vld [vmem:[#allocation11 + $0x5f4] ss:$8 sps:$4 sm:$0xff]  }
 0x25a   : > { %v10903_v41 = vadd.f32 %v10902_v36, %v10901_v33  ;;  %v3000_v44 = vadd.f32 %v10881_v38, %v13799_v54  ;;  %11204 = vmatpush3.bf16.msra.mxu1 %v12506_v51  ;;  %v12510_v54 = vld [vmem:[#allocation11 + $0x364] ss:$8 sps:$4 sm:$0xff]   ;;  %v10904_v62 = vpop.f32.mrb[10].mxu1  ;;  %v12536_v38 = vld [vmem:[#allocation11 + $0x454] ss:$8 sps:$4 sm:$0xff]   ;;  %v4030_v42 = vpack.c.bf16 %v3486_v40, %v3454_v35 }
 0x25b   : > { %11205 = vmatprep.subr.bf16.mxu1 %v12509_v55  ;;  %v10905_v3 = vpop.f32.mrb[11].mxu1  ;;  %v12539_v45 = vld [vmem:[#allocation11 + $0x4e4] ss:$8 sps:$4 sm:$0xff]   ;;  %v12544_v51 = vld [vmem:[#allocation11 + $0x474] ss:$8 sps:$4 sm:$0xff]   ;;  %v4032_v62 = vpack.c.bf16 %v3488_v61, %v3456_v60 }
 0x25c   : > { %v13812_v50 = vadd.f32 %v10903_v41, %v3000_v44  ;;  %11184 = vmatpush3.bf16.msra.mxu0 %v12508_v53  ;;  %v12537_v41 = vld [vmem:[#allocation11 + $0x5d4] ss:$8 sps:$4 sm:$0xff]   ;;  %v12549_v3 = vld [vmem:[#allocation11 + $0x784] ss:$8 sps:$4 sm:$0xff]  }
 0x25d   : > { %11185 = vmatprep.subr.bf16.mxu0 %v12511_v56  ;;  %v12538_v44 = vld [vmem:[#allocation11 + $0x554] ss:$8 sps:$4 sm:$0xff]   ;;  %v12572_v40 = vld [vmem:[#allocation11 + $0x664] ss:$8 sps:$4 sm:$0xff]  }
 0x25e   : > { %11206 = vmatpush3.bf16.msra.mxu1 %v12510_v54  ;;  %v12546_v53 = vld [vmem:[#allocation11 + $0x574] ss:$8 sps:$4 sm:$0xff]   ;;  %v12581_v61 = vld [vmem:[#allocation11 + $0x984] ss:$8 sps:$4 sm:$0xff]  }
 0x25f   : > { %11207 = vmatprep.subr.bf16.mxu1 %v12513_v58  ;;  %v3453_v55 = vld [vmem:[%s13757_s11 + $0x40] sm:$0xff] }
 0x260   : > { %11186 = vmatpush3.bf16.msra.mxu0 %v12512_v57  ;;  %v3485_v56 = vld [vmem:[%s13757_s11 + $0x140] sm:$0xff] }
 0x261   : > { %11215 = vmatprep.subr.bf16.mxu0 %v12515_v0  ;;  %v4029_v58 = vpack.c.bf16 %v3485_v56, %v3453_v55  ;;  %v3455_v0 = vld [vmem:[%s13757_s11 + $0x50] sm:$0xff] }
 0x262   : > { %11208 = vmatpush3.bf16.msra.mxu1 %v12514_v59  ;;  %v12547_v59 = vld [vmem:[#allocation11 + $0x684] ss:$8 sps:$4 sm:$0xff]   ;;  %v4031_v2 = vpack.c.bf16 %v3487_v1, %v3455_v0  ;;  %v12584_v0 = vld [vmem:[#allocation11 + $0x814] ss:$8 sps:$4 sm:$0xff]  }
 0x263   : > { %5708 = vmatmul.mubr.bf16.vlgmr.msra.gmra.mrb[36].mxu0 %v4025_v63  ;;  %11237 = vmatprep.subr.bf16.mxu1 %v12517_v9  ;;  %v12548_v63 = vld [vmem:[#allocation11 + $0x604] ss:$8 sps:$4 sm:$0xff]   ;;  %v12585_v1 = vld [vmem:[#allocation11 + $0x994] ss:$8 sps:$4 sm:$0xff]  }
 0x264   : > { %11216 = vmatpush3.bf16.msra.mxu0 %v12516_v5  ;;  %5789 = vmatprep.mubr.bf16.mxu0 %v4030_v42  ;;  %v12551_v5 = vld [vmem:[#allocation11 + $0x694] ss:$8 sps:$4 sm:$0xff]   ;;  %v12555_v9 = vld [vmem:[#allocation11 + $0x6a4] ss:$8 sps:$4 sm:$0xff]  }
 0x265   : > { %5749 = vmatmul.mubr.bf16.vlgmr.msra.gmra.mrb[36].mxu1 %v4027_v8  ;;  %11217 = vmatprep.subr.bf16.mxu0 %v12519_v11  ;;  %v12554_v8 = vld [vmem:[#allocation11 + $0x714] ss:$8 sps:$4 sm:$0xff]   ;;  %v12557_v11 = vld [vmem:[#allocation11 + $0x7a4] ss:$8 sps:$4 sm:$0xff]  }
 0x266   : > { %11238 = vmatpush3.bf16.msra.mxu1 %v12518_v10  ;;  %5830 = vmatprep.mubr.bf16.mxu1 %v4032_v62  ;;  %v12556_v10 = vld [vmem:[#allocation11 + $0x624] ss:$8 sps:$4 sm:$0xff]  }
 0x267   : > { %11239 = vmatprep.subr.bf16.mxu1 %v12521_v13  ;;  %v12559_v13 = vld [vmem:[#allocation11 + $0x6b4] ss:$8 sps:$4 sm:$0xff]   ;;  %v12574_v42 = vld [vmem:[#allocation11 + $0x764] ss:$8 sps:$4 sm:$0xff]  }
 0x268   : > { %11218 = vmatpush3.bf16.msra.mxu0 %v12520_v12  ;;  %v12558_v12 = vld [vmem:[#allocation11 + $0x724] ss:$8 sps:$4 sm:$0xff]  }
 0x269   : > { %11219 = vmatprep.subr.bf16.mxu0 %v12523_v15  ;;  %v12561_v15 = vld [vmem:[#allocation11 + $0x7b4] ss:$8 sps:$4 sm:$0xff]   ;;  %v12582_v62 = vld [vmem:[#allocation11 + $0x904] ss:$8 sps:$4 sm:$0xff]  }
 0x26a   : > { %11240 = vmatpush3.bf16.msra.mxu1 %v12522_v14  ;;  %v12560_v14 = vld [vmem:[#allocation11 + $0x634] ss:$8 sps:$4 sm:$0xff]  }
 0x26b   : > { %11241 = vmatprep.subr.bf16.mxu1 %v12525_v17  ;;  %v12563_v17 = vld [vmem:[#allocation11 + $0x6c4] ss:$8 sps:$4 sm:$0xff]  }
 0x26c   : > { %11220 = vmatpush3.bf16.msra.mxu0 %v12524_v16  ;;  %v12562_v16 = vld [vmem:[#allocation11 + $0x734] ss:$8 sps:$4 sm:$0xff]  }
 0x26d   : > { %11221 = vmatprep.subr.bf16.mxu0 %v12527_v19  ;;  %v12565_v19 = vld [vmem:[#allocation11 + $0x7c4] ss:$8 sps:$4 sm:$0xff]  }
 0x26e   : > { %11242 = vmatpush3.bf16.msra.mxu1 %v12526_v18  ;;  %v12564_v18 = vld [vmem:[#allocation11 + $0x644] ss:$8 sps:$4 sm:$0xff]  }
 0x26f   : > { %11243 = vmatprep.subr.bf16.mxu1 %v12529_v21 }
 0x270   : > { %11222 = vmatpush3.bf16.msra.mxu0 %v12528_v20 }
 0x271   : > { %11223 = vmatprep.subr.bf16.mxu0 %v12531_v23 }
 0x272   : > { %11244 = vmatpush3.bf16.msra.mxu1 %v12530_v22  ;;  %v12566_v22 = vld [vmem:[#allocation11 + $0x744] ss:$8 sps:$4 sm:$0xff]  }
 0x273   : > { %11245 = vmatprep.subr.bf16.mxu1 %v12533_v25 }
 0x274   : > { %11224 = vmatpush3.bf16.msra.mxu0 %v12532_v24 }
 0x275   : > { %11225 = vmatprep.subr.bf16.mxu0 %v12535_v32  ;;  %v3490_v32 = vld [vmem:[%s13757_s11 + $0x168] sm:$0xff] }
 0x276   : > { %v10923_v26 = vpop.f32.mrb[12].mxu0  ;;  %11246 = vmatpush3.bf16.msra.mxu1 %v12534_v28 }
 0x277   : > { %v10924_v29 = vpop.f32.mrb[13].mxu0  ;;  %11247 = vmatprep.subr.bf16.mxu1 %v12537_v41  ;;  %v12573_v41 = vld [vmem:[#allocation11 + $0x7e4] ss:$8 sps:$4 sm:$0xff]  }
 0x278   : > { %v10945_v27 = vpop.f32.mrb[12].mxu1  ;;  %v10925_v31 = vadd.f32 %v10924_v29, %v10923_v26  ;;  %v10926_v34 = vpop.f32.mrb[14].mxu0  ;;  %11226 = vmatpush3.bf16.msra.mxu0 %v12536_v38  ;;  %v12567_v26 = vld [vmem:[#allocation11 + $0x6d4] ss:$8 sps:$4 sm:$0xff]   ;;  %v3458_v29 = vld [vmem:[%s13757_s11 + $0x68] sm:$0xff] }
 0x279   : > { %v10946_v30 = vpop.f32.mrb[13].mxu1  ;;  %v10927_v39 = vpop.f32.mrb[15].mxu0  ;;  %11227 = vmatprep.subr.bf16.mxu0 %v12539_v45  ;;  %v12569_v34 = vld [vmem:[#allocation11 + $0x7d4] ss:$8 sps:$4 sm:$0xff]   ;;  %v4034_v35 = vpack.c.bf16 %v3490_v32, %v3458_v29  ;;  %v12603_v32 = vld [vmem:[#allocation11 + $0x8e4] ss:$8 sps:$4 sm:$0xff]  }
 0x27a   : > { %v10947_v33 = vadd.f32 %v10946_v30, %v10945_v27  ;;  %v3080_v36 = vadd.f32 %v10925_v31, %v13812_v50  ;;  %11248 = vmatpush3.bf16.msra.mxu1 %v12538_v44  ;;  %v12543_v50 = vld [vmem:[#allocation11 + $0x4f4] ss:$8 sps:$4 sm:$0xff]   ;;  %v10948_v54 = vpop.f32.mrb[14].mxu1  ;;  %v12571_v39 = vld [vmem:[#allocation11 + $0x6e4] ss:$8 sps:$4 sm:$0xff]  }
 0x27b   : > { %11249 = vmatprep.subr.bf16.mxu1 %v12541_v48  ;;  %v10949_v57 = vpop.f32.mrb[15].mxu1  ;;  %v12568_v30 = vld [vmem:[#allocation11 + $0x654] ss:$8 sps:$4 sm:$0xff]  }
 0x27c   : > { %v13823_v43 = vadd.f32 %v10947_v33, %v3080_v36  ;;  %11228 = vmatpush3.bf16.msra.mxu0 %v12540_v47  ;;  %v12570_v36 = vld [vmem:[#allocation11 + $0x754] ss:$8 sps:$4 sm:$0xff]   ;;  %v12580_v57 = vld [vmem:[#allocation11 + $0x804] ss:$8 sps:$4 sm:$0xff]  }
 0x27d   : > { %11229 = vmatprep.subr.bf16.mxu0 %v12543_v50  ;;  %v12576_v44 = vld [vmem:[#allocation11 + $0x674] ss:$8 sps:$4 sm:$0xff]  }
 0x27e   : > { %11250 = vmatpush3.bf16.msra.mxu1 %v12542_v49  ;;  %v12577_v45 = vld [vmem:[#allocation11 + $0x7f4] ss:$8 sps:$4 sm:$0xff]  }
 0x27f   : > { %11251 = vmatprep.subr.bf16.mxu1 %v12545_v52  ;;  %v12578_v47 = vld [vmem:[#allocation11 + $0x774] ss:$8 sps:$4 sm:$0xff]   ;;  %v12579_v52 = vld [vmem:[#allocation11 + $0x884] ss:$8 sps:$4 sm:$0xff]  }
 0x280   : > { %11230 = vmatpush3.bf16.msra.mxu0 %v12544_v51  ;;  %v3457_v48 = vld [vmem:[%s13757_s11 + $0x60] sm:$0xff]  ;;  %v3492_v54 = vld [vmem:[%s13757_s11 + $0x178] sm:$0xff] }
 0x281   : > { %11259 = vmatprep.subr.bf16.mxu0 %v12547_v59  ;;  %v3489_v49 = vld [vmem:[%s13757_s11 + $0x160] sm:$0xff]  ;;  %v3491_v59 = vld [vmem:[%s13757_s11 + $0x170] sm:$0xff] }
 0x282   : > { %11252 = vmatpush3.bf16.msra.mxu1 %v12546_v53  ;;  %v4033_v51 = vpack.c.bf16 %v3489_v49, %v3457_v48  ;;  %v3460_v53 = vld [vmem:[%s13757_s11 + $0x78] sm:$0xff] }
 0x283   : > { %5790 = vmatmul.mubr.bf16.vlgmr.msra.gmra.mrb[40].mxu0 %v4029_v58  ;;  %11281 = vmatprep.subr.bf16.mxu1 %v12549_v3  ;;  %v4036_v56 = vpack.c.bf16 %v3492_v54, %v3460_v53  ;;  %v3459_v58 = vld [vmem:[%s13757_s11 + $0x70] sm:$0xff]  ;;  %v3496_v48 = vld [vmem:[%s13757_s11 + $0x198] sm:$0xff] }
 0x284   : > { %11260 = vmatpush3.bf16.msra.mxu0 %v12548_v63  ;;  %5871 = vmatprep.mubr.bf16.mxu0 %v4034_v35  ;;  %v4035_v60 = vpack.c.bf16 %v3491_v59, %v3459_v58  ;;  %v12583_v63 = vld [vmem:[#allocation11 + $0x894] ss:$8 sps:$4 sm:$0xff]   ;;  %v12587_v3 = vld [vmem:[#allocation11 + $0x8a4] ss:$8 sps:$4 sm:$0xff]  }
 0x285   : > { %5831 = vmatmul.mubr.bf16.vlgmr.msra.gmra.mrb[40].mxu1 %v4031_v2  ;;  %11261 = vmatprep.subr.bf16.mxu0 %v12551_v5  ;;  %v12586_v2 = vld [vmem:[#allocation11 + $0x914] ss:$8 sps:$4 sm:$0xff]   ;;  %v12589_v5 = vld [vmem:[#allocation11 + $0x9a4] ss:$8 sps:$4 sm:$0xff]  }
 0x286   : > { %11282 = vmatpush3.bf16.msra.mxu1 %v12550_v4  ;;  %5912 = vmatprep.mubr.bf16.mxu1 %v4036_v56  ;;  %v12588_v4 = vld [vmem:[#allocation11 + $0x824] ss:$8 sps:$4 sm:$0xff]   ;;  %v12616_v58 = vld [vmem:[#allocation11 + $0xa14] ss:$8 sps:$4 sm:$0xff]  }
 0x287   : > { %11283 = vmatprep.subr.bf16.mxu1 %v12553_v7  ;;  %v12591_v7 = vld [vmem:[#allocation11 + $0x8b4] ss:$8 sps:$4 sm:$0xff]   ;;  %v12606_v35 = vld [vmem:[#allocation11 + $0x964] ss:$8 sps:$4 sm:$0xff]  }
 0x288   : > { %11262 = vmatpush3.bf16.msra.mxu0 %v12552_v6  ;;  %v12590_v6 = vld [vmem:[#allocation11 + $0x924] ss:$8 sps:$4 sm:$0xff]   ;;  %v12617_v59 = vld [vmem:[#allocation11 + $0xb94] ss:$8 sps:$4 sm:$0xff]  }
 0x289   : > { %11263 = vmatprep.subr.bf16.mxu0 %v12555_v9  ;;  %v12593_v9 = vld [vmem:[#allocation11 + $0x9b4] ss:$8 sps:$4 sm:$0xff]   ;;  %v3495_v53 = vld [vmem:[%s13757_s11 + $0x190] sm:$0xff] }
 0x28a   : > { %11284 = vmatpush3.bf16.msra.mxu1 %v12554_v8  ;;  %v12592_v8 = vld [vmem:[#allocation11 + $0x834] ss:$8 sps:$4 sm:$0xff]   ;;  %v12613_v54 = vld [vmem:[#allocation11 + $0xb84] ss:$8 sps:$4 sm:$0xff]  }
 0x28b   : > { %11285 = vmatprep.subr.bf16.mxu1 %v12557_v11  ;;  %v12595_v11 = vld [vmem:[#allocation11 + $0x8c4] ss:$8 sps:$4 sm:$0xff]  }
 0x28c   : > { %11264 = vmatpush3.bf16.msra.mxu0 %v12556_v10  ;;  %v12594_v10 = vld [vmem:[#allocation11 + $0x934] ss:$8 sps:$4 sm:$0xff]   ;;  %v12614_v56 = vld [vmem:[#allocation11 + $0xb04] ss:$8 sps:$4 sm:$0xff]  }
 0x28d   : > { %11265 = vmatprep.subr.bf16.mxu0 %v12559_v13  ;;  %v12597_v13 = vld [vmem:[#allocation11 + $0x9c4] ss:$8 sps:$4 sm:$0xff]  }
 0x28e   : > { %11286 = vmatpush3.bf16.msra.mxu1 %v12558_v12  ;;  %v12596_v12 = vld [vmem:[#allocation11 + $0x844] ss:$8 sps:$4 sm:$0xff]  }
 0x28f   : > { %11287 = vmatprep.subr.bf16.mxu1 %v12561_v15 }
 0x290   : > { %11266 = vmatpush3.bf16.msra.mxu0 %v12560_v14 }
 0x291   : > { %11267 = vmatprep.subr.bf16.mxu0 %v12563_v17 }
 0x292   : > { %11288 = vmatpush3.bf16.msra.mxu1 %v12562_v16  ;;  %v12598_v16 = vld [vmem:[#allocation11 + $0x944] ss:$8 sps:$4 sm:$0xff]  }
 0x293   : > { %11289 = vmatprep.subr.bf16.mxu1 %v12565_v19 }
 0x294   : > { %11268 = vmatpush3.bf16.msra.mxu0 %v12564_v18 }
 0x295   : > { %11269 = vmatprep.subr.bf16.mxu0 %v12567_v26 }
 0x296   : > { %v10967_v20 = vpop.f32.mrb[16].mxu0  ;;  %11290 = vmatpush3.bf16.msra.mxu1 %v12566_v22 }
 0x297   : > { %v10968_v23 = vpop.f32.mrb[17].mxu0  ;;  %11291 = vmatprep.subr.bf16.mxu1 %v12569_v34  ;;  %v12605_v34 = vld [vmem:[#allocation11 + $0x9e4] ss:$8 sps:$4 sm:$0xff]  }
 0x298   : > { %v10989_v21 = vpop.f32.mrb[16].mxu1  ;;  %v10969_v25 = vadd.f32 %v10968_v23, %v10967_v20  ;;  %v10970_v27 = vpop.f32.mrb[18].mxu0  ;;  %11270 = vmatpush3.bf16.msra.mxu0 %v12568_v30  ;;  %v12599_v20 = vld [vmem:[#allocation11 + $0x8d4] ss:$8 sps:$4 sm:$0xff]   ;;  %v3462_v23 = vld [vmem:[%s13757_s11 + $0x88] sm:$0xff] }
 0x299   : > { %v10990_v24 = vpop.f32.mrb[17].mxu1  ;;  %v10971_v31 = vpop.f32.mrb[19].mxu0  ;;  %11271 = vmatprep.subr.bf16.mxu0 %v12571_v39  ;;  %v3494_v27 = vld [vmem:[%s13757_s11 + $0x188] sm:$0xff]  ;;  %v12609_v39 = vld [vmem:[#allocation11 + $0x9f4] ss:$8 sps:$4 sm:$0xff]  }
 0x29a   : > { %v10991_v28 = vadd.f32 %v10990_v24, %v10989_v21  ;;  %v3160_v33 = vadd.f32 %v10969_v25, %v13823_v43  ;;  %11292 = vmatpush3.bf16.msra.mxu1 %v12570_v36  ;;  %v12575_v43 = vld [vmem:[#allocation11 + $0x6f4] ss:$8 sps:$4 sm:$0xff]   ;;  %v10992_v50 = vpop.f32.mrb[18].mxu1  ;;  %v4038_v29 = vpack.c.bf16 %v3494_v27, %v3462_v23  ;;  %v12636_v27 = vld [vmem:[#allocation11 + $0xa64] ss:$8 sps:$4 sm:$0xff]  }
 0x29b   : > { %11293 = vmatprep.subr.bf16.mxu1 %v12573_v41  ;;  %v10993_v55 = vpop.f32.mrb[19].mxu1  ;;  %v12600_v24 = vld [vmem:[#allocation11 + $0x854] ss:$8 sps:$4 sm:$0xff]  }
 0x29c   : > { %v13834_v38 = vadd.f32 %v10991_v28, %v3160_v33  ;;  %11272 = vmatpush3.bf16.msra.mxu0 %v12572_v40  ;;  %v12601_v28 = vld [vmem:[#allocation11 + $0x9d4] ss:$8 sps:$4 sm:$0xff]   ;;  %v12604_v33 = vld [vmem:[#allocation11 + $0x864] ss:$8 sps:$4 sm:$0xff]  }
 0x29d   : > { %11273 = vmatprep.subr.bf16.mxu0 %v12575_v43  ;;  %v12602_v31 = vld [vmem:[#allocation11 + $0x954] ss:$8 sps:$4 sm:$0xff]  }
 0x29e   : > { %11294 = vmatpush3.bf16.msra.mxu1 %v12574_v42  ;;  %v12607_v36 = vld [vmem:[#allocation11 + $0x8f4] ss:$8 sps:$4 sm:$0xff]  }
 0x29f   : > { %11295 = vmatprep.subr.bf16.mxu1 %v12577_v45  ;;  %v12610_v40 = vld [vmem:[#allocation11 + $0x974] ss:$8 sps:$4 sm:$0xff]   ;;  %v12611_v45 = vld [vmem:[#allocation11 + $0xa84] ss:$8 sps:$4 sm:$0xff]  }
 0x2a0   : > { %11274 = vmatpush3.bf16.msra.mxu0 %v12576_v44  ;;  %v3461_v41 = vld [vmem:[%s13757_s11 + $0x80] sm:$0xff] }
 0x2a1   : > { %11303 = vmatprep.subr.bf16.mxu0 %v12579_v52  ;;  %v3493_v42 = vld [vmem:[%s13757_s11 + $0x180] sm:$0xff]  ;;  %v3463_v52 = vld [vmem:[%s13757_s11 + $0x90] sm:$0xff] }
 0x2a2   : > { %11296 = vmatpush3.bf16.msra.mxu1 %v12578_v47  ;;  %v4037_v44 = vpack.c.bf16 %v3493_v42, %v3461_v41  ;;  %v3464_v47 = vld [vmem:[%s13757_s11 + $0x98] sm:$0xff]  ;;  %v4039_v55 = vpack.c.bf16 %v3495_v53, %v3463_v52 }
 0x2a3   : > { %5872 = vmatmul.mubr.bf16.vlgmr.msra.gmra.mrb[44].mxu0 %v4033_v51  ;;  %11325 = vmatprep.subr.bf16.mxu1 %v12581_v61  ;;  %v4040_v50 = vpack.c.bf16 %v3496_v48, %v3464_v47  ;;  %v12612_v51 = vld [vmem:[#allocation11 + $0xa04] ss:$8 sps:$4 sm:$0xff]   ;;  %v3468_v41 = vld [vmem:[%s13757_s11 + $0xb8] sm:$0xff] }
 0x2a4   : > { %11304 = vmatpush3.bf16.msra.mxu0 %v12580_v57  ;;  %5953 = vmatprep.mubr.bf16.mxu0 %v4038_v29  ;;  %v12615_v57 = vld [vmem:[#allocation11 + $0xa94] ss:$8 sps:$4 sm:$0xff]   ;;  %v12619_v61 = vld [vmem:[#allocation11 + $0xaa4] ss:$8 sps:$4 sm:$0xff]  }
 0x2a5   : > { %5913 = vmatmul.mubr.bf16.vlgmr.msra.gmra.mrb[44].mxu1 %v4035_v60  ;;  %11305 = vmatprep.subr.bf16.mxu0 %v12583_v63  ;;  %v12618_v60 = vld [vmem:[#allocation11 + $0xb14] ss:$8 sps:$4 sm:$0xff]   ;;  %v12621_v63 = vld [vmem:[#allocation11 + $0xba4] ss:$8 sps:$4 sm:$0xff]  }
 0x2a6   : > { %11326 = vmatpush3.bf16.msra.mxu1 %v12582_v62  ;;  %5994 = vmatprep.mubr.bf16.mxu1 %v4040_v50  ;;  %v12620_v62 = vld [vmem:[#allocation11 + $0xa24] ss:$8 sps:$4 sm:$0xff]   ;;  %v3500_v42 = vld [vmem:[%s13757_s11 + $0x1b8] sm:$0xff] }
 0x2a7   : > { %11327 = vmatprep.subr.bf16.mxu1 %v12585_v1  ;;  %v12623_v1 = vld [vmem:[#allocation11 + $0xab4] ss:$8 sps:$4 sm:$0xff]   ;;  %v12638_v29 = vld [vmem:[#allocation11 + $0xb64] ss:$8 sps:$4 sm:$0xff]  }
 0x2a8   : > { %11306 = vmatpush3.bf16.msra.mxu0 %v12584_v0  ;;  %v12622_v0 = vld [vmem:[#allocation11 + $0xb24] ss:$8 sps:$4 sm:$0xff]   ;;  %v12647_v52 = vld [vmem:[#allocation11 + $0xc94] ss:$8 sps:$4 sm:$0xff]  }
 0x2a9   : > { %11307 = vmatprep.subr.bf16.mxu0 %v12587_v3  ;;  %v12625_v3 = vld [vmem:[#allocation11 + $0xbb4] ss:$8 sps:$4 sm:$0xff]   ;;  %v3499_v47 = vld [vmem:[%s13757_s11 + $0x1b0] sm:$0xff] }
 0x2aa   : > { %11328 = vmatpush3.bf16.msra.mxu1 %v12586_v2  ;;  %v12624_v2 = vld [vmem:[#allocation11 + $0xa34] ss:$8 sps:$4 sm:$0xff]   ;;  %v12645_v50 = vld [vmem:[#allocation11 + $0xd84] ss:$8 sps:$4 sm:$0xff]  }
 0x2ab   : > { %11329 = vmatprep.subr.bf16.mxu1 %v12589_v5  ;;  %v12627_v5 = vld [vmem:[#allocation11 + $0xac4] ss:$8 sps:$4 sm:$0xff]   ;;  %v12648_v53 = vld [vmem:[#allocation11 + $0xc14] ss:$8 sps:$4 sm:$0xff]  }
 0x2ac   : > { %11308 = vmatpush3.bf16.msra.mxu0 %v12588_v4  ;;  %v12626_v4 = vld [vmem:[#allocation11 + $0xb34] ss:$8 sps:$4 sm:$0xff]  }
 0x2ad   : > { %11309 = vmatprep.subr.bf16.mxu0 %v12591_v7  ;;  %v12629_v7 = vld [vmem:[#allocation11 + $0xbc4] ss:$8 sps:$4 sm:$0xff]  }
 0x2ae   : > { %11330 = vmatpush3.bf16.msra.mxu1 %v12590_v6  ;;  %v12628_v6 = vld [vmem:[#allocation11 + $0xa44] ss:$8 sps:$4 sm:$0xff]  }
 0x2af   : > { %11331 = vmatprep.subr.bf16.mxu1 %v12593_v9 }
 0x2b0   : > { %11310 = vmatpush3.bf16.msra.mxu0 %v12592_v8 }
 0x2b1   : > { %11311 = vmatprep.subr.bf16.mxu0 %v12595_v11 }
 0x2b2   : > { %11332 = vmatpush3.bf16.msra.mxu1 %v12594_v10  ;;  %v12630_v10 = vld [vmem:[#allocation11 + $0xb44] ss:$8 sps:$4 sm:$0xff]  }
 0x2b3   : > { %11333 = vmatprep.subr.bf16.mxu1 %v12597_v13 }
 0x2b4   : > { %11312 = vmatpush3.bf16.msra.mxu0 %v12596_v12 }
 0x2b5   : > { %11313 = vmatprep.subr.bf16.mxu0 %v12599_v20 }
 0x2b6   : > { %v11011_v14 = vpop.f32.mrb[20].mxu0  ;;  %11334 = vmatpush3.bf16.msra.mxu1 %v12598_v16 }
 0x2b7   : > { %v11012_v17 = vpop.f32.mrb[21].mxu0  ;;  %11335 = vmatprep.subr.bf16.mxu1 %v12601_v28  ;;  %v12637_v28 = vld [vmem:[#allocation11 + $0xbe4] ss:$8 sps:$4 sm:$0xff]  }
 0x2b8   : > { %v11033_v15 = vpop.f32.mrb[20].mxu1  ;;  %v11013_v19 = vadd.f32 %v11012_v17, %v11011_v14  ;;  %v11014_v21 = vpop.f32.mrb[22].mxu0  ;;  %11314 = vmatpush3.bf16.msra.mxu0 %v12600_v24  ;;  %v12631_v14 = vld [vmem:[#allocation11 + $0xad4] ss:$8 sps:$4 sm:$0xff]   ;;  %v3466_v17 = vld [vmem:[%s13757_s11 + $0xa8] sm:$0xff] }
 0x2b9   : > { %v11034_v18 = vpop.f32.mrb[21].mxu1  ;;  %v11015_v26 = vpop.f32.mrb[23].mxu0  ;;  %11315 = vmatprep.subr.bf16.mxu0 %v12603_v32  ;;  %v3498_v21 = vld [vmem:[%s13757_s11 + $0x1a8] sm:$0xff]  ;;  %v12641_v32 = vld [vmem:[#allocation11 + $0xbf4] ss:$8 sps:$4 sm:$0xff]  }
 0x2ba   : > { %v11035_v22 = vadd.f32 %v11034_v18, %v11033_v15  ;;  %v3240_v25 = vadd.f32 %v11013_v19, %v13834_v38  ;;  %11336 = vmatpush3.bf16.msra.mxu1 %v12602_v31  ;;  %v12608_v38 = vld [vmem:[#allocation11 + $0x874] ss:$8 sps:$4 sm:$0xff]   ;;  %v11036_v43 = vpop.f32.mrb[22].mxu1  ;;  %v4042_v23 = vpack.c.bf16 %v3498_v21, %v3466_v17  ;;  %v12635_v26 = vld [vmem:[#allocation11 + $0xae4] ss:$8 sps:$4 sm:$0xff]  }
 0x2bb   : > { %11337 = vmatprep.subr.bf16.mxu1 %v12605_v34  ;;  %v11037_v49 = vpop.f32.mrb[23].mxu1  ;;  %v12632_v19 = vld [vmem:[#allocation11 + $0xa54] ss:$8 sps:$4 sm:$0xff]   ;;  %v4044_v43 = vpack.c.bf16 %v3500_v42, %v3468_v41  ;;  %v12667_v17 = vld [vmem:[#allocation11 + $0xce4] ss:$8 sps:$4 sm:$0xff]   ;;  %v4055_v42 = vsub.s32 2, %v13789_v46 }
 0x2bc   : > { %v13845_v30 = vadd.f32 %v11035_v22, %v3240_v25  ;;  %11316 = vmatpush3.bf16.msra.mxu0 %v12604_v33  ;;  %v12633_v22 = vld [vmem:[#allocation11 + $0xbd4] ss:$8 sps:$4 sm:$0xff]   ;;  %v12670_v21 = vld [vmem:[#allocation11 + $0xd64] ss:$8 sps:$4 sm:$0xff]  }
 0x2bd   : > { %11317 = vmatprep.subr.bf16.mxu0 %v12607_v36  ;;  %v12634_v25 = vld [vmem:[#allocation11 + $0xb54] ss:$8 sps:$4 sm:$0xff]   ;;  %v3503_v41 = vld [vmem:[%s13757_s11 + $0x1d0] sm:$0xff] }
 0x2be   : > { %11338 = vmatpush3.bf16.msra.mxu1 %v12606_v35  ;;  %v12640_v31 = vld [vmem:[#allocation11 + $0xa74] ss:$8 sps:$4 sm:$0xff]  }
 0x2bf   : > { %11339 = vmatprep.subr.bf16.mxu1 %v12609_v39  ;;  %v12642_v33 = vld [vmem:[#allocation11 + $0xb74] ss:$8 sps:$4 sm:$0xff]  }
 0x2c0   : > { %11318 = vmatpush3.bf16.msra.mxu0 %v12608_v38  ;;  %v3465_v34 = vld [vmem:[%s13757_s11 + $0xa0] sm:$0xff] }
 0x2c1   : > { %11347 = vmatprep.subr.bf16.mxu0 %v12611_v45  ;;  %v3497_v36 = vld [vmem:[%s13757_s11 + $0x1a0] sm:$0xff]  ;;  %v3467_v45 = vld [vmem:[%s13757_s11 + $0xb0] sm:$0xff] }
 0x2c2   : > { %11340 = vmatpush3.bf16.msra.mxu1 %v12610_v40  ;;  %v4041_v39 = vpack.c.bf16 %v3497_v36, %v3465_v34  ;;  %v12643_v40 = vld [vmem:[#allocation11 + $0xc84] ss:$8 sps:$4 sm:$0xff]   ;;  %v4043_v49 = vpack.c.bf16 %v3499_v47, %v3467_v45  ;;  %v3472_v34 = vld [vmem:[%s13757_s11 + $0xd8] sm:$0xff] }
 0x2c3   : > { %5954 = vmatmul.mubr.bf16.vlgmr.msra.gmra.mrb[48].mxu0 %v4037_v44  ;;  %11369 = vmatprep.subr.bf16.mxu1 %v12613_v54  ;;  %v12644_v44 = vld [vmem:[#allocation11 + $0xc04] ss:$8 sps:$4 sm:$0xff]   ;;  %v12650_v54 = vld [vmem:[#allocation11 + $0xd14] ss:$8 sps:$4 sm:$0xff]  }
 0x2c4   : > { %11348 = vmatpush3.bf16.msra.mxu0 %v12612_v51  ;;  %6035 = vmatprep.mubr.bf16.mxu0 %v4042_v23  ;;  %v12646_v51 = vld [vmem:[#allocation11 + $0xd04] ss:$8 sps:$4 sm:$0xff]   ;;  %v12672_v23 = vld [vmem:[#allocation11 + $0xc74] ss:$8 sps:$4 sm:$0xff]  }
 0x2c5   : > { %5995 = vmatmul.mubr.bf16.vlgmr.msra.gmra.mrb[48].mxu1 %v4039_v55  ;;  %11349 = vmatprep.subr.bf16.mxu0 %v12615_v57  ;;  %v12649_v55 = vld [vmem:[#allocation11 + $0xd94] ss:$8 sps:$4 sm:$0xff]   ;;  %v12652_v57 = vld [vmem:[#allocation11 + $0xc24] ss:$8 sps:$4 sm:$0xff]  }
 0x2c6   : > { %11370 = vmatpush3.bf16.msra.mxu1 %v12614_v56  ;;  %6076 = vmatprep.mubr.bf16.mxu1 %v4044_v43  ;;  %v12651_v56 = vld [vmem:[#allocation11 + $0xca4] ss:$8 sps:$4 sm:$0xff]  }
 0x2c7   : > { %11371 = vmatprep.subr.bf16.mxu1 %v12617_v59  ;;  %v12654_v59 = vld [vmem:[#allocation11 + $0xd24] ss:$8 sps:$4 sm:$0xff]  }
 0x2c8   : > { %11350 = vmatpush3.bf16.msra.mxu0 %v12616_v58  ;;  %v12653_v58 = vld [vmem:[#allocation11 + $0xda4] ss:$8 sps:$4 sm:$0xff]  }
 0x2c9   : > { %11351 = vmatprep.subr.bf16.mxu0 %v12619_v61  ;;  %v12656_v61 = vld [vmem:[#allocation11 + $0xc34] ss:$8 sps:$4 sm:$0xff]   ;;  %v12677_v45 = vld [vmem:[#allocation11 + $0xf84] ss:$8 sps:$4 sm:$0xff]  }
 0x2ca   : > { %11372 = vmatpush3.bf16.msra.mxu1 %v12618_v60  ;;  %v12655_v60 = vld [vmem:[#allocation11 + $0xcb4] ss:$8 sps:$4 sm:$0xff]  }
 0x2cb   : > { %11373 = vmatprep.subr.bf16.mxu1 %v12621_v63  ;;  %v12658_v63 = vld [vmem:[#allocation11 + $0xd34] ss:$8 sps:$4 sm:$0xff]  }
 0x2cc   : > { %11352 = vmatpush3.bf16.msra.mxu0 %v12620_v62  ;;  %v12657_v62 = vld [vmem:[#allocation11 + $0xdb4] ss:$8 sps:$4 sm:$0xff]  }
 0x2cd   : > { %11353 = vmatprep.subr.bf16.mxu0 %v12623_v1  ;;  %v12660_v1 = vld [vmem:[#allocation11 + $0xc44] ss:$8 sps:$4 sm:$0xff]  }
 0x2ce   : > { %11374 = vmatpush3.bf16.msra.mxu1 %v12622_v0  ;;  %v12659_v0 = vld [vmem:[#allocation11 + $0xcc4] ss:$8 sps:$4 sm:$0xff]  }
 0x2cf   : > { %11375 = vmatprep.subr.bf16.mxu1 %v12625_v3  ;;  %v12662_v3 = vld [vmem:[#allocation11 + $0xd44] ss:$8 sps:$4 sm:$0xff]  }
 0x2d0   : > { %11354 = vmatpush3.bf16.msra.mxu0 %v12624_v2  ;;  %v12661_v2 = vld [vmem:[#allocation11 + $0xdc4] ss:$8 sps:$4 sm:$0xff]  }
 0x2d1   : > { %11355 = vmatprep.subr.bf16.mxu0 %v12627_v5 }
 0x2d2   : > { %11376 = vmatpush3.bf16.msra.mxu1 %v12626_v4 }
 0x2d3   : > { %11377 = vmatprep.subr.bf16.mxu1 %v12629_v7  ;;  %v12663_v7 = vld [vmem:[#allocation11 + $0xcd4] ss:$8 sps:$4 sm:$0xff]  }
 0x2d4   : > { %11356 = vmatpush3.bf16.msra.mxu0 %v12628_v6 }
 0x2d5   : > { %11357 = vmatprep.subr.bf16.mxu0 %v12631_v14  ;;  %v12665_v14 = vld [vmem:[#allocation11 + $0xdd4] ss:$8 sps:$4 sm:$0xff]  }
 0x2d6   : > { %v11055_v8 = vpop.f32.mrb[24].mxu0  ;;  %11378 = vmatpush3.bf16.msra.mxu1 %v12630_v10 }
 0x2d7   : > { %v11056_v11 = vpop.f32.mrb[25].mxu0  ;;  %11379 = vmatprep.subr.bf16.mxu1 %v12633_v22  ;;  %v12671_v22 = vld [vmem:[#allocation11 + $0xcf4] ss:$8 sps:$4 sm:$0xff]  }
 0x2d8   : > { %v11077_v9 = vpop.f32.mrb[24].mxu1  ;;  %v11057_v13 = vadd.f32 %v11056_v11, %v11055_v8  ;;  %v11058_v16 = vpop.f32.mrb[26].mxu0  ;;  %11358 = vmatpush3.bf16.msra.mxu0 %v12632_v19  ;;  %v12664_v11 = vld [vmem:[#allocation11 + $0xc54] ss:$8 sps:$4 sm:$0xff]   ;;  %v12669_v19 = vld [vmem:[#allocation11 + $0xde4] ss:$8 sps:$4 sm:$0xff]  }
 0x2d9   : > { %v11078_v12 = vpop.f32.mrb[25].mxu1  ;;  %v11059_v20 = vpop.f32.mrb[27].mxu0  ;;  %11359 = vmatprep.subr.bf16.mxu0 %v12635_v26  ;;  %v12666_v16 = vld [vmem:[#allocation11 + $0xd54] ss:$8 sps:$4 sm:$0xff]  }
 0x2da   : > { %v11079_v15 = vadd.f32 %v11078_v12, %v11077_v9  ;;  %v3320_v18 = vadd.f32 %v11057_v13, %v13845_v30  ;;  %11380 = vmatpush3.bf16.msra.mxu1 %v12634_v25  ;;  %v12639_v30 = vld [vmem:[#allocation11 + $0xaf4] ss:$8 sps:$4 sm:$0xff]   ;;  %v11080_v35 = vpop.f32.mrb[26].mxu1  ;;  %v3470_v20 = vld [vmem:[%s13757_s11 + $0xc8] sm:$0xff] }
 0x2db   : > { %11381 = vmatprep.subr.bf16.mxu1 %v12637_v28  ;;  %v11081_v38 = vpop.f32.mrb[27].mxu1  ;;  %v3502_v25 = vld [vmem:[%s13757_s11 + $0x1c8] sm:$0xff]  ;;  %v12674_v28 = vld [vmem:[#allocation11 + $0xd74] ss:$8 sps:$4 sm:$0xff]  }
 0x2dc   : > { %v13856_v24 = vadd.f32 %v11079_v15, %v3320_v18  ;;  %11360 = vmatpush3.bf16.msra.mxu0 %v12636_v27  ;;  %v12668_v18 = vld [vmem:[#allocation11 + $0xc64] ss:$8 sps:$4 sm:$0xff]   ;;  %v4046_v27 = vpack.c.bf16 %v3502_v25, %v3470_v20  ;;  %v3504_v35 = vld [vmem:[%s13757_s11 + $0x1d8] sm:$0xff] }
 0x2dd   : > { %11361 = vmatprep.subr.bf16.mxu0 %v12639_v30  ;;  %v3501_v30 = vld [vmem:[%s13757_s11 + $0x1c0] sm:$0xff]  ;;  %v4048_v38 = vpack.c.bf16 %v3504_v35, %v3472_v34  ;;  %v13380_v35 = vmov 0.0  }
 0x2de   : > { %11382 = vmatpush3.bf16.msra.mxu1 %v12638_v29  ;;  %v3469_v29 = vld [vmem:[%s13757_s11 + $0xc0] sm:$0xff] }
 0x2df   : > { %11383 = vmatprep.subr.bf16.mxu1 %v12641_v32  ;;  %v4045_v32 = vpack.c.bf16 %v3501_v30, %v3469_v29  ;;  %v12703_v29 = vld [vmem:[#allocation11 + $0xef4] ss:$8 sps:$4 sm:$0xff]  }
 0x2e0   : > { %11362 = vmatpush3.bf16.msra.mxu0 %v12640_v31  ;;  %v12704_v30 = vld [vmem:[#allocation11 + $0xe74] ss:$8 sps:$4 sm:$0xff]  }
 0x2e1   : > { %11391 = vmatprep.subr.bf16.mxu0 %v12643_v40  ;;  %v3471_v40 = vld [vmem:[%s13757_s11 + $0xd0] sm:$0xff] }
 0x2e2   : > { %11384 = vmatpush3.bf16.msra.mxu1 %v12642_v33  ;;  %v12675_v33 = vld [vmem:[#allocation11 + $0xe84] ss:$8 sps:$4 sm:$0xff]  }
 0x2e3   : > { %6036 = vmatmul.mubr.bf16.vlgmr.msra.gmra.mrb[52].mxu0 %v4041_v39  ;;  %11413 = vmatprep.subr.bf16.mxu1 %v12645_v50  ;;  %v12676_v39 = vld [vmem:[#allocation11 + $0xe04] ss:$8 sps:$4 sm:$0xff]   ;;  %v12680_v50 = vld [vmem:[#allocation11 + $0xe14] ss:$8 sps:$4 sm:$0xff]  }
 0x2e4   : > { %11392 = vmatpush3.bf16.msra.mxu0 %v12644_v44  ;;  %6117 = vmatprep.mubr.bf16.mxu0 %v4046_v27  ;;  %v4047_v44 = vpack.c.bf16 %v3503_v41, %v3471_v40  ;;  %v12702_v27 = vld [vmem:[#allocation11 + $0xf64] ss:$8 sps:$4 sm:$0xff]  }
 0x2e5   : > { %6077 = vmatmul.mubr.bf16.vlgmr.msra.gmra.mrb[52].mxu1 %v4043_v49  ;;  %11393 = vmatprep.subr.bf16.mxu0 %v12647_v52  ;;  %v12679_v49 = vld [vmem:[#allocation11 + $0xe94] ss:$8 sps:$4 sm:$0xff]   ;;  %v3475_v41 = vld [vmem:[%s13757_s11 + $0xf0] sm:$0xff] }
 0x2e6   : > { %11414 = vmatpush3.bf16.msra.mxu1 %v12646_v51  ;;  %6158 = vmatprep.mubr.bf16.mxu1 %v4048_v38  ;;  %v12681_v51 = vld [vmem:[#allocation11 + $0xf94] ss:$8 sps:$4 sm:$0xff]  }
 0x2e7   : > { %11415 = vmatprep.subr.bf16.mxu1 %v12649_v55  ;;  %v12682_v52 = vld [vmem:[#allocation11 + $0xf14] ss:$8 sps:$4 sm:$0xff]   ;;  %v12684_v55 = vld [vmem:[#allocation11 + $0xe24] ss:$8 sps:$4 sm:$0xff]  }
 0x2e8   : > { %11394 = vmatpush3.bf16.msra.mxu0 %v12648_v53  ;;  %v12683_v53 = vld [vmem:[#allocation11 + $0xea4] ss:$8 sps:$4 sm:$0xff]   ;;  %v3508_v38 = vld [vmem:[%s13757_s11 + $0x1f8] sm:$0xff] }
 0x2e9   : > { %11395 = vmatprep.subr.bf16.mxu0 %v12651_v56  ;;  %v12686_v56 = vld [vmem:[#allocation11 + $0xf24] ss:$8 sps:$4 sm:$0xff]  }
 0x2ea   : > { %11416 = vmatpush3.bf16.msra.mxu1 %v12650_v54  ;;  %v12685_v54 = vld [vmem:[#allocation11 + $0xfa4] ss:$8 sps:$4 sm:$0xff]  }
 0x2eb   : > { %11417 = vmatprep.subr.bf16.mxu1 %v12653_v58  ;;  %v12688_v58 = vld [vmem:[#allocation11 + $0xe34] ss:$8 sps:$4 sm:$0xff]  }
 0x2ec   : > { %11396 = vmatpush3.bf16.msra.mxu0 %v12652_v57  ;;  %v12687_v57 = vld [vmem:[#allocation11 + $0xeb4] ss:$8 sps:$4 sm:$0xff]  }
 0x2ed   : > { %11397 = vmatprep.subr.bf16.mxu0 %v12655_v60  ;;  %v12690_v60 = vld [vmem:[#allocation11 + $0xf34] ss:$8 sps:$4 sm:$0xff]  }
 0x2ee   : > { %11418 = vmatpush3.bf16.msra.mxu1 %v12654_v59  ;;  %v12689_v59 = vld [vmem:[#allocation11 + $0xfb4] ss:$8 sps:$4 sm:$0xff]  }
 0x2ef   : > { %11419 = vmatprep.subr.bf16.mxu1 %v12657_v62  ;;  %v12692_v62 = vld [vmem:[#allocation11 + $0xe44] ss:$8 sps:$4 sm:$0xff]  }
 0x2f0   : > { %11398 = vmatpush3.bf16.msra.mxu0 %v12656_v61  ;;  %v12691_v61 = vld [vmem:[#allocation11 + $0xec4] ss:$8 sps:$4 sm:$0xff]  }
 0x2f1   : > { %11399 = vmatprep.subr.bf16.mxu0 %v12659_v0  ;;  %v12694_v0 = vld [vmem:[#allocation11 + $0xf44] ss:$8 sps:$4 sm:$0xff]  }
 0x2f2   : > { %11420 = vmatpush3.bf16.msra.mxu1 %v12658_v63  ;;  %v12693_v63 = vld [vmem:[#allocation11 + $0xfc4] ss:$8 sps:$4 sm:$0xff]  }
 0x2f3   : > { %11421 = vmatprep.subr.bf16.mxu1 %v12661_v2  ;;  %v12707_v40 = vld [vmem:[#allocation13 + $0x44] ss:$80 sps:$4 sm:$0xff]  }
 0x2f4   : > { %11400 = vmatpush3.bf16.msra.mxu0 %v12660_v1  ;;  %v13876_v1 = vld [vmem:[#allocation16 + $0x20] sm:$0xff] }
 0x2f5   : > { %11401 = vmatprep.subr.bf16.mxu0 %v12663_v7  ;;  %v12696_v7 = vld [vmem:[#allocation11 + $0xe54] ss:$8 sps:$4 sm:$0xff]  }
 0x2f6   : > { %v11099_v48 = vpop.f32.mrb[28].mxu0  ;;  %11422 = vmatpush3.bf16.msra.mxu1 %v12662_v3  ;;  %v4056_v3 = vrot.slane %v13876_v1, %v4055_v42 }
 0x2f7   : > { %v11100_v4 = vpop.f32.mrb[29].mxu0  ;;  %11423 = vmatprep.subr.bf16.mxu1 %v12665_v14 }
 0x2f8   : > { %v11121_v5 = vpop.f32.mrb[28].mxu1  ;;  %v11101_v6 = vadd.f32 %v11100_v4, %v11099_v48  ;;  %v11102_v8 = vpop.f32.mrb[30].mxu0  ;;  %11402 = vmatpush3.bf16.msra.mxu0 %v12664_v11  ;;  %v12678_v48 = vld [vmem:[#allocation11 + $0xf04] ss:$8 sps:$4 sm:$0xff]   ;;  %v12695_v4 = vld [vmem:[#allocation11 + $0xed4] ss:$8 sps:$4 sm:$0xff]  }
 0x2f9   : > { %v11122_v9 = vpop.f32.mrb[29].mxu1  ;;  %v11103_v12 = vpop.f32.mrb[31].mxu0  ;;  %11403 = vmatprep.subr.bf16.mxu0 %v12667_v17  ;;  %v3506_v17 = vld [vmem:[%s13757_s11 + $0x1e8] sm:$0xff] }
 0x2fa   : > { %v3400_v10 = vadd.f32 %v11101_v6, %v13856_v24  ;;  %v11123_v13 = vadd.f32 %v11122_v9, %v11121_v5  ;;  %11424 = vmatpush3.bf16.msra.mxu1 %v12666_v16  ;;  %v12673_v24 = vld [vmem:[#allocation11 + $0xdf4] ss:$8 sps:$4 sm:$0xff]   ;;  %v11124_v26 = vpop.f32.mrb[30].mxu1 }
 0x2fb   : > { %11425 = vmatprep.subr.bf16.mxu1 %v12669_v19  ;;  %v11125_v31 = vpop.f32.mrb[31].mxu1  ;;  %v12698_v19 = vld [vmem:[#allocation11 + $0xf54] ss:$8 sps:$4 sm:$0xff]   ;;  %v12701_v26 = vld [vmem:[#allocation11 + $0xfe4] ss:$8 sps:$4 sm:$0xff]  }
 0x2fc   : > { %v13865_v15 = vadd.f32 %v11123_v13, %v3400_v10  ;;  %11404 = vmatpush3.bf16.msra.mxu0 %v12668_v18  ;;  %v3474_v10 = vld [vmem:[%s13757_s11 + $0xe8] sm:$0xff]  ;;  %v12697_v13 = vld [vmem:[#allocation11 + $0xfd4] ss:$8 sps:$4 sm:$0xff]  }
 0x2fd   : > { %11405 = vmatprep.subr.bf16.mxu0 %v12671_v22  ;;  %v12705_v31 = vld [vmem:[#allocation11 + $0xff4] ss:$8 sps:$4 sm:$0xff]  }
 0x2fe   : > { %11426 = vmatpush3.bf16.msra.mxu1 %v12670_v21  ;;  %v4050_v21 = vpack.c.bf16 %v3506_v17, %v3474_v10  ;;  %v12717_v10 = vld [vmem:[#allocation13 + $0x160] ss:$80 sps:$4 sm:$0xff]   ;;  %v6557_v17 = vpack.c.bf16 %v13876_v1, %v13876_v1 }
 0x2ff   : > { %11427 = vmatprep.subr.bf16.mxu1 %v12673_v24  ;;  %v12700_v24 = vld [vmem:[#allocation11 + $0xe64] ss:$8 sps:$4 sm:$0xff]   ;;  %v12720_v1 = vld [vmem:[#allocation13 + $0x340] ss:$80 sps:$4 sm:$0xff]  }
 0x300   : > { %11406 = vmatpush3.bf16.msra.mxu0 %v12672_v23  ;;  %v12699_v23 = vld [vmem:[#allocation11 + $0xee4] ss:$8 sps:$4 sm:$0xff]  }
 0x301   : > { %11435 = vmatprep.subr.bf16.mxu0 %v12675_v33  ;;  %v3505_v33 = vld [vmem:[%s13757_s11 + $0x1e0] sm:$0xff] }
 0x302   : > { %11428 = vmatpush3.bf16.msra.mxu1 %v12674_v28  ;;  %v3473_v28 = vld [vmem:[%s13757_s11 + $0xe0] sm:$0xff] }
 0x303   : > { %6118 = vmatmul.mubr.bf16.vlgmr.msra.gmra.mrb[56].mxu0 %v4045_v32  ;;  %11457 = vmatprep.subr.bf16.mxu1 %v12677_v45  ;;  %v12706_v32 = vld [vmem:[#allocation11 + $0xf74] ss:$8 sps:$4 sm:$0xff]   ;;  %v4049_v34 = vpack.c.bf16 %v3505_v33, %v3473_v28  ;;  %v6559_v28 = vshrl.u32 %v6557_v17, 16 }
 0x304   : > { %11436 = vmatpush3.bf16.msra.mxu0 %v12676_v39  ;;  %6199 = vmatprep.mubr.bf16.mxu0 %v4050_v21  ;;  %v12718_v21 = vld [vmem:[#allocation13 + $0x200] ss:$80 sps:$4 sm:$0xff]  }
 0x305   : > { %6159 = vmatmul.mubr.bf16.vlgmr.msra.gmra.mrb[56].mxu1 %v4047_v44  ;;  %11437 = vmatprep.subr.bf16.mxu0 %v12679_v49 }
 0x306   : > { %11458 = vmatpush3.bf16.msra.mxu1 %v12678_v48 }
 0x307   : > { %11459 = vmatprep.subr.bf16.mxu1 %v12681_v51 }
 0x308   : > { %11438 = vmatpush3.bf16.msra.mxu0 %v12680_v50 }
 0x309   : > { %11439 = vmatprep.subr.bf16.mxu0 %v12683_v53 }
 0x30a   : > { %11460 = vmatpush3.bf16.msra.mxu1 %v12682_v52  ;;  %v12709_v52 = vld [vmem:[#allocation13 + $0x184] ss:$80 sps:$4 sm:$0xff]  }
 0x30b   : > { %11461 = vmatprep.subr.bf16.mxu1 %v12685_v54 }
 0x30c   : > { %11440 = vmatpush3.bf16.msra.mxu0 %v12684_v55 }
 0x30d   : > { %11441 = vmatprep.subr.bf16.mxu0 %v12687_v57 }
 0x30e   : > { %11462 = vmatpush3.bf16.msra.mxu1 %v12686_v56 }
 0x30f   : > { %11463 = vmatprep.subr.bf16.mxu1 %v12689_v59 }
 0x310   : > { %11442 = vmatpush3.bf16.msra.mxu0 %v12688_v58 }
 0x311   : > { %11443 = vmatprep.subr.bf16.mxu0 %v12691_v61 }
 0x312   : > { %11464 = vmatpush3.bf16.msra.mxu1 %v12690_v60 }
 0x313   : > { %11465 = vmatprep.subr.bf16.mxu1 %v12693_v63 }
 0x314   : > { %11444 = vmatpush3.bf16.msra.mxu0 %v12692_v62  ;;  %v12710_v62 = vld [vmem:[#allocation13 + $0x224] ss:$80 sps:$4 sm:$0xff]  }
 0x315   : > { %11445 = vmatprep.subr.bf16.mxu0 %v12695_v4  ;;  %v12714_v4 = vld [vmem:[#allocation13 + $0x4a4] ss:$80 sps:$4 sm:$0xff]  }
 0x316   : > { %v11143_v36 = vpop.f32.mrb[32].mxu0  ;;  %11466 = vmatpush3.bf16.msra.mxu1 %v12694_v0  ;;  %v12711_v0 = vld [vmem:[#allocation13 + $0x2c4] ss:$80 sps:$4 sm:$0xff]  }
 0x317   : > { %v11144_v43 = vpop.f32.mrb[33].mxu0  ;;  %11467 = vmatprep.subr.bf16.mxu1 %v12697_v13 }
 0x318   : > { %v11145_v47 = vadd.f32 %v11144_v43, %v11143_v36  ;;  %v11146_v2 = vpop.f32.mrb[34].mxu0  ;;  %v11165_v5 = vpop.f32.mrb[32].mxu1  ;;  %11446 = vmatpush3.bf16.msra.mxu0 %v12696_v7  ;;  %v3476_v36 = vld [vmem:[%s13757_s11 + $0xf8] sm:$0xff]  ;;  %v3507_v43 = vld [vmem:[%s13757_s11 + $0x1f0] sm:$0xff]  ;;  %s13385_s11 = smov [#allocation17]  }
 0x319   : > { %v11147_v6 = vpop.f32.mrb[35].mxu0  ;;  %v11166_v9 = vpop.f32.mrb[33].mxu1  ;;  %11447 = vmatprep.subr.bf16.mxu0 %v12699_v23  ;;  %v4052_v39 = vpack.c.bf16 %v3508_v38, %v3476_v36  ;;  %v4051_v45 = vpack.c.bf16 %v3507_v43, %v3475_v41 }
 0x31a   : > { %v11148_v8 = vadd.f32 %v11147_v6, %v11146_v2  ;;  %v5628_v11 = vadd.f32 %v11145_v47, %v4056_v3  ;;  %v11167_v12 = vadd.f32 %v11166_v9, %v11165_v5  ;;  %v11168_v16 = vpop.f32.mrb[34].mxu1  ;;  %11468 = vmatpush3.bf16.msra.mxu1 %v12698_v19  ;;  %v12708_v47 = vld [vmem:[#allocation13 + $0xe4] ss:$80 sps:$4 sm:$0xff]   ;;  %v6249_v5 = vld [vmem:[%s485_s3] sm:$0x1]  ;;  %s13283_s3 = sshll.u32 %s13385_s11, 4  ;;  %s13284_s3 = int_to_ptr.vmem [resolvable:$false] %s13283_s3 }
 0x31b   : > { %v11169_v20 = vpop.f32.mrb[35].mxu1  ;;  %11469 = vmatprep.subr.bf16.mxu1 %v12701_v26  ;;  %6240 = vmatprep.mubr.bf16.mxu1 %v4052_v39  ;;  %v12712_v2 = vld [vmem:[#allocation13 + $0x364] ss:$80 sps:$4 sm:$0xff]   ;;  %v12715_v6 = vld [vmem:[#allocation13 + $0x20] ss:$80 sps:$4 sm:$0xff]   ;;  %v6266_v7 = vpack.c.bf16 %v6249_v5, %v6249_v5  ;;  %s13285_s29 = scalar_lea.vmem %s13284_s3, 32  ;;  %p13286_p4 = scmp.lt.s32.totalorder %s14301_s25, %s13284_s3 }
 0x31c   : > { %v5631_v14 = vadd.f32 %v11148_v8, %v4056_v3  ;;  %v5669_v18 = vadd.f32 %v11167_v12, %v5628_v11  ;;  %v11170_v22 = vadd.f32 %v11169_v20, %v11168_v16  ;;  %11448 = vmatpush3.bf16.msra.mxu0 %v12700_v24  ;;  %v12713_v3 = vld [vmem:[#allocation13 + $0x404] ss:$80 sps:$4 sm:$0xff]   ;;  %v12716_v8 = vld [vmem:[#allocation13 + $0xc0] ss:$80 sps:$4 sm:$0xff]   ;;  %p13287_p7 = scmp.lt.s32.totalorder %s13285_s29, %s13279_s23 }
 0x31d   : > { %11449 = vmatprep.subr.bf16.mxu0 %v12703_v29  ;;  %v12719_v29 = vld [vmem:[#allocation13 + $0x2a0] ss:$80 sps:$4 sm:$0xff]  }
 0x31e   : > { %v5672_v25 = vadd.f32 %v11170_v22, %v5631_v14  ;;  %11470 = vmatpush3.bf16.msra.mxu1 %v12702_v27  ;;  %p13288_p11 = por %p13287_p7, %p13286_p4 }
 0x31f   : > { %11471 = vmatprep.subr.bf16.mxu1 %v12705_v31  ;;  %v12721_v31 = vld [vmem:[#allocation13 + $0x3e0] ss:$80 sps:$4 sm:$0xff]  }
 0x320   : > { %11450 = vmatpush3.bf16.msra.mxu0 %v12704_v30  ;;  %p13289_p2 = pnand %p13288_p11, %p13282_p0 }
 0x321   : > { %11699 = vmatprep.subr.bf16.mxu0 %v13380_v35 }
 0x322   : > { %11472 = vmatpush3.bf16.msra.mxu1 %v12706_v32  ;;  %v12722_v32 = vld [vmem:[#allocation13 + $0x480] ss:$80 sps:$4 sm:$0xff]  }
 0x323   : > { %6200 = vmatmul.mubr.bf16.vlgmr.msra.gmra.mrb[60].mxu0 %v4049_v34  ;;  %11719 = vmatprep.subr.bf16.mxu1 %v13380_v35 }
 0x324   : > { %11700 = vmatpush3.bf16.msra.mxu0 %v12707_v40  ;;  %11715 = vmatprep.mubr.msk.bf16.mxu0 %vm14376_vm0, %v13380_v35 }
 0x325   : > { %11701 = vmatprep.subr.bf16.mxu0 %v13380_v35  ;;  %6241 = vmatmul.mubr.bf16.vlgmr.msra.gmra.mrb[60].mxu1 %v4051_v45 }
 0x326   : > { %11735 = vmatprep.mubr.msk.bf16.mxu1 %vm14376_vm0, %v13380_v35 }
 0x328   : > { %11702 = vmatpush3.bf16.msra.mxu0 %v12708_v47 }
 0x329   : > { %11703 = vmatprep.subr.bf16.mxu0 %v13380_v35 }
 0x32c   : > { %11704 = vmatpush3.bf16.msra.mxu0 %v12709_v52  ;;  %v12723_v52 = vld [vmem:[#allocation13 + $0x40] ss:$80 sps:$4 sm:$0xff]  }
 0x32d   : > { %11705 = vmatprep.subr.bf16.mxu0 %v13380_v35  ;;  %11720 = vmatpush3.bf16.msra.mxu1 %v12723_v52 }
 0x32e   : > { %11721 = vmatprep.subr.bf16.mxu1 %v13380_v35 }
 0x330   : > { %11706 = vmatpush3.bf16.msra.mxu0 %v12710_v62 }
 0x331   : > { %11707 = vmatprep.subr.bf16.mxu0 %v13380_v35 }
 0x334   : > { %11708 = vmatpush3.bf16.msra.mxu0 %v12711_v0 }
 0x335   : > { %11709 = vmatprep.subr.bf16.mxu0 %v13380_v35 }
 0x336   : > { %v11187_v42 = vpop.f32.mrb[36].mxu0 }
 0x337   : > { %v11188_v44 = vpop.f32.mrb[37].mxu0 }
 0x338   : > { %v11189_v48 = vadd.f32 %v11188_v44, %v11187_v42  ;;  %v11190_v50 = vpop.f32.mrb[38].mxu0  ;;  %v11209_v51 = vpop.f32.mrb[36].mxu1  ;;  %11710 = vmatpush3.bf16.msra.mxu0 %v12712_v2 }
 0x339   : > { %v11191_v53 = vpop.f32.mrb[39].mxu0  ;;  %v11210_v55 = vpop.f32.mrb[37].mxu1  ;;  %11711 = vmatprep.subr.bf16.mxu0 %v13380_v35 }
 0x33a   : > { %v5710_v49 = vadd.f32 %v11189_v48, %v5669_v18  ;;  %v11192_v54 = vadd.f32 %v11191_v53, %v11190_v50  ;;  %v11211_v56 = vadd.f32 %v11210_v55, %v11209_v51  ;;  %v11212_v57 = vpop.f32.mrb[38].mxu1 }
 0x33b   : > { %v11213_v58 = vpop.f32.mrb[39].mxu1 }
 0x33c   : > { %v5713_v59 = vadd.f32 %v11192_v54, %v5672_v25  ;;  %v5751_v60 = vadd.f32 %v11211_v56, %v5710_v49  ;;  %v11214_v61 = vadd.f32 %v11213_v58, %v11212_v57  ;;  %11712 = vmatpush3.bf16.msra.mxu0 %v12713_v3 }
 0x33d   : > { %11713 = vmatprep.subr.bf16.mxu0 %v13380_v35 }
 0x33e   : > { %v5754_v63 = vadd.f32 %v11214_v61, %v5713_v59 }
 0x340   : > { %11714 = vmatpush3.bf16.msra.mxu0 %v12714_v4 }
 0x341   : > { %11739 = vmatprep.subr.bf16.mxu0 %v13380_v35 }
 0x343   : > { %11716 = vmatmul.mubr.bf16.vlgmr.msra.gmra.mrb[64].mxu0 %v6266_v7  ;;  %v12725_v7 = vld [vmem:[#allocation13 + $0x180] ss:$80 sps:$4 sm:$0xff]  }
 0x344   : > { %11740 = vmatpush3.bf16.msra.mxu0 %v12715_v6  ;;  %11755 = vmatprep.mubr.msk.bf16.mxu0 %vm14376_vm0, %v13380_v35  ;;  %v12724_v6 = vld [vmem:[#allocation13 + $0xe0] ss:$80 sps:$4 sm:$0xff]  }
 0x345   : > { %11741 = vmatprep.subr.bf16.mxu0 %v13380_v35  ;;  %11722 = vmatpush3.bf16.msra.mxu1 %v12724_v6 }
 0x346   : > { %11723 = vmatprep.subr.bf16.mxu1 %v13380_v35 }
 0x348   : > { %11742 = vmatpush3.bf16.msra.mxu0 %v12716_v8  ;;  %v12726_v8 = vld [vmem:[#allocation13 + $0x220] ss:$80 sps:$4 sm:$0xff]  }
 0x349   : > { %11743 = vmatprep.subr.bf16.mxu0 %v13380_v35  ;;  %11724 = vmatpush3.bf16.msra.mxu1 %v12725_v7 }
 0x34a   : > { %11725 = vmatprep.subr.bf16.mxu1 %v13380_v35 }
 0x34c   : > { %11744 = vmatpush3.bf16.msra.mxu0 %v12717_v10  ;;  %v12728_v10 = vld [vmem:[#allocation13 + $0x360] ss:$80 sps:$4 sm:$0xff]  }
 0x34d   : > { %11745 = vmatprep.subr.bf16.mxu0 %v13380_v35  ;;  %11726 = vmatpush3.bf16.msra.mxu1 %v12726_v8 }
 0x34e   : > { %11727 = vmatprep.subr.bf16.mxu1 %v13380_v35 }
 0x350   : > { %11746 = vmatpush3.bf16.msra.mxu0 %v12718_v21 }
 0x351   : > { %11747 = vmatprep.subr.bf16.mxu0 %v13380_v35 }
 0x354   : > { %11748 = vmatpush3.bf16.msra.mxu0 %v12719_v29 }
 0x355   : > { %11749 = vmatprep.subr.bf16.mxu0 %v13380_v35 }
 0x356   : > { %v11231_v9 = vpop.f32.mrb[40].mxu0 }
 0x357   : > { %v11232_v11 = vpop.f32.mrb[41].mxu0 }
 0x358   : > { %v11233_v12 = vadd.f32 %v11232_v11, %v11231_v9  ;;  %v11234_v13 = vpop.f32.mrb[42].mxu0  ;;  %v11253_v14 = vpop.f32.mrb[40].mxu1  ;;  %11750 = vmatpush3.bf16.msra.mxu0 %v12720_v1  ;;  %v12727_v9 = vld [vmem:[#allocation13 + $0x2c0] ss:$80 sps:$4 sm:$0xff]  }
 0x359   : > { %v11235_v16 = vpop.f32.mrb[43].mxu0  ;;  %v11254_v20 = vpop.f32.mrb[41].mxu1  ;;  %11751 = vmatprep.subr.bf16.mxu0 %v13380_v35  ;;  %11728 = vmatpush3.bf16.msra.mxu1 %v12727_v9  ;;  %v12729_v11 = vld [vmem:[#allocation13 + $0x400] ss:$80 sps:$4 sm:$0xff]  }
 0x35a   : > { %v5792_v18 = vadd.f32 %v11233_v12, %v5751_v60  ;;  %v11236_v19 = vadd.f32 %v11235_v16, %v11234_v13  ;;  %v11255_v22 = vadd.f32 %v11254_v20, %v11253_v14  ;;  %v11256_v23 = vpop.f32.mrb[42].mxu1  ;;  %11729 = vmatprep.subr.bf16.mxu1 %v13380_v35  ;;  %v12730_v12 = vld [vmem:[#allocation13 + $0x4a0] ss:$80 sps:$4 sm:$0xff]   ;;  %v12733_v13 = vld [vmem:[#allocation13 + $0x28] ss:$80 sps:$4 sm:$0xff]  }
 0x35b   : > { %v11257_v25 = vpop.f32.mrb[43].mxu1  ;;  %v13924_v1 = vld [vmem:[%s14420_s27] sm:$0xff] }
 0x35c   : > { %v5795_v24 = vadd.f32 %v11236_v19, %v5754_v63  ;;  %v5833_v26 = vadd.f32 %v11255_v22, %v5792_v18  ;;  %v11258_v27 = vadd.f32 %v11257_v25, %v11256_v23  ;;  %11752 = vmatpush3.bf16.msra.mxu0 %v12721_v31 }
 0x35d   : > { %11753 = vmatprep.subr.bf16.mxu0 %v13380_v35  ;;  %11730 = vmatpush3.bf16.msra.mxu1 %v12728_v10 }
 0x35e   : > { %v5836_v30 = vadd.f32 %v11258_v27, %v5795_v24  ;;  %11731 = vmatprep.subr.bf16.mxu1 %v13380_v35 }
 0x360   : > { %11754 = vmatpush3.bf16.msra.mxu0 %v12722_v32 }
 0x361   : > { %11732 = vmatpush3.bf16.msra.mxu1 %v12729_v11 }
 0x362   : > { %11733 = vmatprep.subr.bf16.mxu1 %v13380_v35 }
 0x363   : > { %11756 = vmatmul.mubr.bf16.vlgmr.msra.gmra.mrb[68].mxu0 %v6559_v28 }
 0x364   : > { %11761 = vmatprep.mubr.msk.f32.mxu0 %vm14379_vm1, %v13924_v1 }
 0x365   : > { %11734 = vmatpush3.bf16.msra.mxu1 %v12730_v12 }
 0x366   : > { %6731 = vmatprep.subr.bf16.mxu1 %v12733_v13 }
 0x376   : > { %v11275_v33 = vpop.f32.mrb[44].mxu0 }
 0x377   : > { %v11276_v34 = vpop.f32.mrb[45].mxu0 }
 0x378   : > { %v11277_v36 = vadd.f32 %v11276_v34, %v11275_v33  ;;  %v11278_v38 = vpop.f32.mrb[46].mxu0  ;;  %v11297_v39 = vpop.f32.mrb[44].mxu1 }
 0x379   : > { %v11279_v40 = vpop.f32.mrb[47].mxu0  ;;  %v11298_v43 = vpop.f32.mrb[45].mxu1 }
 0x37a   : > { %v5874_v41 = vadd.f32 %v11277_v36, %v5833_v26  ;;  %v11280_v42 = vadd.f32 %v11279_v40, %v11278_v38  ;;  %v11299_v44 = vadd.f32 %v11298_v43, %v11297_v39  ;;  %v11300_v45 = vpop.f32.mrb[46].mxu1 }
 0x37b   : > { %v11301_v48 = vpop.f32.mrb[47].mxu1 }
 0x37c   : > { %v5877_v47 = vadd.f32 %v11280_v42, %v5836_v30  ;;  %v5915_v49 = vadd.f32 %v11299_v44, %v5874_v41  ;;  %v11302_v50 = vadd.f32 %v11301_v48, %v11300_v45 }
 0x37e   : > { %v5918_v51 = vadd.f32 %v11302_v50, %v5877_v47 }
 0x396   : > { %v11319_v53 = vpop.f32.mrb[48].mxu0 }
 0x397   : > { %v11320_v55 = vpop.f32.mrb[49].mxu0 }
 0x398   : > { %v11321_v54 = vadd.f32 %v11320_v55, %v11319_v53  ;;  %v11322_v56 = vpop.f32.mrb[50].mxu0  ;;  %v11341_v59 = vpop.f32.mrb[48].mxu1 }
 0x399   : > { %v11323_v57 = vpop.f32.mrb[51].mxu0  ;;  %v11342_v61 = vpop.f32.mrb[49].mxu1 }
 0x39a   : > { %v5956_v58 = vadd.f32 %v11321_v54, %v5915_v49  ;;  %v11324_v60 = vadd.f32 %v11323_v57, %v11322_v56  ;;  %v11343_v63 = vadd.f32 %v11342_v61, %v11341_v59  ;;  %v11344_v0 = vpop.f32.mrb[50].mxu1 }
 0x39b   : > { %v11345_v2 = vpop.f32.mrb[51].mxu1 }
 0x39c   : > { %v5959_v62 = vadd.f32 %v11324_v60, %v5918_v51  ;;  %v5997_v3 = vadd.f32 %v11343_v63, %v5956_v58  ;;  %v11346_v4 = vadd.f32 %v11345_v2, %v11344_v0 }
 0x39e   : > { %v6000_v5 = vadd.f32 %v11346_v4, %v5959_v62  ;;  %v565_v4 = vld [vmem:[#allocation16 + $0x40] sm:$0xff] }
 0x3b6   : > { %v11363_v14 = vpop.f32.mrb[52].mxu0 }
 0x3b7   : > { %v11364_v16 = vpop.f32.mrb[53].mxu0 }
 0x3b8   : > { %v11365_v17 = vadd.f32 %v11364_v16, %v11363_v14  ;;  %v11366_v18 = vpop.f32.mrb[54].mxu0  ;;  %v11385_v19 = vpop.f32.mrb[52].mxu1 }
 0x3b9   : > { %v11367_v20 = vpop.f32.mrb[55].mxu0  ;;  %v11386_v23 = vpop.f32.mrb[53].mxu1 }
 0x3ba   : > { %v6038_v21 = vadd.f32 %v11365_v17, %v5997_v3  ;;  %v11368_v22 = vadd.f32 %v11367_v20, %v11366_v18  ;;  %v11387_v24 = vadd.f32 %v11386_v23, %v11385_v19  ;;  %v11388_v25 = vpop.f32.mrb[54].mxu1  ;;  %v12736_v23 = vld [vmem:[#allocation13 + $0xc8] ss:$80 sps:$4 sm:$0xff]  }
 0x3bb   : > { %v11389_v27 = vpop.f32.mrb[55].mxu1 }
 0x3bc   : > { %v6041_v26 = vadd.f32 %v11368_v22, %v6000_v5  ;;  %v6079_v28 = vadd.f32 %v11387_v24, %v6038_v21  ;;  %v11390_v29 = vadd.f32 %v11389_v27, %v11388_v25  ;;  %v6316_v5 = vrot.slane %v565_v4, 2  ;;  %v12731_v21 = vld [vmem:[#allocation13 + $0x24] ss:$80 sps:$4 sm:$0xff]  }
 0x3bd   : > { %v12734_v24 = vld [vmem:[#allocation13 + $0xc4] ss:$80 sps:$4 sm:$0xff]   ;;  %v13382_v25 = vmov 0  }
 0x3be   : > { %v6082_v30 = vadd.f32 %v11390_v29, %v6041_v26  ;;  %v12739_v26 = vld [vmem:[#allocation13 + $0x168] ss:$80 sps:$4 sm:$0xff]  }
 0x3d6   : > { %v11407_v31 = vpop.f32.mrb[56].mxu0 }
 0x3d7   : > { %v11408_v32 = vpop.f32.mrb[57].mxu0 }
 0x3d8   : > { %v11409_v33 = vadd.f32 %v11408_v32, %v11407_v31  ;;  %v11410_v34 = vpop.f32.mrb[58].mxu0  ;;  %v11429_v36 = vpop.f32.mrb[56].mxu1  ;;  %v12737_v31 = vld [vmem:[#allocation13 + $0x164] ss:$80 sps:$4 sm:$0xff]  }
 0x3d9   : > { %v11411_v38 = vpop.f32.mrb[59].mxu0  ;;  %v11430_v41 = vpop.f32.mrb[57].mxu1 }
 0x3da   : > { %v6120_v39 = vadd.f32 %v11409_v33, %v6079_v28  ;;  %v11412_v40 = vadd.f32 %v11411_v38, %v11410_v34  ;;  %v11431_v42 = vadd.f32 %v11430_v41, %v11429_v36  ;;  %v11432_v43 = vpop.f32.mrb[58].mxu1  ;;  %v13938_v28 = vld [vmem:[%s14420_s27 + $0x8] sm:$0xff] }
 0x3db   : > { %v11433_v45 = vpop.f32.mrb[59].mxu1  ;;  %v12742_v33 = vld [vmem:[#allocation13 + $0x208] ss:$80 sps:$4 sm:$0xff]   ;;  %v12740_v34 = vld [vmem:[#allocation13 + $0x204] ss:$80 sps:$4 sm:$0xff]  }
 0x3dc   : > { %v6123_v44 = vadd.f32 %v11412_v40, %v6082_v30  ;;  %v6161_v47 = vadd.f32 %v11431_v42, %v6120_v39  ;;  %v11434_v48 = vadd.f32 %v11433_v45, %v11432_v43  ;;  %v12745_v36 = vld [vmem:[#allocation13 + $0x2a8] ss:$80 sps:$4 sm:$0xff]   ;;  %v12743_v38 = vld [vmem:[#allocation13 + $0x2a4] ss:$80 sps:$4 sm:$0xff]   ;;  %v13947_v45 = vand.u32 127, %v566_v37 }
 0x3dd   : > { %v12748_v39 = vld [vmem:[#allocation13 + $0x348] ss:$80 sps:$4 sm:$0xff]   ;;  %v12746_v40 = vld [vmem:[#allocation13 + $0x344] ss:$80 sps:$4 sm:$0xff]   ;;  %v569_v37 = vadd.s32 16, %v13789_v46 }
 0x3de   : > { %v6164_v49 = vadd.f32 %v11434_v48, %v6123_v44  ;;  %v12751_v41 = vld [vmem:[#allocation13 + $0x3e8] ss:$80 sps:$4 sm:$0xff]   ;;  %v12749_v42 = vld [vmem:[#allocation13 + $0x3e4] ss:$80 sps:$4 sm:$0xff]   ;;  %v568_v48 = vadd.s32 8, %v13789_v46 }
 0x3df   : > { %v12754_v43 = vld [vmem:[#allocation13 + $0x488] ss:$80 sps:$4 sm:$0xff]   ;;  %v12752_v44 = vld [vmem:[#allocation13 + $0x484] ss:$80 sps:$4 sm:$0xff]  }
 0x3f6   : > { %v11451_v50 = vpop.f32.mrb[60].mxu0 }
 0x3f7   : > { %v11452_v51 = vpop.f32.mrb[61].mxu0 }
 0x3f8   : > { %v11453_v52 = vadd.f32 %v11452_v51, %v11451_v50  ;;  %v11454_v53 = vpop.f32.mrb[62].mxu0  ;;  %v11473_v55 = vpop.f32.mrb[60].mxu1  ;;  %v570_v50 = vadd.s32 24, %v13789_v46  ;;  %v571_v51 = vadd.s32 32, %v13789_v46 }
 0x3f9   : > { %v11455_v54 = vpop.f32.mrb[63].mxu0  ;;  %v11474_v58 = vpop.f32.mrb[61].mxu1 }
 0x3fa   : > { %v6202_v56 = vadd.f32 %v11453_v52, %v6161_v47  ;;  %v11456_v57 = vadd.f32 %v11455_v54, %v11454_v53  ;;  %v11475_v59 = vadd.f32 %v11474_v58, %v11473_v55  ;;  %v11476_v60 = vpop.f32.mrb[62].mxu1  ;;  %v13950_v47 = vmul.u32 64, %v13947_v45  ;;  %v8048_v55 = vld [vmem:[%s14444_s1] sm:$0xf] }
 0x3fb   : > { %v11477_v62 = vpop.f32.mrb[63].mxu1  ;;  %v572_v52 = vadd.s32 40, %v13789_v46  ;;  %v573_v53 = vadd.s32 48, %v13789_v46  ;;  %v13383_v54 = vmov 1.0|1.0   ;;  %v575_v58 = vadd.s32 64, %v13789_v46 }
 0x3fc   : > { %v6205_v61 = vadd.f32 %v11456_v57, %v6164_v49  ;;  %v13928_v63 = vadd.f32 %v11475_v59, %v6202_v56  ;;  %v11478_v0 = vadd.f32 %v11477_v62, %v11476_v60  ;;  %v13954_v49 = vadd.s32 64, %v13950_v47 }
 0x3fd   : > { %vm586_vm3 = vcmp.ge.s32.totalorder %v13789_v46, %v13950_v47  ;;  %vm587_vm4 = vcmp.ge.s32.totalorder %v568_v48, %v13950_v47  ;;  %vm588_vm10 = vcmp.ge.s32.totalorder %v569_v37, %v13950_v47  ;;  %vm589_vm11 = vcmp.ge.s32.totalorder %v570_v50, %v13950_v47 }
 0x3fe   : > { %v13930_v2 = vadd.f32 %v11478_v0, %v6205_v61  ;;  %vm603_vm5 = vcmp.lt.s32.totalorder %v13789_v46, %v13954_v49  ;;  %vm604_vm6 = vcmp.lt.s32.totalorder %v568_v48, %v13954_v49  ;;  %vm605_vm12 = vcmp.lt.s32.totalorder %v569_v37, %v13954_v49 }
 0x3ff   : > { %vm619_vm7 = vmand %vm586_vm3, %vm603_vm5  ;;  %vm606_vm13 = vcmp.lt.s32.totalorder %v570_v50, %v13954_v49  ;;  %vm590_vm15 = vcmp.ge.s32.totalorder %v571_v51, %v13950_v47  ;;  %vm607_vm3 = vcmp.lt.s32.totalorder %v571_v51, %v13954_v49  ;;  %v574_v56 = vadd.s32 56, %v13789_v46  ;;  %v6476_v50 = vld [vmem:[#allocation10] sm:$0x1] }
 0x400   : > { %v6650_v3 = vpack.c.bf16 %v13930_v2, %v13928_v63  ;;  %vm620_vm8 = vmand %vm587_vm4, %vm604_vm6  ;;  %vm591_vm5 = vcmp.ge.s32.totalorder %v572_v52, %v13950_v47  ;;  %vm608_vm6 = vcmp.lt.s32.totalorder %v572_v52, %v13954_v49  ;;  %v576_v59 = vadd.s32 72, %v13789_v46 }
 0x401   : > { %vm13967_vm9 = vmpackc.low %vm620_vm8, %vm619_vm7  ;;  %v14425_v60 = vmov 0  ;;  %v577_v61 = vadd.s32 80, %v13789_v46  ;;  %v578_v62 = vadd.s32 88, %v13789_v46  ;;  %v579_v0 = vadd.s32 96, %v13789_v46 }
 0x402   : > { %vm621_vm14 = vmand %vm588_vm10, %vm605_vm12  ;;  %vm592_vm10 = vcmp.ge.s32.totalorder %v573_v53, %v13950_v47  ;;  %vm609_vm12 = vcmp.lt.s32.totalorder %v573_v53, %v13954_v49  ;;  %v580_v2 = vadd.s32 104, %v13789_v46  ;;  %v651_v53 = vmul.u32 64, %v13789_v46 }
 0x403   : > { %vm622_vm4 = vmand %vm589_vm11, %vm606_vm13  ;;  %vm593_vm13 = vcmp.ge.s32.totalorder %v574_v56, %v13950_v47 }
 0x404   : > { %vm13986_vm7 = vmpackc.low %vm622_vm4, %vm621_vm14  ;;  %vm610_vm14 = vcmp.lt.s32.totalorder %v574_v56, %v13954_v49  ;;  %v653_v56 = vadd.s32 64, %v651_v53 }
 0x405   : > { %vm623_vm8 = vmand %vm590_vm15, %vm607_vm3  ;;  %vm594_vm3 = vcmp.ge.s32.totalorder %v575_v58, %v13950_v47 }
 0x406   : > { %vm624_vm11 = vmand %vm591_vm5, %vm608_vm6  ;;  %vm611_vm5 = vcmp.lt.s32.totalorder %v575_v58, %v13954_v49 }
 0x407   : > { %vm14002_vm4 = vmpackc.low %vm624_vm11, %vm623_vm8  ;;  %vm612_vm8 = vcmp.lt.s32.totalorder %v576_v59, %v13954_v49 }
 0x408   : > { %v14426_v60 = vsel %vm14002_vm4, 4294967295, %v14425_v60  ;;  %vm625_vm15 = vmand %vm592_vm10, %vm609_vm12  ;;  %vm596_vm12 = vcmp.ge.s32.totalorder %v577_v61, %v13950_v47 }
 0x409   : > { %vm626_vm6 = vmand %vm593_vm13, %vm610_vm14  ;;  %vm597_vm14 = vcmp.ge.s32.totalorder %v578_v62, %v13950_v47 }
 0x40a   : > { %vm14015_vm11 = vmpackc.low %vm626_vm6, %vm625_vm15  ;;  %vm614_vm15 = vcmp.lt.s32.totalorder %v578_v62, %v13954_v49 }
 0x40b   : > { %vm627_vm10 = vmand %vm594_vm3, %vm611_vm5  ;;  %vm598_vm5 = vcmp.ge.s32.totalorder %v579_v0, %v13950_v47 }
 0x416   : > { %v6352_v6 = vpop.f32.mrb[64].mxu0 }
 0x417   : > { %v6353_v7 = vadd.f32 %v6352_v6, %v6316_v5  ;;  %v11717_v8 = vpop.f32.mrb[65].mxu0  ;;  %v581_v6 = vadd.s32 112, %v13789_v46 }
 0x418   : > { %v6355_v9 = vpop.f32.mrb[66].mxu0 }
 0x419   : > { %v6359_v10 = vmul.f32 0.044715, %v6353_v7  ;;  %v11718_v11 = vpop.f32.mrb[67].mxu0  ;;  %v6358_v18 = vmul.f32 0.5, %v6353_v7 }
 0x41b   : > { %v6360_v12 = vmul.f32 %v6359_v10, %v6353_v7 }
 0x41d   : > { %v6361_v13 = vmul.f32 %v6360_v12, %v6353_v7 }
 0x41f   : > { %v6362_v14 = vadd.f32 %v6361_v13, %v6353_v7  ;;  %v582_v7 = vadd.s32 120, %v13789_v46 }
 0x421   : > { %v6363_v16 = vmul.f32 0.7978846, %v6362_v14 }
 0x423   : > { %12979 = vtanh.f32 %v6363_v16 }
 0x42d   : > { %v12980_v17 = vpop.eup %12979 }
 0x42e   : > { %v6365_v19 = vadd.f32 1.0, %v12980_v17 }
 0x430   : > { %v6366_v20 = vmul.f32 %v6365_v19, %v6358_v18 }
 0x432   : > { %v6383_v22 = vpack.c.bf16 %v6366_v20, %v6366_v20 }
 0x434   : > { %11736 = vmatmul.mubr.bf16.vlgmr.msra.gmra.mrb[64].mxu1 %v6383_v22 }
 0x435   : > { %6732 = vmatpush1.bf16.msra.mxu1 %v12731_v21  ;;  %6763 = vmatprep.mubr.bf16.mxu1 %v13382_v25 }
 0x436   : > { %6733 = vmatprep.subr.bf16.mxu1 %v12736_v23  ;;  %v6644_v27 = vpop.f32.mrb[68].mxu0 }
 0x437   : > { %v11757_v29 = vpop.f32.mrb[69].mxu0  ;;  %11759 = vmatprep.subr.msk.mxu0 %vm14378_vm2, %v6644_v27 }
 0x438   : > { %v6647_v30 = vpop.f32.mrb[70].mxu0  ;;  %11760 = vmatpush3.msk.msra.mxu0 %vm14378_vm2, %v6644_v27  ;;  %vm613_vm2 = vcmp.lt.s32.totalorder %v577_v61, %v13954_v49 }
 0x439   : > { %6734 = vmatpush1.bf16.msra.mxu1 %v12734_v24  ;;  %v11758_v32 = vpop.f32.mrb[71].mxu0  ;;  %11762 = vmatmul.mubr.msk.f32.vlgmr.msra.gmra.mrb[72].mxu0 %vm14379_vm1, %v13938_v28  ;;  %vm629_vm3 = vmand %vm596_vm12, %vm613_vm2  ;;  %vm615_vm1 = vcmp.lt.s32.totalorder %v579_v0, %v13954_v49 }
 0x43a   : > { %6735 = vmatprep.subr.bf16.mxu1 %v12739_v26  ;;  %11803 = vmatprep.mubr.msk.f32.mxu0 %vm14376_vm0, %v13380_v35  ;;  %vm595_vm0 = vcmp.ge.s32.totalorder %v576_v59, %v13950_v47  ;;  %vm631_vm2 = vmand %vm598_vm5, %vm615_vm1  ;;  %vm600_vm1 = vcmp.ge.s32.totalorder %v581_v6, %v13950_v47 }
 0x43b   : > { %vm628_vm13 = vmand %vm595_vm0, %vm612_vm8  ;;  %vm599_vm0 = vcmp.ge.s32.totalorder %v580_v2, %v13950_v47  ;;  %vm616_vm8 = vcmp.lt.s32.totalorder %v580_v2, %v13954_v49 }
 0x43c   : > { %vm14031_vm6 = vmpackc.low %vm628_vm13, %vm627_vm10 }
 0x43d   : > { %6736 = vmatpush1.bf16.msra.mxu1 %v12737_v31  ;;  %vm632_vm12 = vmand %vm599_vm0, %vm616_vm8  ;;  %vm6939_vm8 = vcmask 15360   ;;  %v13384_v31 = vmov 0.0|0.0  }
 0x43e   : > { %6737 = vmatprep.subr.bf16.mxu1 %v12742_v33  ;;  %vm14055_vm13 = vmpackc.low %vm632_vm12, %vm631_vm2  ;;  %12015 = vmatprep.subr.bf16.mxu0 %v13384_v31  ;;  %vm14381_vm2 = vcmask 130048   ;;  %vm14437_vm12 = vcmask 7168  }
 0x441   : > { %6738 = vmatpush1.bf16.msra.mxu1 %v12740_v34 }
 0x442   : > { %6739 = vmatprep.subr.bf16.mxu1 %v12745_v36 }
 0x445   : > { %6740 = vmatpush1.bf16.msra.mxu1 %v12743_v38 }
 0x446   : > { %6741 = vmatprep.subr.bf16.mxu1 %v12748_v39 }
 0x449   : > { %6742 = vmatpush1.bf16.msra.mxu1 %v12746_v40 }
 0x44a   : > { %6743 = vmatprep.subr.bf16.mxu1 %v12751_v41 }
 0x44d   : > { %6744 = vmatpush1.bf16.msra.mxu1 %v12749_v42 }
 0x44e   : > { %6745 = vmatprep.subr.bf16.mxu1 %v12754_v43 }
 0x451   : > { %6746 = vmatpush1.bf16.msra.mxu1 %v12752_v44 }
 0x452   : > { %11984 = vmatprep.subr.msk.bf16.mxu1 %vm13967_vm9, %v13383_v54 }
 0x454   : > { %6764 = vmatmul.mubr.bf16.vlgmr.msra.gmra.mrb[68].mxu1 %v6650_v3 }
 0x455   : > { %11986 = vmatpush3.bf16.msk.msra.mxu1 %vm13967_vm9, %v13383_v54 }
 0x456   : > { %11988 = vmatprep.subr.msk.bf16.mxu1 %vm13986_vm7, %v13383_v54 }
 0x459   : > { %11990 = vmatpush3.bf16.msk.msra.mxu1 %vm13986_vm7, %v13383_v54 }
 0x45a   : > { %11992 = vmatprep.subr.msk.bf16.mxu1 %vm14002_vm4, %v13383_v54 }
 0x45d   : > { %11994 = vmatpush3.bf16.msk.msra.mxu1 %vm14002_vm4, %v13383_v54  ;;  %vm630_vm4 = vmand %vm597_vm14, %vm614_vm15  ;;  %vm617_vm14 = vcmp.lt.s32.totalorder %v581_v6, %v13954_v49  ;;  %vm618_vm15 = vcmp.lt.s32.totalorder %v582_v7, %v13954_v49 }
 0x45e   : > { %11996 = vmatprep.subr.msk.bf16.mxu1 %vm14015_vm11, %v13383_v54  ;;  %vm14045_vm10 = vmpackc.low %vm630_vm4, %vm629_vm3  ;;  %vm601_vm4 = vcmp.ge.s32.totalorder %v582_v7, %v13950_v47 }
 0x45f   : > { %vm633_vm3 = vmand %vm600_vm1, %vm617_vm14  ;;  %vm14438_vm1 = vcmask 1040384  }
 0x460   : > { %vm634_vm5 = vmand %vm601_vm4, %vm618_vm15  ;;  %vm652_vm15 = vcmp.ge.s32.totalorder %v13947_v45, %v651_v53  ;;  %v12775_v53 = vld [vmem:[#allocation13 + $0x170] ss:$80 sps:$4 sm:$0xff]  }
 0x461   : > { %11998 = vmatpush3.bf16.msk.msra.mxu1 %vm14015_vm11, %v13383_v54  ;;  %vm14074_vm0 = vmpackc.low %vm634_vm5, %vm633_vm3  ;;  %vm654_vm3 = vcmp.lt.s32.totalorder %v13947_v45, %v653_v56  ;;  %v12778_v56 = vld [vmem:[#allocation13 + $0x178] ss:$80 sps:$4 sm:$0xff]  }
 0x462   : > { %12000 = vmatprep.subr.msk.bf16.mxu1 %vm14031_vm6, %v13383_v54  ;;  %vm14439_vm4 = vmmov %vm14438_vm1 }
 0x463   : > { %vm14440_vm14 = vmmov %vm14437_vm12 }
 0x464   : > { %vm655_vm5 = vmand %vm652_vm15, %vm654_vm3 }
 0x465   : > { %12002 = vmatpush3.bf16.msk.msra.mxu1 %vm14031_vm6, %v13383_v54 }
 0x466   : > { %12004 = vmatprep.subr.msk.bf16.mxu1 %vm14045_vm10, %v13383_v54 }
 0x469   : > { %12006 = vmatpush3.bf16.msk.msra.mxu1 %vm14045_vm10, %v13383_v54 }
 0x46a   : > { %12008 = vmatprep.subr.msk.bf16.mxu1 %vm14055_vm13, %v13383_v54 }
 0x46d   : > { %12010 = vmatpush3.bf16.msk.msra.mxu1 %vm14055_vm13, %v13383_v54 }
 0x46e   : > { %12012 = vmatprep.subr.msk.bf16.mxu1 %vm14074_vm0, %v13383_v54 }
 0x471   : > { %12014 = vmatpush3.bf16.msk.msra.mxu1 %vm14074_vm0, %v13383_v54 }
 0x507   : > { %v14084_v9 = vpop.f32.mrb[64].mxu1 }
 0x508   : > { %v11737_v10 = vpop.f32.mrb[65].mxu1 }
 0x509   : > { %v6471_v11 = vpop.f32.mrb[66].mxu1  ;;  %v12755_v10 = vld [vmem:[#allocation13 + $0x2c] ss:$80 sps:$4 sm:$0xff]  }
 0x50a   : > { %v11738_v12 = vpop.f32.mrb[67].mxu1  ;;  %v12756_v11 = vld [vmem:[#allocation13 + $0xcc] ss:$80 sps:$4 sm:$0xff]  }
 0x50b   : > { %v12757_v12 = vld [vmem:[#allocation13 + $0x16c] ss:$80 sps:$4 sm:$0xff]  }
 0x50c   : > { %v11763_v13 = vpop.f32.mrb[72].mxu0 }
 0x50d   : > { %v6851_v14 = vpop.f32.mrb[73].mxu0 }
 0x527   : > { %v6765_v16 = vpop.f32.mrb[68].mxu1 }
 0x528   : > { %v6860_v17 = vmul.f32 %v6851_v14, %v6765_v16  ;;  %v14086_v18 = vpop.f32.mrb[69].mxu1  ;;  %v12759_v14 = vld [vmem:[#allocation13 + $0x2ac] ss:$80 sps:$4 sm:$0xff]  }
 0x529   : > { %v6769_v19 = vpop.f32.mrb[70].mxu1  ;;  %v12760_v16 = vld [vmem:[#allocation13 + $0x34c] ss:$80 sps:$4 sm:$0xff]  }
 0x52a   : > { %v6861_v20 = vmul.f32 %v11763_v13, %v6769_v19  ;;  %v14088_v21 = vpop.f32.mrb[71].mxu1  ;;  %11796 = vmatprep.mubr.f32.mxu1 %v6860_v17  ;;  %v12758_v13 = vld [vmem:[#allocation13 + $0x20c] ss:$80 sps:$4 sm:$0xff]  }
 0x52b   : > { %v12761_v17 = vld [vmem:[#allocation13 + $0x3ec] ss:$80 sps:$4 sm:$0xff]  }
 0x52c   : > { %11797 = vmatmul.mubr.f32.vlgmr.msra.gmra.mrb[72].mxu1 %v6861_v20 }
 0x52d   : > { %7595 = vmatprep.mubr.bf16.mxu1 %v13382_v25 }
 0x5ff   : > { %v11798_v22 = vpop.f32.mrb[72].mxu1 }
 0x600   : > { %v6938_v23 = vmul.f32 0.125, %v11798_v22  ;;  %v6928_v24 = vpop.f32.mrb[73].mxu1  ;;  %v14130_v22 = vld [vmem:[#allocation16 + $0x20] sm:$0xff] }
 0x601   : > { %v6937_v26 = vmul.f32 0.125, %v6928_v24 }
 0x602   : > { %v6941_v27 = vsel %vm6939_vm8, %v6938_v23, -inf }
 0x603   : > { %v6940_v29 = vsel %vm6939_vm8, %v6937_v26, -inf }
 0x604   : > { %v6942_v30 = vmax.f32 %v6940_v29, %v6941_v27 }
 0x606   : > { %6943 = vmax.xlane.f32.xlu0 %v6942_v30 }
 0x693   : > { %v6944_v32 = vpop.xlane.xlu0 %6943 }
 0x694   : > { %v6945_v33 = vrot.slane %v6944_v32, 4 }
 0x696   : > { %v6946_v34 = vmax.f32 %v6944_v32, %v6945_v33 }
 0x698   : > { %v6947_v36 = vrot.slane %v6946_v34, 2 }
 0x69a   : > { %v6948_v38 = vmax.f32 %v6946_v34, %v6947_v36  ;;  %v12763_v36 = vld [vmem:[#allocation13 + $0x30] ss:$80 sps:$4 sm:$0xff]  }
 0x69c   : > { %v6949_v39 = vrot.slane %v6948_v38, 1 }
 0x69e   : > { %v6950_v40 = vmax.f32 %v6948_v38, %v6949_v39  ;;  %v12765_v38 = vld [vmem:[#allocation13 + $0x34] ss:$80 sps:$4 sm:$0xff]   ;;  %v12766_v39 = vld [vmem:[#allocation13 + $0x38] ss:$80 sps:$4 sm:$0xff]  }
 0x69f   : > { %7563 = vmatprep.subr.bf16.mxu1 %v12765_v38  ;;  %v12812_v38 = vld [vmem:[#allocation14 + $0x84] ss:$8 sps:$4 sm:$0xff]  }
 0x6a0   : > { %12045 = vpush %v6950_v40  ;;  %v12768_v40 = vld [vmem:[#allocation13 + $0x3c] ss:$80 sps:$4 sm:$0xff]   ;;  %7564 = vmatpush1.bf16.msra.mxu1 %v12763_v36 }
 0x6d1   : > { %s12046_s21 = spop %12045 }
 0x6d2   : > { %v6952_v41 = vstv %s12046_s21 }
 0x6d3   : > { %v6953_v42 = vsub.f32 %v6937_v26, %v6952_v41  ;;  %v6954_v43 = vsub.f32 %v6938_v23, %v6952_v41  ;;  %v7322_v23 = vrot.slane %v14130_v22, 3  ;;  %v12771_v41 = vld [vmem:[#allocation13 + $0xd4] ss:$80 sps:$4 sm:$0xff]  }
 0x6d4   : > { %7565 = vmatprep.subr.bf16.mxu1 %v12771_v41  ;;  %v12815_v41 = vld [vmem:[#allocation14 + $0x194] ss:$8 sps:$4 sm:$0xff]  }
 0x6d5   : > { %v6955_v44 = vmul.f32 1.442695, %v6953_v42  ;;  %v6957_v47 = vmul.f32 1.442695, %v6954_v43  ;;  %v12774_v42 = vld [vmem:[#allocation13 + $0xdc] ss:$80 sps:$4 sm:$0xff]  }
 0x6d6   : > { %v12769_v43 = vld [vmem:[#allocation13 + $0xd0] ss:$80 sps:$4 sm:$0xff]  }
 0x6d7   : > { %12981 = vpow2.f32 %v6955_v44  ;;  %v12772_v44 = vld [vmem:[#allocation13 + $0xd8] ss:$80 sps:$4 sm:$0xff]   ;;  %7566 = vmatpush1.bf16.msra.mxu1 %v12769_v43  ;;  %v12817_v43 = vld [vmem:[#allocation14 + $0x114] ss:$8 sps:$4 sm:$0xff]  }
 0x6d8   : > { %12983 = vpow2.f32 %v6957_v47 }
 0x6e1   : > { %v12982_v48 = vpop.eup %12981 }
 0x6e2   : > { %v12984_v49 = vpop.eup %12983 }
 0x6e3   : > { %v12016_v37 = vpack.c.bf16 %v12984_v49, %v12982_v48 }
 0x6e5   : > { %12017 = vmatpush3.bf16.msra.mxu0 %v12016_v37 }
 0x6e8   : > { %11804 = vmatmul.mubr.msk.f32.vlgmr.msra.gmra.mrb[74].mxu0 %vm14381_vm2, %v6476_v50  ;;  %vm7121_vm2 = vcmask 1041408  }
 0x6e9   : > { %11808 = vmatprep.mubr.msk.f32.mxu0 %vm14437_vm12, %v13924_v1  ;;  %v14105_v1 = vsel %vm655_vm5, 1.0, %v13380_v35  ;;  %vm14441_vm12 = vmmov 0  }
 0x7bb   : > { %v7029_v51 = vpop.f32.mrb[74].mxu0 }
 0x7bc   : > { %v11805_v52 = vpop.f32.mrb[75].mxu0  ;;  %11806 = vmatprep.subr.msk.mxu0 %vm14438_vm1, %v7029_v51  ;;  %vm14442_vm1 = vcmask 130048  }
 0x7bd   : > { %11807 = vmatpush3.msk.msra.mxu0 %vm14439_vm4, %v7029_v51  ;;  %vm7368_vm4 = vcmask 1041409   ;;  %v12777_v51 = vld [vmem:[#allocation13 + $0x174] ss:$80 sps:$4 sm:$0xff]   ;;  %v12780_v52 = vld [vmem:[#allocation13 + $0x17c] ss:$80 sps:$4 sm:$0xff]  }
 0x7be   : > { %11809 = vmatmul.mubr.msk.f32.vlgmr.msra.gmra.mrb[76].mxu0 %vm14440_vm14, %v13938_v28  ;;  %11811 = vmatprep.subr.msk.mxu0 %vm7121_vm2, %v14105_v1  ;;  %vm14443_vm14 = vnez %v14426_v60 }
 0x7bf   : > { %11812 = vmatpush3.msk.msra.mxu0 %vm7121_vm2, %v14105_v1  ;;  %7567 = vmatprep.subr.bf16.mxu1 %v12777_v51  ;;  %v12825_v51 = vld [vmem:[#allocation14 + $0x134] ss:$8 sps:$4 sm:$0xff]  }
 0x7c0   : > { %12018 = vmatprep.subr.bf16.mxu0 %v13384_v31  ;;  %7568 = vmatpush1.bf16.msra.mxu1 %v12775_v53  ;;  %v12827_v53 = vld [vmem:[#allocation14 + $0x1c4] ss:$8 sps:$4 sm:$0xff]  }
 0x891   : > { %v11810_v28 = vpop.f32.mrb[76].mxu0 }
 0x892   : > { %12985 = vrcp.f32 %v11810_v28  ;;  %v7102_v46 = vpop.f32.mrb[77].mxu0  ;;  %v12783_v28 = vld [vmem:[#allocation13 + $0x214] ss:$80 sps:$4 sm:$0xff]  }
 0x893   : > { %12987 = vrcp.f32 %v7102_v46  ;;  %v12786_v46 = vld [vmem:[#allocation13 + $0x21c] ss:$80 sps:$4 sm:$0xff]   ;;  %7569 = vmatprep.subr.bf16.mxu1 %v12783_v28 }
 0x894   : > { %v12829_v28 = vld [vmem:[#allocation14 + $0x144] ss:$8 sps:$4 sm:$0xff]  }
 0x89c   : > { %v12986_v58 = vpop.eup %12985 }
 0x89d   : > { %v12988_v59 = vpop.eup %12987  ;;  %v7114_v61 = vmul.f32 %v12986_v58, %v12984_v49  ;;  %v12781_v58 = vld [vmem:[#allocation13 + $0x210] ss:$80 sps:$4 sm:$0xff]  }
 0x89e   : > { %v7112_v45 = vmul.f32 %v12988_v59, %v12982_v48  ;;  %v12784_v59 = vld [vmem:[#allocation13 + $0x218] ss:$80 sps:$4 sm:$0xff]   ;;  %7570 = vmatpush1.bf16.msra.mxu1 %v12781_v58  ;;  %v12831_v58 = vld [vmem:[#allocation14 + $0x1d4] ss:$8 sps:$4 sm:$0xff]  }
 0x8a0   : > { %11813 = vmatprep.mubr.msk.f32.mxu0 %vm6939_vm8, %v7112_v45  ;;  %v12789_v45 = vld [vmem:[#allocation13 + $0x2b4] ss:$80 sps:$4 sm:$0xff]  }
 0x8a1   : > { %11814 = vmatmul.mubr.msk.f32.vlgmr.msra.gmra.mrb[78].mxu0 %vm6939_vm8, %v7114_v61  ;;  %v12792_v61 = vld [vmem:[#allocation13 + $0x2bc] ss:$80 sps:$4 sm:$0xff]   ;;  %7571 = vmatprep.subr.bf16.mxu1 %v12789_v45 }
 0x8a2   : > { %11820 = vmatprep.mubr.msk.f32.mxu0 %vm14441_vm12, %v13380_v35  ;;  %v12833_v45 = vld [vmem:[#allocation14 + $0x154] ss:$8 sps:$4 sm:$0xff]  }
 0x974   : > { %v11815_v62 = vpop.f32.mrb[78].mxu0 }
 0x975   : > { %v7201_v0 = vmul.f32 %v11815_v62, %v14088_v21  ;;  %v7191_v2 = vpop.f32.mrb[79].mxu0  ;;  %v12787_v62 = vld [vmem:[#allocation13 + $0x2b0] ss:$80 sps:$4 sm:$0xff]  }
 0x976   : > { %v7200_v6 = vmul.f32 %v7191_v2, %v14086_v18  ;;  %v12762_v18 = vld [vmem:[#allocation13 + $0x48c] ss:$80 sps:$4 sm:$0xff]   ;;  %7572 = vmatpush1.bf16.msra.mxu1 %v12787_v62  ;;  %v12795_v2 = vld [vmem:[#allocation13 + $0x354] ss:$80 sps:$4 sm:$0xff]  }
 0x977   : > { %7573 = vmatprep.subr.bf16.mxu1 %v12795_v2  ;;  %v12835_v62 = vld [vmem:[#allocation14 + $0x1e4] ss:$8 sps:$4 sm:$0xff]  }
 0x978   : > { %v12019_v7 = vpack.c.bf16 %v7201_v0, %v7200_v6  ;;  %v12790_v0 = vld [vmem:[#allocation13 + $0x2b8] ss:$80 sps:$4 sm:$0xff]   ;;  %v12798_v6 = vld [vmem:[#allocation13 + $0x35c] ss:$80 sps:$4 sm:$0xff]  }
 0x979   : > { %v12837_v2 = vld [vmem:[#allocation14 + $0x164] ss:$8 sps:$4 sm:$0xff]  }
 0x97a   : > { %12020 = vmatpush3.bf16.msra.mxu0 %v12019_v7  ;;  %v12793_v7 = vld [vmem:[#allocation13 + $0x350] ss:$80 sps:$4 sm:$0xff]  }
 0x97b   : > { %11823 = vmatprep.subr.bf16.mxu0 %v13380_v35  ;;  %7574 = vmatpush1.bf16.msra.mxu1 %v12793_v7  ;;  %v12839_v7 = vld [vmem:[#allocation14 + $0x1f4] ss:$8 sps:$4 sm:$0xff]  }
 0x97d   : > { %11821 = vmatmul.mubr.msk.f32.vlgmr.msra.gmra.mrb[80].mxu0 %vm14442_vm1, %v6476_v50 }
 0x97e   : > { %11824 = vmatpush3.bf16.msra.mxu0 %v12755_v10  ;;  %11839 = vmatprep.mubr.msk.bf16.mxu0 %vm14441_vm12, %v13380_v35  ;;  %v12796_v10 = vld [vmem:[#allocation13 + $0x358] ss:$80 sps:$4 sm:$0xff]  }
 0x97f   : > { %11825 = vmatprep.subr.bf16.mxu0 %v13380_v35 }
 0x982   : > { %11826 = vmatpush3.bf16.msra.mxu0 %v12756_v11  ;;  %v12799_v11 = vld [vmem:[#allocation13 + $0x3f0] ss:$80 sps:$4 sm:$0xff]  }
 0x983   : > { %11827 = vmatprep.subr.bf16.mxu0 %v13380_v35 }
 0x986   : > { %11828 = vmatpush3.bf16.msra.mxu0 %v12757_v12  ;;  %v12801_v12 = vld [vmem:[#allocation13 + $0x3f4] ss:$80 sps:$4 sm:$0xff]  }
 0x987   : > { %11829 = vmatprep.subr.bf16.mxu0 %v13380_v35  ;;  %7575 = vmatprep.subr.bf16.mxu1 %v12801_v12  ;;  %v12842_v12 = vld [vmem:[#allocation14 + $0x74] ss:$8 sps:$4 sm:$0xff]  }
 0x988   : > { %7576 = vmatpush1.bf16.msra.mxu1 %v12799_v11  ;;  %v12841_v11 = vld [vmem:[#allocation14 + $0x174] ss:$8 sps:$4 sm:$0xff]  }
 0x98a   : > { %11830 = vmatpush3.bf16.msra.mxu0 %v12758_v13  ;;  %v12802_v13 = vld [vmem:[#allocation13 + $0x3f8] ss:$80 sps:$4 sm:$0xff]  }
 0x98b   : > { %11831 = vmatprep.subr.bf16.mxu0 %v13380_v35 }
 0x98e   : > { %11832 = vmatpush3.bf16.msra.mxu0 %v12759_v14  ;;  %v12804_v14 = vld [vmem:[#allocation13 + $0x3fc] ss:$80 sps:$4 sm:$0xff]  }
 0x98f   : > { %11833 = vmatprep.subr.bf16.mxu0 %v13380_v35 }
 0x992   : > { %11834 = vmatpush3.bf16.msra.mxu0 %v12760_v16  ;;  %v12807_v16 = vld [vmem:[#allocation13 + $0x494] ss:$80 sps:$4 sm:$0xff]  }
 0x993   : > { %11835 = vmatprep.subr.bf16.mxu0 %v13380_v35  ;;  %7577 = vmatprep.subr.bf16.mxu1 %v12807_v16  ;;  %v562_v16 = vld [vmem:[#allocation16 + $0x28] sm:$0xff] }
 0x996   : > { %11836 = vmatpush3.bf16.msra.mxu0 %v12761_v17  ;;  %v12810_v17 = vld [vmem:[#allocation13 + $0x49c] ss:$80 sps:$4 sm:$0xff]  }
 0x997   : > { %11837 = vmatprep.subr.bf16.mxu0 %v13380_v35 }
 0x99a   : > { %11838 = vmatpush3.bf16.msra.mxu0 %v12762_v18  ;;  %v12805_v18 = vld [vmem:[#allocation13 + $0x490] ss:$80 sps:$4 sm:$0xff]  }
 0x99b   : > { %7604 = vmatprep.subr.bf16.mxu0 %v12768_v40  ;;  %7578 = vmatpush1.bf16.msra.mxu1 %v12805_v18  ;;  %v12814_v40 = vld [vmem:[#allocation14 + $0x4] ss:$8 sps:$4 sm:$0xff]   ;;  %v7555_v18 = vrot.slane %v14130_v22, 6 }
 0x99c   : > { %11548 = vmatprep.subr.bf16.mxu1 %v12812_v38 }
 0xa50   : > { %v7268_v19 = vpop.f32.mrb[80].mxu0 }
 0xa51   : > { %v7272_v20 = vpack.c.bf16 %v7268_v19, %v7268_v19  ;;  %v11822_v21 = vpop.f32.mrb[81].mxu0  ;;  %v12808_v19 = vld [vmem:[#allocation13 + $0x498] ss:$80 sps:$4 sm:$0xff]  }
 0xa53   : > { %11840 = vmatmul.mubr.bf16.vlgmr.msra.gmra.mrb[84].mxu0 %v7272_v20  ;;  %v12811_v20 = vld [vmem:[#allocation14 + $0x184] ss:$8 sps:$4 sm:$0xff]  }
 0xa54   : > { %7636 = vmatprep.mubr.bf16.mxu0 %v13382_v25  ;;  %7605 = vmatpush1.bf16.msra.mxu0 %v12766_v39  ;;  %v12813_v39 = vld [vmem:[#allocation14 + $0x104] ss:$8 sps:$4 sm:$0xff]  }
 0xa55   : > { %7606 = vmatprep.subr.bf16.mxu0 %v12774_v42  ;;  %v12816_v42 = vld [vmem:[#allocation14 + $0x94] ss:$8 sps:$4 sm:$0xff]  }
 0xa58   : > { %7607 = vmatpush1.bf16.msra.mxu0 %v12772_v44  ;;  %v12818_v44 = vld [vmem:[#allocation14 + $0x14] ss:$8 sps:$4 sm:$0xff]  }
 0xa59   : > { %7608 = vmatprep.subr.bf16.mxu0 %v12780_v52  ;;  %v12826_v52 = vld [vmem:[#allocation14 + $0x34] ss:$8 sps:$4 sm:$0xff]  }
 0xa5c   : > { %7609 = vmatpush1.bf16.msra.mxu0 %v12778_v56  ;;  %v12828_v56 = vld [vmem:[#allocation14 + $0xc4] ss:$8 sps:$4 sm:$0xff]  }
 0xa5d   : > { %7610 = vmatprep.subr.bf16.mxu0 %v12786_v46  ;;  %v12830_v46 = vld [vmem:[#allocation14 + $0x44] ss:$8 sps:$4 sm:$0xff]  }
 0xa60   : > { %7611 = vmatpush1.bf16.msra.mxu0 %v12784_v59  ;;  %v12832_v59 = vld [vmem:[#allocation14 + $0xd4] ss:$8 sps:$4 sm:$0xff]  }
 0xa61   : > { %7612 = vmatprep.subr.bf16.mxu0 %v12792_v61  ;;  %v12834_v61 = vld [vmem:[#allocation14 + $0x54] ss:$8 sps:$4 sm:$0xff]  }
 0xa64   : > { %7613 = vmatpush1.bf16.msra.mxu0 %v12790_v0  ;;  %v12836_v0 = vld [vmem:[#allocation14 + $0xe4] ss:$8 sps:$4 sm:$0xff]  }
 0xa65   : > { %7614 = vmatprep.subr.bf16.mxu0 %v12798_v6  ;;  %v12838_v6 = vld [vmem:[#allocation14 + $0x64] ss:$8 sps:$4 sm:$0xff]  }
 0xa68   : > { %7615 = vmatpush1.bf16.msra.mxu0 %v12796_v10  ;;  %v12840_v10 = vld [vmem:[#allocation14 + $0xf4] ss:$8 sps:$4 sm:$0xff]  }
 0xa69   : > { %7616 = vmatprep.subr.bf16.mxu0 %v12804_v14  ;;  %v563_v14 = vld [vmem:[#allocation16 + $0x30] sm:$0xff] }
 0xa6c   : > { %7617 = vmatpush1.bf16.msra.mxu0 %v12802_v13  ;;  %v12845_v13 = vld [vmem:[#allocation13 + $0x8] ss:$80 sps:$4 sm:$0xff]  }
 0xa6d   : > { %7618 = vmatprep.subr.bf16.mxu0 %v12810_v17  ;;  %v564_v17 = vld [vmem:[#allocation16 + $0x38] sm:$0xff] }
 0xa70   : > { %7619 = vmatpush1.bf16.msra.mxu0 %v12808_v19  ;;  %v7557_v19 = vrot.slane %v563_v14, 6 }
 0xa71   : > { %11570 = vmatprep.subr.bf16.mxu0 %v12811_v20  ;;  %v7556_v20 = vrot.slane %v562_v16, 6 }
 0xb26   : > { %v7358_v24 = vpop.f32.mrb[84].mxu0 }
 0xb27   : > { %v7359_v26 = vadd.f32 %v7358_v24, %v7322_v23  ;;  %v11841_v27 = vpop.f32.mrb[85].mxu0 }
 0xb28   : > { %v7361_v29 = vpop.f32.mrb[86].mxu0 }
 0xb29   : > { %v7365_v30 = vrot.slane %v7359_v26, 7  ;;  %v11842_v32 = vpop.f32.mrb[87].mxu0 }
 0xb2b   : > { %v7367_v33 = vadd.f32 %v14130_v22, %v7365_v30  ;;  %v7384_v30 = vrot.slane %v14130_v22, 4 }
 0xb2d   : > { %v7369_v34 = vsel %vm7368_vm4, %v7367_v33, 0.0 }
 0xb2e   : > { %7370 = vadd.xlane.f32.xlu0 %v7369_v34 }
 0xbbb   : > { %v7371_v47 = vpop.xlane.xlu0 %7370 }
 0xbbc   : > { %v7373_v48 = vmul.f32 0.0078125, %v7371_v47  ;;  %v12820_v47 = vld [vmem:[#allocation14 + $0xa4] ss:$8 sps:$4 sm:$0xff]  }
 0xbbe   : > { %v7374_v49 = vsub.f32 %v7367_v33, %v7373_v48  ;;  %v12821_v48 = vld [vmem:[#allocation14 + $0x124] ss:$8 sps:$4 sm:$0xff]  }
 0xbc0   : > { %v7375_v37 = vmul.f32 %v7374_v49, %v7374_v49 }
 0xbc2   : > { %v7376_v50 = vsel %vm7368_vm4, %v7375_v37, 0.0  ;;  %v12823_v37 = vld [vmem:[#allocation14 + $0x1b4] ss:$8 sps:$4 sm:$0xff]  }
 0xbc3   : > { %7377 = vadd.xlane.f32.xlu1 %v7376_v50  ;;  %v12824_v50 = vld [vmem:[#allocation14 + $0xb4] ss:$8 sps:$4 sm:$0xff]  }
 0xc50   : > { %v7378_v21 = vpop.xlane.xlu1 %7377 }
 0xc51   : > { %v7379_v24 = vmul.f32 0.0078125, %v7378_v21  ;;  %v7558_v21 = vrot.slane %v564_v17, 6 }
 0xc53   : > { %v7380_v26 = vadd.f32 1e-06, %v7379_v24 }
 0xc55   : > { %12989 = vrsqrt.f32 %v7380_v26 }
 0xc5f   : > { %v12990_v27 = vpop.eup %12989 }
 0xc60   : > { %v7382_v29 = vmul.f32 %v12990_v27, %v7374_v49  ;;  %v12822_v49 = vld [vmem:[#allocation14 + $0x24] ss:$8 sps:$4 sm:$0xff]  }
 0xc62   : > { %v7383_v32 = vmul.f32 %v7382_v29, %v7322_v23  ;;  %v12819_v23 = vld [vmem:[#allocation14 + $0x1a4] ss:$8 sps:$4 sm:$0xff]  }
 0xc64   : > { %v14141_v33 = vadd.f32 %v7384_v30, %v7383_v32 }
 0xc66   : > { %v7387_v34 = vpack.c.bf16 %v14141_v33, %v14141_v33 }
 0xc68   : > { %v7389_v36 = vshrl.u32 %v7387_v34, 16 }
 0xc6a   : > { %7596 = vmatmul.mubr.bf16.vlgmr.msra.gmra.mrb[76].mxu1 %v7389_v36  ;;  %7637 = vmatmul.mubr.bf16.vlgmr.msra.gmra.mrb[88].mxu0 %v7389_v36 }
 0xc6b   : > { %11571 = vmatpush3.bf16.msra.mxu0 %v12813_v39  ;;  %11549 = vmatpush3.bf16.msra.mxu1 %v12814_v40 }
 0xc6c   : > { %11572 = vmatprep.subr.bf16.mxu0 %v12815_v41  ;;  %11550 = vmatprep.subr.bf16.mxu1 %v12816_v42 }
 0xc6f   : > { %11573 = vmatpush3.bf16.msra.mxu0 %v12817_v43  ;;  %11551 = vmatpush3.bf16.msra.mxu1 %v12818_v44 }
 0xc70   : > { %11574 = vmatprep.subr.bf16.mxu0 %v12819_v23  ;;  %11552 = vmatprep.subr.bf16.mxu1 %v12820_v47 }
 0xc73   : > { %11575 = vmatpush3.bf16.msra.mxu0 %v12821_v48  ;;  %11553 = vmatpush3.bf16.msra.mxu1 %v12822_v49 }
 0xc74   : > { %11576 = vmatprep.subr.bf16.mxu0 %v12823_v37  ;;  %11554 = vmatprep.subr.bf16.mxu1 %v12824_v50 }
 0xc77   : > { %11577 = vmatpush3.bf16.msra.mxu0 %v12825_v51  ;;  %11555 = vmatpush3.bf16.msra.mxu1 %v12826_v52 }
 0xc78   : > { %11578 = vmatprep.subr.bf16.mxu0 %v12827_v53  ;;  %11556 = vmatprep.subr.bf16.mxu1 %v12828_v56 }
 0xc7b   : > { %11579 = vmatpush3.bf16.msra.mxu0 %v12829_v28  ;;  %11557 = vmatpush3.bf16.msra.mxu1 %v12830_v46 }
 0xc7c   : > { %11580 = vmatprep.subr.bf16.mxu0 %v12831_v58  ;;  %11558 = vmatprep.subr.bf16.mxu1 %v12832_v59 }
 0xc7f   : > { %11581 = vmatpush3.bf16.msra.mxu0 %v12833_v45  ;;  %11559 = vmatpush3.bf16.msra.mxu1 %v12834_v61 }
 0xc80   : > { %11582 = vmatprep.subr.bf16.mxu0 %v12835_v62  ;;  %11560 = vmatprep.subr.bf16.mxu1 %v12836_v0 }
 0xc83   : > { %11583 = vmatpush3.bf16.msra.mxu0 %v12837_v2  ;;  %11561 = vmatpush3.bf16.msra.mxu1 %v12838_v6 }
 0xc84   : > { %11584 = vmatprep.subr.bf16.mxu0 %v12839_v7  ;;  %11562 = vmatprep.subr.bf16.mxu1 %v12840_v10 }
 0xc87   : > { %11585 = vmatpush3.bf16.msra.mxu0 %v12841_v11  ;;  %11563 = vmatpush3.bf16.msra.mxu1 %v12842_v12 }
 0xc88   : > { %11843 = vmatprep.subr.bf16.mxu1 %v13380_v35  ;;  %8300 = vmatprep.subr.bf16.mxu0 %v12845_v13 }
 0xd3d   : > { %v7597_v24 = vpop.f32.mrb[76].mxu1  ;;  %v7638_v26 = vpop.f32.mrb[88].mxu0 }
 0xd3e   : > { %v7598_v27 = vadd.f32 %v7597_v24, %v7555_v18  ;;  %v7639_v29 = vadd.f32 %v7638_v26, %v7557_v19  ;;  %v7599_v30 = vpop.f32.mrb[77].mxu1  ;;  %v7640_v32 = vpop.f32.mrb[89].mxu0 }
 0xd3f   : > { %v7600_v34 = vadd.f32 %v7599_v30, %v7556_v20  ;;  %v7641_v36 = vadd.f32 %v7640_v32, %v7558_v21  ;;  %v7601_v38 = vpop.f32.mrb[78].mxu1  ;;  %v7642_v39 = vpop.f32.mrb[90].mxu0  ;;  %v12843_v32 = vld [vmem:[#allocation13 + $0x4] ss:$80 sps:$4 sm:$0xff]  }
 0xd40   : > { %v7649_v40 = vmul.f32 0.044715, %v7598_v27  ;;  %v7651_v41 = vmul.f32 0.044715, %v7639_v29  ;;  %v7602_v42 = vpop.f32.mrb[79].mxu1  ;;  %v7643_v43 = vpop.f32.mrb[91].mxu0 }
 0xd41   : > { %v7650_v44 = vmul.f32 0.044715, %v7600_v34  ;;  %v7652_v23 = vmul.f32 0.044715, %v7641_v36  ;;  %v7645_v6 = vmul.f32 0.5, %v7598_v27  ;;  %v7646_v11 = vmul.f32 0.5, %v7600_v34 }
 0xd42   : > { %v7653_v47 = vmul.f32 %v7649_v40, %v7598_v27  ;;  %v7655_v48 = vmul.f32 %v7651_v41, %v7639_v29  ;;  %v7648_v14 = vmul.f32 0.5, %v7641_v36  ;;  %v7647_v19 = vmul.f32 0.5, %v7639_v29  ;;  %v12854_v40 = vld [vmem:[#allocation13 + $0x1e8] ss:$80 sps:$4 sm:$0xff]   ;;  %v12852_v41 = vld [vmem:[#allocation13 + $0x1e4] ss:$80 sps:$4 sm:$0xff]  }
 0xd43   : > { %v7654_v49 = vmul.f32 %v7650_v44, %v7600_v34  ;;  %v7656_v37 = vmul.f32 %v7652_v23, %v7641_v36  ;;  %v12857_v42 = vld [vmem:[#allocation13 + $0x288] ss:$80 sps:$4 sm:$0xff]   ;;  %v12855_v43 = vld [vmem:[#allocation13 + $0x284] ss:$80 sps:$4 sm:$0xff]  }
 0xd44   : > { %v7657_v50 = vmul.f32 %v7653_v47, %v7598_v27  ;;  %v7659_v51 = vmul.f32 %v7655_v48, %v7639_v29  ;;  %v12860_v44 = vld [vmem:[#allocation13 + $0x328] ss:$80 sps:$4 sm:$0xff]   ;;  %v12858_v23 = vld [vmem:[#allocation13 + $0x324] ss:$80 sps:$4 sm:$0xff]  }
 0xd45   : > { %v7658_v52 = vmul.f32 %v7654_v49, %v7600_v34  ;;  %v7660_v53 = vmul.f32 %v7656_v37, %v7641_v36  ;;  %v12863_v47 = vld [vmem:[#allocation13 + $0x3c8] ss:$80 sps:$4 sm:$0xff]   ;;  %v12861_v48 = vld [vmem:[#allocation13 + $0x3c4] ss:$80 sps:$4 sm:$0xff]  }
 0xd46   : > { %v7661_v56 = vadd.f32 %v7657_v50, %v7598_v27  ;;  %v7663_v28 = vadd.f32 %v7659_v51, %v7639_v29  ;;  %v12848_v27 = vld [vmem:[#allocation13 + $0xa8] ss:$80 sps:$4 sm:$0xff]   ;;  %v12864_v37 = vld [vmem:[#allocation13 + $0x464] ss:$80 sps:$4 sm:$0xff]   ;;  %v8219_v50 = vpack.c.bf16 %v13865_v15, %v13865_v15 }
 0xd47   : > { %v7662_v46 = vadd.f32 %v7658_v52, %v7600_v34  ;;  %v7664_v58 = vadd.f32 %v7660_v53, %v7641_v36  ;;  %v12846_v34 = vld [vmem:[#allocation13 + $0xa4] ss:$80 sps:$4 sm:$0xff]   ;;  %v12851_v29 = vld [vmem:[#allocation13 + $0x148] ss:$80 sps:$4 sm:$0xff]   ;;  %v7941_v52 = vrot.slane %v14130_v22, 7 }
 0xd48   : > { %v7665_v59 = vmul.f32 0.7978846, %v7661_v56  ;;  %v7667_v62 = vmul.f32 0.7978846, %v7663_v28  ;;  %v12849_v36 = vld [vmem:[#allocation13 + $0x144] ss:$80 sps:$4 sm:$0xff]  }
 0xd49   : > { %v7666_v45 = vmul.f32 0.7978846, %v7662_v46  ;;  %v7668_v61 = vmul.f32 0.7978846, %v7664_v58  ;;  %v12866_v49 = vld [vmem:[#allocation13 + $0x468] ss:$80 sps:$4 sm:$0xff]  }
 0xd4a   : > { %12991 = vtanh.f32 %v7665_v59 }
 0xd4b   : > { %12993 = vtanh.f32 %v7666_v45 }
 0xd4c   : > { %12995 = vtanh.f32 %v7668_v61 }
 0xd4d   : > { %12997 = vtanh.f32 %v7667_v62 }
 0xd54   : > { %v12992_v0 = vpop.eup %12991 }
 0xd55   : > { %v12994_v2 = vpop.eup %12993  ;;  %v7673_v7 = vadd.f32 1.0, %v12992_v0 }
 0xd56   : > { %v12996_v10 = vpop.eup %12995  ;;  %v7674_v12 = vadd.f32 1.0, %v12994_v2 }
 0xd57   : > { %v12998_v13 = vpop.eup %12997  ;;  %v7676_v16 = vadd.f32 1.0, %v12996_v10  ;;  %v7677_v17 = vmul.f32 %v7673_v7, %v7645_v6 }
 0xd58   : > { %v7678_v18 = vmul.f32 %v7674_v12, %v7646_v11  ;;  %v7675_v20 = vadd.f32 1.0, %v12998_v13  ;;  %v12867_v11 = vld [vmem:[#allocation13] ss:$80 sps:$4 sm:$0xff]  }
 0xd59   : > { %v7680_v21 = vmul.f32 %v7676_v16, %v7648_v14  ;;  %v7745_v38 = vpack.c.bf16 %v7677_v17, %v7677_v17 }
 0xd5a   : > { %v7746_v24 = vpack.c.bf16 %v7678_v18, %v7678_v18  ;;  %v7679_v26 = vmul.f32 %v7675_v20, %v7647_v19  ;;  %v12869_v20 = vld [vmem:[#allocation13 + $0x140] ss:$80 sps:$4 sm:$0xff]  }
 0xd5b   : > { %v7748_v30 = vpack.c.bf16 %v7680_v21, %v7680_v21  ;;  %v12870_v21 = vld [vmem:[#allocation13 + $0x1e0] ss:$80 sps:$4 sm:$0xff]  }
 0xd5c   : > { %7975 = vmatprep.mubr.bf16.mxu1 %v7746_v24  ;;  %v7747_v39 = vpack.c.bf16 %v7679_v26, %v7679_v26  ;;  %v12871_v24 = vld [vmem:[#allocation13 + $0x280] ss:$80 sps:$4 sm:$0xff]  }
 0xd5d   : > { %8015 = vmatprep.mubr.bf16.mxu0 %v7748_v30  ;;  %7976 = vmatmul.mubr.bf16.vlgmr.msra.gmra.mrb[80].mxu1 %v7745_v38  ;;  %v12872_v26 = vld [vmem:[#allocation13 + $0x320] ss:$80 sps:$4 sm:$0xff]  }
 0xd5e   : > { %8016 = vmatmul.mubr.bf16.vlgmr.msra.gmra.mrb[92].mxu0 %v7747_v39  ;;  %11859 = vmatprep.mubr.msk.bf16.mxu1 %vm14441_vm12, %v13380_v35  ;;  %v12873_v30 = vld [vmem:[#allocation13 + $0x3c0] ss:$80 sps:$4 sm:$0xff]  }
 0xd5f   : > { %8301 = vmatpush1.bf16.msra.mxu0 %v12843_v32  ;;  %8332 = vmatprep.mubr.bf16.mxu0 %v13382_v25  ;;  %v12874_v32 = vld [vmem:[#allocation13 + $0x460] ss:$80 sps:$4 sm:$0xff]  }
 0xd60   : > { %8302 = vmatprep.subr.bf16.mxu0 %v12848_v27  ;;  %11844 = vmatpush3.bf16.msra.mxu1 %v12867_v11  ;;  %v12876_v11 = vld [vmem:[#allocation13 + $0xac] ss:$80 sps:$4 sm:$0xff]  }
 0xd61   : > { %11845 = vmatprep.subr.bf16.mxu1 %v13380_v35 }
 0xd63   : > { %8303 = vmatpush1.bf16.msra.mxu0 %v12846_v34  ;;  %v14171_v34 = vld [vmem:[#allocation16 + $0x40] sm:$0xff] }
 0xd64   : > { %8304 = vmatprep.subr.bf16.mxu0 %v12851_v29  ;;  %v8040_v29 = vrot.slane %v14171_v34, 7 }
 0xd67   : > { %8305 = vmatpush1.bf16.msra.mxu0 %v12849_v36 }
 0xd68   : > { %8306 = vmatprep.subr.bf16.mxu0 %v12854_v40 }
 0xd6b   : > { %8307 = vmatpush1.bf16.msra.mxu0 %v12852_v41 }
 0xd6c   : > { %8308 = vmatprep.subr.bf16.mxu0 %v12857_v42 }
 0xd6f   : > { %8309 = vmatpush1.bf16.msra.mxu0 %v12855_v43 }
 0xd70   : > { %8310 = vmatprep.subr.bf16.mxu0 %v12860_v44  ;;  %v14175_v44 = vld [vmem:[#allocation16] sm:$0xff] }
 0xd73   : > { %8311 = vmatpush1.bf16.msra.mxu0 %v12858_v23 }
 0xd74   : > { %8312 = vmatprep.subr.bf16.mxu0 %v12863_v47 }
 0xd77   : > { %8313 = vmatpush1.bf16.msra.mxu0 %v12861_v48 }
 0xd78   : > { %8314 = vmatprep.subr.bf16.mxu0 %v12866_v49 }
 0xd7b   : > { %8315 = vmatpush1.bf16.msra.mxu0 %v12864_v37 }
 0xd7c   : > { %11863 = vmatprep.subr.mxu0 %v13380_v35 }
 0xd7e   : > { %8333 = vmatmul.mubr.bf16.vlgmr.msra.gmra.mrb[96].mxu0 %v8219_v50 }
 0xd7f   : > { %11865 = vmatprep.mubr.msk.f32.mxu0 %vm14441_vm12, %v13380_v35 }
 0xe30   : > { %v11564_v51 = vpop.f32.mrb[80].mxu1 }
 0xe31   : > { %v11586_v53 = vpop.f32.mrb[92].mxu0  ;;  %v11565_v56 = vpop.f32.mrb[81].mxu1 }
 0xe32   : > { %v11566_v28 = vadd.f32 %v11565_v56, %v11564_v51  ;;  %v11587_v46 = vpop.f32.mrb[93].mxu0  ;;  %v11567_v58 = vpop.f32.mrb[82].mxu1 }
 0xe33   : > { %v11588_v59 = vadd.f32 %v11587_v46, %v11586_v53  ;;  %v11589_v45 = vpop.f32.mrb[94].mxu0  ;;  %v11568_v61 = vpop.f32.mrb[83].mxu1 }
 0xe34   : > { %v7978_v62 = vadd.f32 %v11566_v28, %v7941_v52  ;;  %v11590_v0 = vpop.f32.mrb[95].mxu0  ;;  %v8049_v45 = vld [vmem:[#allocation8] sm:$0x1] }
 0xe36   : > { %v8018_v15 = vadd.f32 %v11588_v59, %v7978_v62 }
 0xe38   : > { %v8024_v2 = vrot.slane %v8018_v15, 7 }
 0xe3a   : > { %v8026_v6 = vadd.f32 %v8024_v2, %v14141_v33  ;;  %v12868_v33 = vld [vmem:[#allocation13 + $0xa0] ss:$80 sps:$4 sm:$0xff]  }
 0xe3b   : > { %11846 = vmatpush3.bf16.msra.mxu1 %v12868_v33  ;;  %v12882_v33 = vld [vmem:[#allocation13 + $0x46c] ss:$80 sps:$4 sm:$0xff]  }
 0xe3c   : > { %v8027_v7 = vsel %vm7368_vm4, %v8026_v6, 0.0  ;;  %11847 = vmatprep.subr.bf16.mxu1 %v13380_v35 }
 0xe3d   : > { %8028 = vadd.xlane.f32.xlu1 %v8027_v7 }
 0xe3f   : > { %11848 = vmatpush3.bf16.msra.mxu1 %v12869_v20 }
 0xe40   : > { %11849 = vmatprep.subr.bf16.mxu1 %v13380_v35 }
 0xe43   : > { %11850 = vmatpush3.bf16.msra.mxu1 %v12870_v21 }
 0xe44   : > { %11851 = vmatprep.subr.bf16.mxu1 %v13380_v35 }
 0xe47   : > { %11852 = vmatpush3.bf16.msra.mxu1 %v12871_v24 }
 0xe48   : > { %11853 = vmatprep.subr.bf16.mxu1 %v13380_v35 }
 0xe4b   : > { %11854 = vmatpush3.bf16.msra.mxu1 %v12872_v26  ;;  %v8854_v26 = vrot.slane %v14175_v44, 2 }
 0xe4c   : > { %11855 = vmatprep.subr.bf16.mxu1 %v13380_v35 }
 0xe4f   : > { %11856 = vmatpush3.bf16.msra.mxu1 %v12873_v30 }
 0xe50   : > { %11857 = vmatprep.subr.bf16.mxu1 %v13380_v35 }
 0xe51   : > { %v14158_v10 = vpop.f32.mrb[96].mxu0 }
 0xe52   : > { %v14160_v22 = vpop.f32.mrb[97].mxu0 }
 0xe53   : > { %v8338_v12 = vpop.f32.mrb[98].mxu0  ;;  %11858 = vmatpush3.bf16.msra.mxu1 %v12874_v32 }
 0xe54   : > { %v8339_v13 = vpop.f32.mrb[99].mxu0  ;;  %12021 = vmatprep.subr.bf16.mxu1 %v13384_v31  ;;  %v12878_v12 = vld [vmem:[#allocation13 + $0x1ec] ss:$80 sps:$4 sm:$0xff]  }
 0xe55   : > { %v12879_v13 = vld [vmem:[#allocation13 + $0x28c] ss:$80 sps:$4 sm:$0xff]  }
 0xeca   : > { %v8029_v14 = vpop.xlane.xlu1 %8028 }
 0xecb   : > { %v8030_v16 = vmul.f32 0.0078125, %v8029_v14  ;;  %v12880_v14 = vld [vmem:[#allocation13 + $0x32c] ss:$80 sps:$4 sm:$0xff]  }
 0xecd   : > { %v8031_v17 = vsub.f32 %v8026_v6, %v8030_v16  ;;  %v12881_v16 = vld [vmem:[#allocation13 + $0x3cc] ss:$80 sps:$4 sm:$0xff]  }
 0xecf   : > { %v8032_v18 = vmul.f32 %v8031_v17, %v8031_v17 }
 0xed1   : > { %v8033_v19 = vsel %vm7368_vm4, %v8032_v18, 0.0 }
 0xed2   : > { %8034 = vadd.xlane.f32.xlu0 %v8033_v19 }
 0xf5f   : > { %v8035_v38 = vpop.xlane.xlu0 %8034 }
 0xf60   : > { %v8036_v39 = vmul.f32 0.0078125, %v8035_v38 }
 0xf62   : > { %v8037_v27 = vadd.f32 1e-06, %v8036_v39 }
 0xf64   : > { %12999 = vrsqrt.f32 %v8037_v27 }
 0xf6e   : > { %v13000_v36 = vpop.eup %12999 }
 0xf6f   : > { %v8039_v40 = vmul.f32 %v13000_v36, %v8031_v17  ;;  %v12883_v36 = vld [vmem:[#allocation13 + $0x10] ss:$80 sps:$4 sm:$0xff]  }
 0xf71   : > { %v8042_v41 = vmul.f32 %v8040_v29, %v8039_v40  ;;  %v12885_v40 = vld [vmem:[#allocation13 + $0x14] ss:$80 sps:$4 sm:$0xff]  }
 0xf73   : > { %v8043_v42 = vadd.f32 %v14171_v34, %v8042_v41  ;;  %v12886_v41 = vld [vmem:[#allocation13 + $0x18] ss:$80 sps:$4 sm:$0xff]  }
 0xf75   : > { %v8045_v43 = vrot.slane %v8043_v42, 1  ;;  %v12888_v42 = vld [vmem:[#allocation13 + $0x1c] ss:$80 sps:$4 sm:$0xff]  }
 0xf77   : > { %v14178_v23 = vadd.f32 %v14175_v44, %v8045_v43  ;;  %v12891_v43 = vld [vmem:[#allocation13 + $0xb4] ss:$80 sps:$4 sm:$0xff]  }
 0xf79   : > { %v8130_v47 = vpack.c.bf16 %v14178_v23, %v14178_v23 }
 0xf7b   : > { %11860 = vmatmul.mubr.bf16.vlgmr.msra.gmra.mrb[84].mxu1 %v8130_v47  ;;  %v12894_v47 = vld [vmem:[#allocation13 + $0xbc] ss:$80 sps:$4 sm:$0xff]  }
 0xf7c   : > { %12023 = vmatpush3.bf16.msk.msra.mxu1 %vm13967_vm9, %v13383_v54  ;;  %11900 = vmatprep.mubr.msk.f32.mxu1 %vm14441_vm12, %v13380_v35  ;;  %vm14445_vm9 = vcmask 1040384  }
 0xf7d   : > { %12024 = vmatprep.subr.bf16.mxu1 %v13384_v31 }
 0xf80   : > { %12026 = vmatpush3.bf16.msk.msra.mxu1 %vm13986_vm7, %v13383_v54  ;;  %vm14446_vm7 = vcmask 7168  }
 0xf81   : > { %12027 = vmatprep.subr.bf16.mxu1 %v13384_v31 }
 0xf84   : > { %12029 = vmatpush3.bf16.msk.msra.mxu1 %vm14443_vm14, %v13383_v54 }
 0xf85   : > { %12030 = vmatprep.subr.bf16.mxu1 %v13384_v31 }
 0xf88   : > { %12032 = vmatpush3.bf16.msk.msra.mxu1 %vm14015_vm11, %v13383_v54  ;;  %vm8489_vm11 = vcmask 11264  }
 0xf89   : > { %12033 = vmatprep.subr.bf16.mxu1 %v13384_v31 }
 0xf8c   : > { %12035 = vmatpush3.bf16.msk.msra.mxu1 %vm14031_vm6, %v13383_v54  ;;  %vm8508_vm6 = vcmask 1043456  }
 0xf8d   : > { %12036 = vmatprep.subr.bf16.mxu1 %v13384_v31 }
 0xf90   : > { %12038 = vmatpush3.bf16.msk.msra.mxu1 %vm14045_vm10, %v13383_v54  ;;  %vm8504_vm10 = vcmask 31744  }
 0xf91   : > { %12039 = vmatprep.subr.bf16.mxu1 %v13384_v31 }
 0xf94   : > { %12041 = vmatpush3.bf16.msk.msra.mxu1 %vm14055_vm13, %v13383_v54  ;;  %vm14447_vm13 = vmmov %vm14445_vm9 }
 0xf95   : > { %12042 = vmatprep.subr.bf16.mxu1 %v13384_v31 }
 0xf98   : > { %12044 = vmatpush3.bf16.msk.msra.mxu1 %vm14074_vm0, %v13383_v54  ;;  %vm14448_vm0 = vmmov %vm14446_vm7 }
 0xf99   : > { %11923 = vmatprep.subr.bf16.mxu1 %v13380_v35 }
0x104e   : > { %v8213_v57 = vpop.f32.mrb[84].mxu1 }
0x104f   : > { %v11861_v60 = vpop.f32.mrb[85].mxu1  ;;  %11864 = vmatpush3.msk.msra.mxu0 %vm14445_vm9, %v8213_v57  ;;  %v12897_v57 = vld [vmem:[#allocation13 + $0x154] ss:$80 sps:$4 sm:$0xff]  }
0x1050   : > { %v8216_v63 = vpop.f32.mrb[86].mxu1  ;;  %11866 = vmatmul.mubr.msk.f32.vlgmr.msra.gmra.mrb[82].mxu0 %vm14446_vm7, %v8048_v55  ;;  %11903 = vmatprep.subr.mxu0 %v13380_v35  ;;  %v12895_v60 = vld [vmem:[#allocation13 + $0x150] ss:$80 sps:$4 sm:$0xff]  }
0x1051   : > { %v11862_v3 = vpop.f32.mrb[87].mxu1  ;;  %11905 = vmatprep.mubr.msk.f32.mxu0 %vm14441_vm12, %v13380_v35  ;;  %v12898_v63 = vld [vmem:[#allocation13 + $0x158] ss:$80 sps:$4 sm:$0xff]  }
0x1123   : > { %v8413_v54 = vpop.f32.mrb[82].mxu0 }
0x1124   : > { %v8417_v4 = vmul.f32 %v8413_v54, %v14158_v10  ;;  %v11867_v5 = vpop.f32.mrb[83].mxu0  ;;  %v12875_v10 = vld [vmem:[#allocation13 + $0xc] ss:$80 sps:$4 sm:$0xff]  }
0x1126   : > { %11901 = vmatmul.mubr.f32.vlgmr.msra.gmra.mrb[74].mxu1 %v8417_v4 }
0x1127   : > { %11939 = vmatprep.mubr.msk.bf16.mxu1 %vm14441_vm12, %v13380_v35  ;;  %11924 = vmatpush3.bf16.msra.mxu1 %v12875_v10 }
0x1128   : > { %11925 = vmatprep.subr.bf16.mxu1 %v13380_v35 }
0x112b   : > { %11926 = vmatpush3.bf16.msra.mxu1 %v12876_v11 }
0x112c   : > { %11927 = vmatprep.subr.bf16.mxu1 %v13380_v35 }
0x11f9   : > { %v8484_v8 = vpop.f32.mrb[74].mxu1 }
0x11fa   : > { %v8488_v31 = vmul.f32 0.125, %v8484_v8  ;;  %v11902_v48 = vpop.f32.mrb[75].mxu1 }
0x11fb   : > { %v12906_v48 = vld [vmem:[#allocation13 + $0x1fc] ss:$80 sps:$4 sm:$0xff]  }
0x11fc   : > { %v8490_v49 = vsel %vm8489_vm11, %v8488_v31, -inf }
0x11fd   : > { %8491 = vmax.xlane.f32.xlu1 %v8490_v49  ;;  %v12901_v49 = vld [vmem:[#allocation13 + $0x1f0] ss:$80 sps:$4 sm:$0xff]  }
0x128a   : > { %v8492_v37 = vpop.xlane.xlu1 %8491 }
0x128b   : > { %v8493_v50 = vrot.slane %v8492_v37, 4 }
0x128d   : > { %v8494_v51 = vmax.f32 %v8492_v37, %v8493_v50  ;;  %v12904_v37 = vld [vmem:[#allocation13 + $0x1f8] ss:$80 sps:$4 sm:$0xff]   ;;  %v12909_v50 = vld [vmem:[#allocation13 + $0x294] ss:$80 sps:$4 sm:$0xff]  }
0x128f   : > { %v8495_v52 = vrot.slane %v8494_v51, 2 }
0x1291   : > { %v8496_v53 = vmax.f32 %v8494_v51, %v8495_v52  ;;  %v12912_v51 = vld [vmem:[#allocation13 + $0x29c] ss:$80 sps:$4 sm:$0xff]   ;;  %v12907_v52 = vld [vmem:[#allocation13 + $0x290] ss:$80 sps:$4 sm:$0xff]  }
0x1293   : > { %v8497_v56 = vrot.slane %v8496_v53, 1 }
0x1295   : > { %v8498_v28 = vmax.f32 %v8496_v53, %v8497_v56  ;;  %v12910_v53 = vld [vmem:[#allocation13 + $0x298] ss:$80 sps:$4 sm:$0xff]   ;;  %v12915_v56 = vld [vmem:[#allocation13 + $0x334] ss:$80 sps:$4 sm:$0xff]  }
0x1297   : > { %12047 = vpush %v8498_v28  ;;  %v12918_v28 = vld [vmem:[#allocation13 + $0x33c] ss:$80 sps:$4 sm:$0xff]  }
0x12c8   : > { %s12048_s7 = spop %12047 }
0x12c9   : > { %v8500_v46 = vstv %s12048_s7 }
0x12ca   : > { %v8501_v58 = vsub.f32 %v8488_v31, %v8500_v46  ;;  %v12903_v31 = vld [vmem:[#allocation13 + $0x1f4] ss:$80 sps:$4 sm:$0xff]   ;;  %v12913_v46 = vld [vmem:[#allocation13 + $0x330] ss:$80 sps:$4 sm:$0xff]  }
0x12cc   : > { %v8502_v59 = vmul.f32 1.442695, %v8501_v58  ;;  %v12916_v58 = vld [vmem:[#allocation13 + $0x338] ss:$80 sps:$4 sm:$0xff]  }
0x12ce   : > { %13001 = vpow2.f32 %v8502_v59  ;;  %v12919_v59 = vld [vmem:[#allocation13 + $0x3d0] ss:$80 sps:$4 sm:$0xff]  }
0x12d8   : > { %v13002_v61 = vpop.eup %13001 }
0x12d9   : > { %11904 = vmatpush3.msk.msra.mxu0 %vm8508_vm6, %v13002_v61 }
0x12da   : > { %11906 = vmatmul.mubr.msk.f32.vlgmr.msra.gmra.mrb[100].mxu0 %vm8504_vm10, %v8049_v45  ;;  %11908 = vmatprep.subr.mxu0 %v13380_v35 }
0x12db   : > { %11910 = vmatprep.mubr.msk.f32.mxu0 %vm14441_vm12, %v13380_v35 }
0x13ad   : > { %v8578_v62 = vpop.f32.mrb[100].mxu0 }
0x13ae   : > { %11909 = vmatpush3.msk.msra.mxu0 %vm14447_vm13, %v8578_v62  ;;  %v11907_v0 = vpop.f32.mrb[101].mxu0  ;;  %v12924_v62 = vld [vmem:[#allocation13 + $0x3dc] ss:$80 sps:$4 sm:$0xff]  }
0x13af   : > { %11911 = vmatmul.mubr.msk.f32.vlgmr.msra.gmra.mrb[102].mxu0 %vm14448_vm0, %v8048_v55  ;;  %11913 = vmatprep.subr.mxu0 %v13380_v35  ;;  %v12892_v55 = vld [vmem:[#allocation13 + $0xb8] ss:$80 sps:$4 sm:$0xff]   ;;  %v12927_v0 = vld [vmem:[#allocation13 + $0x474] ss:$80 sps:$4 sm:$0xff]  }
0x13b0   : > { %11914 = vmatpush3.msk.msra.mxu0 %vm7121_vm2, %v14105_v1  ;;  %11915 = vmatprep.mubr.msk.f32.mxu0 %vm14441_vm12, %v13380_v35  ;;  %v12877_v1 = vld [vmem:[#allocation13 + $0x14c] ss:$80 sps:$4 sm:$0xff]  }
0x13b1   : > { %11918 = vmatprep.subr.mxu0 %v13380_v35  ;;  %11928 = vmatpush3.bf16.msra.mxu1 %v12877_v1 }
0x13b2   : > { %11929 = vmatprep.subr.bf16.mxu1 %v13380_v35 }
0x13b5   : > { %11930 = vmatpush3.bf16.msra.mxu1 %v12878_v12  ;;  %v8910_v12 = vrot.slane %v14175_v44, 3 }
0x13b6   : > { %11931 = vmatprep.subr.bf16.mxu1 %v13380_v35 }
0x13b9   : > { %11932 = vmatpush3.bf16.msra.mxu1 %v12879_v13 }
0x13ba   : > { %11933 = vmatprep.subr.bf16.mxu1 %v13380_v35 }
0x13bd   : > { %11934 = vmatpush3.bf16.msra.mxu1 %v12880_v14 }
0x13be   : > { %11935 = vmatprep.subr.bf16.mxu1 %v13380_v35 }
0x13c1   : > { %11936 = vmatpush3.bf16.msra.mxu1 %v12881_v16  ;;  %v8913_v16 = vrot.slane %v14175_v44, 4 }
0x13c2   : > { %11937 = vmatprep.subr.bf16.mxu1 %v13380_v35 }
0x13c5   : > { %11938 = vmatpush3.bf16.msra.mxu1 %v12882_v33  ;;  %v12932_v33 = vld [vmem:[#allocation14] ss:$8 sps:$4 sm:$0xff]  }
0x13c6   : > { %9129 = vmatprep.subr.bf16.mxu1 %v12888_v42  ;;  %v12947_v42 = vld [vmem:[#allocation14 + $0xc0] ss:$8 sps:$4 sm:$0xff]  }
0x1482   : > { %v8651_v15 = vpop.f32.mrb[102].mxu0 }
0x1483   : > { %13003 = vrcp.f32 %v8651_v15  ;;  %v11912_v2 = vpop.f32.mrb[103].mxu0  ;;  %v12930_v15 = vld [vmem:[#allocation13 + $0x47c] ss:$80 sps:$4 sm:$0xff]  }
0x1484   : > { %v12925_v2 = vld [vmem:[#allocation13 + $0x470] ss:$80 sps:$4 sm:$0xff]  }
0x148d   : > { %v13004_v6 = vpop.eup %13003 }
0x148e   : > { %v8656_v7 = vmul.f32 %v13004_v6, %v13002_v61  ;;  %v12922_v61 = vld [vmem:[#allocation13 + $0x3d8] ss:$80 sps:$4 sm:$0xff]  }
0x148f   : > { %v12928_v6 = vld [vmem:[#allocation13 + $0x478] ss:$80 sps:$4 sm:$0xff]  }
0x1490   : > { %11916 = vmatmul.mubr.msk.f32.vlgmr.msra.gmra.mrb[104].mxu0 %vm6939_vm8, %v8656_v7  ;;  %vm14449_vm8 = vmmov %vm14445_vm9  ;;  %v12931_v7 = vld [vmem:[#allocation14 + $0x80] ss:$8 sps:$4 sm:$0xff]  }
0x1491   : > { %11920 = vmatprep.mubr.msk.f32.mxu0 %vm14441_vm12, %v13380_v35  ;;  %vm14450_vm2 = vmmov %vm14449_vm8 }
0x1492   : > { %vm14451_vm15 = vmmov %vm14450_vm2 }
0x1493   : > { %vm14452_vm3 = vmmov %vm14450_vm2 }
0x1563   : > { %v8726_v17 = vpop.f32.mrb[104].mxu0 }
0x1564   : > { %v8730_v18 = vmul.f32 %v8726_v17, %v14160_v22  ;;  %v11917_v19 = vpop.f32.mrb[105].mxu0 }
0x1566   : > { %11919 = vmatpush3.msk.msra.mxu0 %vm8508_vm6, %v8730_v18 }
0x1567   : > { %11921 = vmatmul.mubr.msk.f32.vlgmr.msra.gmra.mrb[106].mxu0 %vm8504_vm10, %v8049_v45  ;;  %9088 = vmatprep.subr.bf16.mxu0 %v12885_v40  ;;  %v12921_v45 = vld [vmem:[#allocation13 + $0x3d4] ss:$80 sps:$4 sm:$0xff]   ;;  %v12944_v40 = vld [vmem:[#allocation14 + $0x30] ss:$8 sps:$4 sm:$0xff]  }
0x1568   : > { %9120 = vmatprep.mubr.bf16.mxu0 %v13382_v25  ;;  %9089 = vmatpush1.bf16.msra.mxu0 %v12883_v36  ;;  %v12945_v36 = vld [vmem:[#allocation14 + $0x1b0] ss:$8 sps:$4 sm:$0xff]  }
0x1569   : > { %9090 = vmatprep.subr.bf16.mxu0 %v12891_v43  ;;  %v12949_v43 = vld [vmem:[#allocation14 + $0x1c0] ss:$8 sps:$4 sm:$0xff]  }
0x163a   : > { %v8800_v20 = vpop.f32.mrb[106].mxu0 }
0x163b   : > { %v8804_v21 = vpack.c.bf16 %v8800_v20, %v8800_v20  ;;  %v11922_v24 = vpop.f32.mrb[107].mxu0  ;;  %v12933_v20 = vld [vmem:[#allocation14 + $0x180] ss:$8 sps:$4 sm:$0xff]  }
0x163c   : > { %v12935_v24 = vld [vmem:[#allocation14 + $0x90] ss:$8 sps:$4 sm:$0xff]  }
0x163d   : > { %11940 = vmatmul.mubr.bf16.vlgmr.msra.gmra.mrb[88].mxu1 %v8804_v21  ;;  %v12934_v21 = vld [vmem:[#allocation14 + $0x100] ss:$8 sps:$4 sm:$0xff]  }
0x163e   : > { %9161 = vmatprep.mubr.bf16.mxu1 %v13382_v25  ;;  %v12889_v25 = vld [vmem:[#allocation13 + $0xb0] ss:$80 sps:$4 sm:$0xff]   ;;  %9130 = vmatpush1.bf16.msra.mxu1 %v12886_v41 }
0x163f   : > { %9131 = vmatprep.subr.bf16.mxu1 %v12894_v47  ;;  %9091 = vmatpush1.bf16.msra.mxu0 %v12889_v25  ;;  %v12946_v41 = vld [vmem:[#allocation14 + $0x130] ss:$8 sps:$4 sm:$0xff]   ;;  %v12948_v47 = vld [vmem:[#allocation14 + $0x40] ss:$8 sps:$4 sm:$0xff]  }
0x1640   : > { %9092 = vmatprep.subr.bf16.mxu0 %v12897_v57  ;;  %v12950_v25 = vld [vmem:[#allocation14 + $0x140] ss:$8 sps:$4 sm:$0xff]   ;;  %v12953_v57 = vld [vmem:[#allocation14 + $0x1d0] ss:$8 sps:$4 sm:$0xff]  }
0x1642   : > { %9132 = vmatpush1.bf16.msra.mxu1 %v12892_v55  ;;  %v12951_v55 = vld [vmem:[#allocation14 + $0xd0] ss:$8 sps:$4 sm:$0xff]  }
0x1643   : > { %9093 = vmatpush1.bf16.msra.mxu0 %v12895_v60  ;;  %v12954_v60 = vld [vmem:[#allocation14 + $0x150] ss:$8 sps:$4 sm:$0xff]  }
0x1644   : > { %9094 = vmatprep.subr.bf16.mxu0 %v12903_v31  ;;  %v12960_v31 = vld [vmem:[#allocation14 + $0x70] ss:$8 sps:$4 sm:$0xff]  }
0x1647   : > { %9095 = vmatpush1.bf16.msra.mxu0 %v12901_v49  ;;  %v559_v49 = vld [vmem:[#allocation16 + $0x10] sm:$0xff] }
0x1648   : > { %9096 = vmatprep.subr.bf16.mxu0 %v12909_v50  ;;  %v560_v50 = vld [vmem:[#allocation16 + $0x18] sm:$0xff] }
0x164b   : > { %9097 = vmatpush1.bf16.msra.mxu0 %v12907_v52  ;;  %v9082_v52 = vrot.slane %v559_v49, 5 }
0x164c   : > { %9098 = vmatprep.subr.bf16.mxu0 %v12915_v56  ;;  %v9083_v56 = vrot.slane %v560_v50, 5  ;;  %v12965_v50 = vld [vmem:[#allocation13 + $0x18c] ss:$80 sps:$4 sm:$0xff]  }
0x164f   : > { %9099 = vmatpush1.bf16.msra.mxu0 %v12913_v46 }
0x1650   : > { %9100 = vmatprep.subr.bf16.mxu0 %v12921_v45 }
0x1653   : > { %9101 = vmatpush1.bf16.msra.mxu0 %v12919_v59 }
0x1654   : > { %9102 = vmatprep.subr.bf16.mxu0 %v12927_v0 }
0x1657   : > { %9103 = vmatpush1.bf16.msra.mxu0 %v12925_v2 }
0x1658   : > { %11637 = vmatprep.subr.bf16.mxu0 %v12931_v7 }
0x1710   : > { %v8890_v30 = vpop.f32.mrb[88].mxu1 }
0x1711   : > { %v8891_v32 = vadd.f32 %v8890_v30, %v8854_v26  ;;  %v11941_v22 = vpop.f32.mrb[89].mxu1  ;;  %v12936_v26 = vld [vmem:[#allocation14 + $0x10] ss:$8 sps:$4 sm:$0xff]  }
0x1712   : > { %v8893_v38 = vpop.f32.mrb[90].mxu1  ;;  %v12937_v30 = vld [vmem:[#allocation14 + $0x190] ss:$8 sps:$4 sm:$0xff]   ;;  %v12939_v22 = vld [vmem:[#allocation14 + $0xa0] ss:$8 sps:$4 sm:$0xff]  }
0x1713   : > { %v8896_v39 = vadd.f32 %v8891_v32, %v14178_v23  ;;  %v11942_v27 = vpop.f32.mrb[91].mxu1  ;;  %v12900_v23 = vld [vmem:[#allocation13 + $0x15c] ss:$80 sps:$4 sm:$0xff]   ;;  %v12938_v32 = vld [vmem:[#allocation14 + $0x110] ss:$8 sps:$4 sm:$0xff]  }
0x1714   : > { %9133 = vmatprep.subr.bf16.mxu1 %v12900_v23  ;;  %v12940_v38 = vld [vmem:[#allocation14 + $0x20] ss:$8 sps:$4 sm:$0xff]   ;;  %v12952_v23 = vld [vmem:[#allocation14 + $0x50] ss:$8 sps:$4 sm:$0xff]  }
0x1715   : > { %v8897_v29 = vsel %vm14449_vm8, %v8896_v39, 0.0  ;;  %9134 = vmatpush1.bf16.msra.mxu1 %v12898_v63  ;;  %v12942_v27 = vld [vmem:[#allocation14 + $0x120] ss:$8 sps:$4 sm:$0xff]  }
0x1716   : > { %8898 = vadd.xlane.f32.xlu0 %v8897_v29  ;;  %9135 = vmatprep.subr.bf16.mxu1 %v12906_v48  ;;  %v12943_v29 = vld [vmem:[#allocation14 + $0xb0] ss:$8 sps:$4 sm:$0xff]   ;;  %v12955_v63 = vld [vmem:[#allocation14 + $0xe0] ss:$8 sps:$4 sm:$0xff]  }
0x1717   : > { %v12962_v48 = vld [vmem:[#allocation14 + $0x170] ss:$8 sps:$4 sm:$0xff]  }
0x1719   : > { %9136 = vmatpush1.bf16.msra.mxu1 %v12904_v37  ;;  %v558_v37 = vld [vmem:[#allocation16 + $0x8] sm:$0xff] }
0x171a   : > { %9137 = vmatprep.subr.bf16.mxu1 %v12912_v51  ;;  %v9080_v51 = vrot.slane %v14175_v44, 5 }
0x171d   : > { %9138 = vmatpush1.bf16.msra.mxu1 %v12910_v53  ;;  %v9081_v53 = vrot.slane %v558_v37, 5  ;;  %v12964_v37 = vld [vmem:[#allocation13 + $0xec] ss:$80 sps:$4 sm:$0xff]  }
0x171e   : > { %9139 = vmatprep.subr.bf16.mxu1 %v12918_v28 }
0x1721   : > { %9140 = vmatpush1.bf16.msra.mxu1 %v12916_v58 }
0x1722   : > { %9141 = vmatprep.subr.bf16.mxu1 %v12924_v62 }
0x1725   : > { %9142 = vmatpush1.bf16.msra.mxu1 %v12922_v61 }
0x1726   : > { %9143 = vmatprep.subr.bf16.mxu1 %v12930_v15 }
0x1729   : > { %9144 = vmatpush1.bf16.msra.mxu1 %v12928_v6 }
0x172a   : > { %11659 = vmatprep.subr.bf16.mxu1 %v12933_v20 }
0x17a3   : > { %v8899_v3 = vpop.xlane.xlu0 %8898 }
0x17a4   : > { %v8900_v54 = vmul.f32 0.0078125, %v8899_v3  ;;  %v12957_v3 = vld [vmem:[#allocation14 + $0x1e0] ss:$8 sps:$4 sm:$0xff]  }
0x17a6   : > { %v8901_v4 = vsub.f32 %v8896_v39, %v8900_v54  ;;  %v12941_v39 = vld [vmem:[#allocation14 + $0x1a0] ss:$8 sps:$4 sm:$0xff]  }
0x17a7   : > { %v12956_v54 = vld [vmem:[#allocation14 + $0x60] ss:$8 sps:$4 sm:$0xff]  }
0x17a8   : > { %v8902_v5 = vmul.f32 %v8901_v4, %v8901_v4 }
0x17aa   : > { %v8903_v8 = vsel %vm14450_vm2, %v8902_v5, 0.0  ;;  %v12959_v5 = vld [vmem:[#allocation14 + $0xf0] ss:$8 sps:$4 sm:$0xff]  }
0x17ab   : > { %8904 = vadd.xlane.f32.xlu1 %v8903_v8  ;;  %v12961_v8 = vld [vmem:[#allocation14 + $0x1f0] ss:$8 sps:$4 sm:$0xff]  }
0x1838   : > { %v8905_v10 = vpop.xlane.xlu1 %8904 }
0x1839   : > { %v8906_v11 = vmul.f32 0.0078125, %v8905_v10 }
0x183b   : > { %v8907_v1 = vadd.f32 1e-06, %v8906_v11 }
0x183d   : > { %13005 = vrsqrt.f32 %v8907_v1 }
0x1847   : > { %v13006_v13 = vpop.eup %13005 }
0x1848   : > { %v8909_v14 = vmul.f32 %v13006_v13, %v8901_v4  ;;  %v12958_v4 = vld [vmem:[#allocation14 + $0x160] ss:$8 sps:$4 sm:$0xff]  }
0x184a   : > { %v8912_v17 = vmul.f32 %v8910_v12, %v8909_v14 }
0x184c   : > { %v14261_v18 = vadd.f32 %v8913_v16, %v8912_v17 }
0x184e   : > { %v8916_v19 = vpack.c.bf16 %v14261_v18, %v14261_v18 }
0x1850   : > { %9121 = vmatmul.mubr.bf16.vlgmr.msra.gmra.mrb[108].mxu0 %v8916_v19  ;;  %9162 = vmatmul.mubr.bf16.vlgmr.msra.gmra.mrb[92].mxu1 %v8916_v19 }
0x1851   : > { %11638 = vmatpush3.bf16.msra.mxu0 %v12932_v33  ;;  %11660 = vmatpush3.bf16.msra.mxu1 %v12934_v21 }
0x1852   : > { %11639 = vmatprep.subr.bf16.mxu0 %v12935_v24  ;;  %11661 = vmatprep.subr.bf16.mxu1 %v12937_v30 }
0x1855   : > { %11640 = vmatpush3.bf16.msra.mxu0 %v12936_v26  ;;  %11662 = vmatpush3.bf16.msra.mxu1 %v12938_v32 }
0x1856   : > { %11641 = vmatprep.subr.bf16.mxu0 %v12939_v22  ;;  %11663 = vmatprep.subr.bf16.mxu1 %v12941_v39 }
0x1859   : > { %11642 = vmatpush3.bf16.msra.mxu0 %v12940_v38  ;;  %11664 = vmatpush3.bf16.msra.mxu1 %v12942_v27 }
0x185a   : > { %11643 = vmatprep.subr.bf16.mxu0 %v12943_v29  ;;  %11665 = vmatprep.subr.bf16.mxu1 %v12945_v36 }
0x185d   : > { %11644 = vmatpush3.bf16.msra.mxu0 %v12944_v40  ;;  %11666 = vmatpush3.bf16.msra.mxu1 %v12946_v41 }
0x185e   : > { %11645 = vmatprep.subr.bf16.mxu0 %v12947_v42  ;;  %11667 = vmatprep.subr.bf16.mxu1 %v12949_v43 }
0x1861   : > { %11646 = vmatpush3.bf16.msra.mxu0 %v12948_v47  ;;  %11668 = vmatpush3.bf16.msra.mxu1 %v12950_v25 }
0x1862   : > { %11647 = vmatprep.subr.bf16.mxu0 %v12951_v55  ;;  %11669 = vmatprep.subr.bf16.mxu1 %v12953_v57 }
0x1865   : > { %11648 = vmatpush3.bf16.msra.mxu0 %v12952_v23  ;;  %11670 = vmatpush3.bf16.msra.mxu1 %v12954_v60 }
0x1866   : > { %11649 = vmatprep.subr.bf16.mxu0 %v12955_v63  ;;  %11671 = vmatprep.subr.bf16.mxu1 %v12957_v3 }
0x1869   : > { %11650 = vmatpush3.bf16.msra.mxu0 %v12956_v54  ;;  %11672 = vmatpush3.bf16.msra.mxu1 %v12958_v4 }
0x186a   : > { %11651 = vmatprep.subr.bf16.mxu0 %v12959_v5  ;;  %11673 = vmatprep.subr.bf16.mxu1 %v12961_v8  ;;  %v12963_v8 = vld [vmem:[#allocation13 + $0x4c] ss:$80 sps:$4 sm:$0xff]  }
0x186d   : > { %11652 = vmatpush3.bf16.msra.mxu0 %v12960_v31  ;;  %11674 = vmatpush3.bf16.msra.mxu1 %v12962_v48 }
0x186e   : > { %11943 = vmatprep.subr.bf16.mxu0 %v13380_v35  ;;  %11963 = vmatprep.subr.bf16.mxu1 %v13380_v35 }
0x1923   : > { %v9122_v28 = vpop.f32.mrb[108].mxu0  ;;  %v9163_v46 = vpop.f32.mrb[92].mxu1 }
0x1924   : > { %v9123_v58 = vadd.f32 %v9122_v28, %v9080_v51  ;;  %v9164_v59 = vadd.f32 %v9163_v46, %v9082_v52  ;;  %v9124_v45 = vpop.f32.mrb[109].mxu0  ;;  %v9165_v61 = vpop.f32.mrb[93].mxu1  ;;  %v12966_v51 = vld [vmem:[#allocation13 + $0x22c] ss:$80 sps:$4 sm:$0xff]   ;;  %v6432_v28 = vrot.slane %v14171_v34, 3 }
0x1925   : > { %v9125_v62 = vadd.f32 %v9124_v45, %v9081_v53  ;;  %v9166_v0 = vadd.f32 %v9165_v61, %v9083_v56  ;;  %v9126_v15 = vpop.f32.mrb[110].mxu0  ;;  %v9167_v2 = vpop.f32.mrb[94].mxu1  ;;  %v12967_v52 = vld [vmem:[#allocation13 + $0x2cc] ss:$80 sps:$4 sm:$0xff]   ;;  %v9466_v61 = vrot.slane %v14175_v44, 6 }
0x1926   : > { %v9174_v6 = vmul.f32 0.044715, %v9123_v58  ;;  %v9176_v7 = vmul.f32 0.044715, %v9164_v59  ;;  %v9127_v10 = vpop.f32.mrb[111].mxu0  ;;  %v9168_v11 = vpop.f32.mrb[95].mxu1 }
0x1927   : > { %v9175_v1 = vmul.f32 0.044715, %v9125_v62  ;;  %v9177_v12 = vmul.f32 0.044715, %v9166_v0  ;;  %v9170_v40 = vmul.f32 0.5, %v9123_v58  ;;  %v9171_v43 = vmul.f32 0.5, %v9125_v62 }
0x1928   : > { %v9178_v13 = vmul.f32 %v9174_v6, %v9123_v58  ;;  %v9180_v14 = vmul.f32 %v9176_v7, %v9164_v59  ;;  %v9173_v55 = vmul.f32 0.5, %v9166_v0  ;;  %v9172_v63 = vmul.f32 0.5, %v9164_v59  ;;  %v12968_v53 = vld [vmem:[#allocation13 + $0x36c] ss:$80 sps:$4 sm:$0xff]  }
0x1929   : > { %v9179_v16 = vmul.f32 %v9175_v1, %v9125_v62  ;;  %v9181_v17 = vmul.f32 %v9177_v12, %v9166_v0  ;;  %v12969_v56 = vld [vmem:[#allocation13 + $0x40c] ss:$80 sps:$4 sm:$0xff]  }
0x192a   : > { %v9182_v19 = vmul.f32 %v9178_v13, %v9123_v58  ;;  %v9184_v33 = vmul.f32 %v9180_v14, %v9164_v59  ;;  %v12970_v46 = vld [vmem:[#allocation13 + $0x4ac] ss:$80 sps:$4 sm:$0xff]  }
0x192b   : > { %v9183_v20 = vmul.f32 %v9179_v16, %v9125_v62  ;;  %v9185_v21 = vmul.f32 %v9181_v17, %v9166_v0  ;;  %v12971_v17 = vld [vmem:[#allocation13 + $0x48] ss:$80 sps:$4 sm:$0xff]  }
0x192c   : > { %v9186_v24 = vadd.f32 %v9182_v19, %v9123_v58  ;;  %v9188_v26 = vadd.f32 %v9184_v33, %v9164_v59  ;;  %v6469_v58 = vadd.f32 %v14084_v9, %v6432_v28 }
0x192d   : > { %v9187_v30 = vadd.f32 %v9183_v20, %v9125_v62  ;;  %v9189_v32 = vadd.f32 %v9185_v21, %v9166_v0  ;;  %v12972_v20 = vld [vmem:[#allocation13 + $0xe8] ss:$80 sps:$4 sm:$0xff]  }
0x192e   : > { %v9190_v22 = vmul.f32 0.7978846, %v9186_v24  ;;  %v9192_v27 = vmul.f32 0.7978846, %v9188_v26  ;;  %v9599_v59 = vpack.c.bf16 %v6469_v58, %v6469_v58 }
0x192f   : > { %v9191_v38 = vmul.f32 0.7978846, %v9187_v30  ;;  %v9193_v39 = vmul.f32 0.7978846, %v9189_v32 }
0x1930   : > { %13007 = vtanh.f32 %v9190_v22  ;;  %v12973_v22 = vld [vmem:[#allocation13 + $0x188] ss:$80 sps:$4 sm:$0xff]  }
0x1931   : > { %13009 = vtanh.f32 %v9191_v38  ;;  %v12974_v38 = vld [vmem:[#allocation13 + $0x228] ss:$80 sps:$4 sm:$0xff]  }
0x1932   : > { %13011 = vtanh.f32 %v9193_v39  ;;  %v12975_v39 = vld [vmem:[#allocation13 + $0x2c8] ss:$80 sps:$4 sm:$0xff]  }
0x1933   : > { %13013 = vtanh.f32 %v9192_v27  ;;  %v12976_v27 = vld [vmem:[#allocation13 + $0x368] ss:$80 sps:$4 sm:$0xff]  }
0x193a   : > { %v13008_v29 = vpop.eup %13007 }
0x193b   : > { %v13010_v36 = vpop.eup %13009  ;;  %v9198_v41 = vadd.f32 1.0, %v13008_v29  ;;  %v12977_v29 = vld [vmem:[#allocation13 + $0x408] ss:$80 sps:$4 sm:$0xff]  }
0x193c   : > { %v13012_v42 = vpop.eup %13011  ;;  %v9199_v47 = vadd.f32 1.0, %v13010_v36  ;;  %v12978_v36 = vld [vmem:[#allocation13 + $0x4a8] ss:$80 sps:$4 sm:$0xff]  }
0x193d   : > { %v13014_v25 = vpop.eup %13013  ;;  %v9201_v57 = vadd.f32 1.0, %v13012_v42  ;;  %v9202_v23 = vmul.f32 %v9198_v41, %v9170_v40 }
0x193e   : > { %v9203_v60 = vmul.f32 %v9199_v47, %v9171_v43  ;;  %v9200_v3 = vadd.f32 1.0, %v13014_v25  ;;  %v9562_v43 = vrot.slane %v14175_v44, 7 }
0x193f   : > { %v9205_v54 = vmul.f32 %v9201_v57, %v9173_v55  ;;  %v9270_v48 = vpack.c.bf16 %v9202_v23, %v9202_v23  ;;  %v13020_v57 = vld [vmem:[#allocation16 + $0x20] sm:$0xff] }
0x1940   : > { %v9271_v4 = vpack.c.bf16 %v9203_v60, %v9203_v60  ;;  %v9204_v5 = vmul.f32 %v9200_v3, %v9172_v63  ;;  %v9776_v63 = vrot.slane %v14171_v34, 4 }
0x1941   : > { %v9273_v31 = vpack.c.bf16 %v9205_v54, %v9205_v54 }
0x1942   : > { %9500 = vmatprep.mubr.bf16.mxu0 %v9271_v4  ;;  %v9272_v49 = vpack.c.bf16 %v9204_v5, %v9204_v5 }
0x1943   : > { %9540 = vmatprep.mubr.bf16.mxu1 %v9273_v31  ;;  %9501 = vmatmul.mubr.bf16.vlgmr.msra.gmra.mrb[112].mxu0 %v9270_v48 }
0x1944   : > { %9541 = vmatmul.mubr.bf16.vlgmr.msra.gmra.mrb[96].mxu1 %v9272_v49  ;;  %11944 = vmatpush3.bf16.msra.mxu0 %v12963_v8 }
0x1945   : > { %11945 = vmatprep.subr.bf16.mxu0 %v13380_v35  ;;  %11959 = vmatprep.mubr.msk.bf16.mxu0 %vm14441_vm12, %v13380_v35 }
0x1946   : > { %11979 = vmatprep.mubr.msk.bf16.mxu1 %vm14441_vm12, %v13380_v35  ;;  %11964 = vmatpush3.bf16.msra.mxu1 %v12971_v17 }
0x1947   : > { %11965 = vmatprep.subr.bf16.mxu1 %v13380_v35 }
0x1948   : > { %11946 = vmatpush3.bf16.msra.mxu0 %v12964_v37 }
0x1949   : > { %11947 = vmatprep.subr.bf16.mxu0 %v13380_v35 }
0x194a   : > { %11966 = vmatpush3.bf16.msra.mxu1 %v12972_v20 }
0x194b   : > { %11967 = vmatprep.subr.bf16.mxu1 %v13380_v35 }
0x194c   : > { %11948 = vmatpush3.bf16.msra.mxu0 %v12965_v50 }
0x194d   : > { %11949 = vmatprep.subr.bf16.mxu0 %v13380_v35 }
0x194e   : > { %11968 = vmatpush3.bf16.msra.mxu1 %v12973_v22 }
0x194f   : > { %11969 = vmatprep.subr.bf16.mxu1 %v13380_v35 }
0x1950   : > { %11950 = vmatpush3.bf16.msra.mxu0 %v12966_v51 }
0x1951   : > { %11951 = vmatprep.subr.bf16.mxu0 %v13380_v35 }
0x1952   : > { %11970 = vmatpush3.bf16.msra.mxu1 %v12974_v38 }
0x1953   : > { %11971 = vmatprep.subr.bf16.mxu1 %v13380_v35 }
0x1954   : > { %11952 = vmatpush3.bf16.msra.mxu0 %v12967_v52 }
0x1955   : > { %11953 = vmatprep.subr.bf16.mxu0 %v13380_v35 }
0x1956   : > { %11972 = vmatpush3.bf16.msra.mxu1 %v12975_v39 }
0x1957   : > { %11973 = vmatprep.subr.bf16.mxu1 %v13380_v35 }
0x1958   : > { %11954 = vmatpush3.bf16.msra.mxu0 %v12968_v53 }
0x1959   : > { %11955 = vmatprep.subr.bf16.mxu0 %v13380_v35 }
0x195a   : > { %11974 = vmatpush3.bf16.msra.mxu1 %v12976_v27 }
0x195b   : > { %11975 = vmatprep.subr.bf16.mxu1 %v13380_v35 }
0x195c   : > { %11956 = vmatpush3.bf16.msra.mxu0 %v12969_v56 }
0x195d   : > { %11957 = vmatprep.subr.bf16.mxu0 %v13380_v35 }
0x195e   : > { %11976 = vmatpush3.bf16.msra.mxu1 %v12977_v29 }
0x195f   : > { %11977 = vmatprep.subr.bf16.mxu1 %v13380_v35 }
0x1960   : > { %11958 = vmatpush3.bf16.msra.mxu0 %v12970_v46 }
0x1962   : > { %11978 = vmatpush3.bf16.msra.mxu1 %v12978_v36 }
0x1963   : > { %11960 = vmatmul.mubr.bf16.vlgmr.msra.gmra.mrb[116].mxu0 %v9599_v59 }
0x1a16   : > { %v11653_v45 = vpop.f32.mrb[112].mxu0 }
0x1a17   : > { %v11675_v62 = vpop.f32.mrb[96].mxu1  ;;  %v11654_v0 = vpop.f32.mrb[113].mxu0 }
0x1a18   : > { %v11655_v15 = vadd.f32 %v11654_v0, %v11653_v45  ;;  %v11676_v2 = vpop.f32.mrb[97].mxu1  ;;  %v11656_v6 = vpop.f32.mrb[114].mxu0 }
0x1a19   : > { %v11677_v7 = vadd.f32 %v11676_v2, %v11675_v62  ;;  %v11678_v10 = vpop.f32.mrb[98].mxu1  ;;  %v11657_v11 = vpop.f32.mrb[115].mxu0 }
0x1a1a   : > { %v9503_v1 = vadd.f32 %v11655_v15, %v9466_v61  ;;  %v11679_v12 = vpop.f32.mrb[99].mxu1 }
0x1a1c   : > { %v9543_v13 = vadd.f32 %v11677_v7, %v9503_v1 }
0x1a1e   : > { %v9548_v9 = vadd.f32 %v9543_v13, %v14261_v18 }
0x1a20   : > { %v9549_v14 = vsel %vm14451_vm15, %v9548_v9, 0.0 }
0x1a21   : > { %9550 = vadd.xlane.f32.xlu0 %v9549_v14 }
0x1a36   : > { %v9682_v16 = vpop.f32.mrb[116].mxu0 }
0x1a37   : > { %v11961_v19 = vpop.f32.mrb[117].mxu0 }
0x1a38   : > { %v9685_v33 = vpop.f32.mrb[118].mxu0 }
0x1a39   : > { %v11962_v21 = vpop.f32.mrb[119].mxu0 }
0x1aae   : > { %v9551_v24 = vpop.xlane.xlu0 %9550 }
0x1aaf   : > { %v9552_v26 = vmul.f32 0.0078125, %v9551_v24 }
0x1ab1   : > { %v9553_v30 = vsub.f32 %v9548_v9, %v9552_v26 }
0x1ab3   : > { %v9554_v32 = vmul.f32 %v9553_v30, %v9553_v30 }
0x1ab5   : > { %v9555_v18 = vsel %vm14452_vm3, %v9554_v32, 0.0 }
0x1ab6   : > { %9556 = vadd.xlane.f32.xlu1 %v9555_v18 }
0x1b43   : > { %v9557_v40 = vpop.xlane.xlu1 %9556 }
0x1b44   : > { %v9558_v41 = vmul.f32 0.0078125, %v9557_v40 }
0x1b46   : > { %v9559_v42 = vadd.f32 1e-06, %v9558_v41 }
0x1b48   : > { %13015 = vrsqrt.f32 %v9559_v42 }
0x1b52   : > { %v13016_v47 = vpop.eup %13015 }
0x1b53   : > { %v9561_v25 = vmul.f32 %v13016_v47, %v9553_v30 }
0x1b55   : > { %v9564_v55 = vmul.f32 %v9562_v43, %v9561_v25 }
0x1b57   : > { %v9565_v23 = vadd.f32 %v13020_v57, %v9564_v55 }
0x1b59   : > { %v9582_v60 = vpack.c.bf16 %v9565_v23, %v9565_v23 }
0x1b5b   : > { %11980 = vmatmul.mubr.bf16.vlgmr.msra.gmra.mrb[100].mxu1 %v9582_v60 }
0x1c2e   : > { %v9770_v35 = vpop.f32.mrb[100].mxu1 }
0x1c2f   : > { %v9771_v3 = vadd.f32 %v9770_v35, %v9682_v16  ;;  %v11981_v54 = vpop.f32.mrb[101].mxu1 }
0x1c30   : > { %v9773_v4 = vpop.f32.mrb[102].mxu1 }
0x1c31   : > { %v9778_v5 = vadd.f32 %v9776_v63, %v9771_v3  ;;  %v11982_v44 = vpop.f32.mrb[103].mxu1 }
0x1c33   : > { %9779 = vst [vmem:[%s555_s4] sm:$0x1] %v9778_v5 }
0x1c34   : > { %13292 = shalt.err (!%p13289_p2)
}
0x1c35   : > { %s13293_s15 = scalar_lea.hbm %s14299_s28, 16  ;;  %s13297_s13 = scalar_lea.hbm %s14455_s24, 32 }
0x1c36   : > { %p13294_p10 = scmp.ne.s32.totalorder %s14299_s28, %s13293_s15  ;;  %p13298_p9 = scmp.lt.u32.totalorder %s14299_s28, %s14455_s24 }
0x1c37   : > { %p13299_p12 = scmp.lt.u32.totalorder %s13297_s13, %s13293_s15  ;;  %p13301_p6 = scmp.lt.u32.totalorder %s13293_s15, %s14299_s28 }
0x1c38   : > { %p13295_p13 = pnand %p13294_p10, %p14456_p8 }
0x1c39   : > { %p13300_p3 = por %p13299_p12, %p13298_p9 }
0x1c3a   : > { %p13296_p5 = pneg %p13295_p13 }
0x1c3b   : > { %p13302_p1 = por %p13301_p6, %p13300_p3 }
0x1c3d   : > { %p13303_p0 = pnand %p13302_p1, %p13296_p5 }
0x1c3f   : > { %13306 = shalt.err (!%p13303_p0)
}
0x1c40   : > { %12079 = dma.vmem_to_hbm [thread:$0]  (%p14456_p8), %s14301_s25, 16, %s14299_s28, %s9781_s26  }
0x1c41 PF: > { %s14457_s22 = sld [smem:[#allocation24_spill]]  ;;  %s14458_s1 = sld [smem:[#allocation29_spill]] }
0x1c42   : > { %p14460_p7 = scmp.ge.s32.totalorder %s13361_s20, 2 }
0x1c47   : > { %s9805_s7 = sand.u32 1, %s14457_s22   ;;  %p14459_p4 = scmp.ne.s32.totalorder %s14458_s1, 0 }
0x1c48   : > { %s9806_s5 = scalar_lea.sflag [#allocation4], %s9805_s7 }
0x1c49   : > { %p12111_p11 = pnand %p14460_p7, %p14459_p4 }
0x1c4b   : > { %13344 = dma.done.wait (!%p12111_p11), %s9806_s5, 16  }
0x1c4c   : > { %13346 = vsyncadd (!%p12111_p11), %s9806_s5, 4294967280  ;;  %s14461_s20 = sld [smem:[#allocation26_spill]]  ;;  %s14462_s4 = sld [smem:[#allocation25_spill]] }
0x1c4d   : > { %s14463_s19 = sld [smem:[#allocation27_spill]]  ;;  %s14464_s17 = smov %s13353_s18 }
0x1c52   : > { %p30_p2 = scmp.ge.s32.totalorder %s14461_s20, 4   ;;  %s14465_s18 = smov %s14462_s4 }
0x1c54   :  { %32 = sbr.rel (!%p30_p2) target bundleno = 18 (0x12), region = 157 }
0x1c5b   :  { %9810 = vsyncpa [#allocation3], 1 }
0x1c5c   :  { %9812 = vsyncpa [#allocation3 + $0x1], 1 }
0x1c5d   :  { %9813 = vsyncpa [#allocation6], 1 }
0x1c5e   :  { %9815 = vsyncpa [#allocation6 + $0x1], 1 }
0x1c5f   :  { %9816 = vsyncpa [#allocation9], 1 }
0x1c60   :  { %9817 = vsyncpa [#allocation12], 1 }
0x1c61   :  { %9818 = vsyncpa [#allocation15], 1 }
0x1c62   :  { %9819 = vsyncpa [#allocation4], 1 }
0x1c63   :  { %9821 = vsyncpa [#allocation4 + $0x1], 1 }

</bundles_post_ra>
